<compile_context>
chip_gen: v7x
topology: tpu7x:2x2x1
jax: 0.10.0
libtpu: 0.0.40
codegen_flags: <defaults>
</compile_context>

<pallas_src>
import math
import functools

import jax
import jax.numpy as jnp
from jax import lax
from jax.experimental import pallas as pl
from jax.experimental.pallas import tpu as pltpu

_NEG = -1e30  # additive-mask value; kept fp32 end-to-end (never enters bf16 math)


# ----------------------------- Pallas kernel -------------------------------

def _layer_norm(x, w, b, eps=1e-5):
    mu = jnp.mean(x, axis=-1, keepdims=True)
    var = jnp.mean(jnp.square(x - mu), axis=-1, keepdims=True)
    return (x - mu) * lax.rsqrt(var + eps) * w + b


def saliency_chunk_kernel(*refs, nhead, nlayers, add_pe, has_final):
    """One grid step pushes a tile of BT batch elements through `nlayers` encoder
    layers (optionally preceded by the positional-encoding add and followed by the
    final Linear)."""
    refs = list(refs)
    o_ref = refs.pop()                      # single output ref (last positional arg)
    it = iter(refs)
    x_ref = next(it)                        # (BT, S, D) activations
    mask_ref = next(it)                     # (1, M, M) additive mask (block-diag + padding)
    pe_ref = next(it) if add_pe else None   # (1, S, D)
    layers = [tuple(next(it) for _ in range(16)) for _ in range(nlayers)]
    if has_final:
        wl_ref, bl_ref = next(it), next(it)

    BT, S, D = x_ref.shape
    H = nhead
    Dh = D // H
    M = BT * S
    bf16 = jnp.bfloat16
    rT = (((1,), (1,)), ((), ()))           # contract last dims of both: A @ B^T
    lT = (((0,), (0,)), ((), ()))           # contract first dims of both: A^T @ B

    x = x_ref[...].astype(jnp.float32)
    if add_pe:
        x = x + pe_ref[...]                 # PositionalEncoding (dropout = identity, eval)
    x = x.reshape(M, D)                     # leading-dim merge only (no relayout)
    mask = mask_ref[...]                    # (1, M, M) fp32, broadcasts over heads

    for (wq_t, bq, wk_t, bk, wv_t, bv, wo, bo, ln1w, ln1b,
         w1, b1, w2, b2, ln2w, ln2b) in layers:
        xb = x.astype(bf16)                                          # (M, D)

        # --- Q/K/V in transposed (D, M) layout; x^T folds into the MXU operand feed.
        qt = lax.dot_general(wq_t[...], xb, rT,
                             preferred_element_type=jnp.float32) + bq[...]
        kt = lax.dot_general(wk_t[...], xb, rT,
                             preferred_element_type=jnp.float32) + bk[...]
        vt = lax.dot_general(wv_t[...], xb, rT,
                             preferred_element_type=jnp.float32) + bv[...]
        # Head split is a free leading-dim reshape of the (D, M) layout.
        qh = jnp.transpose(qt.reshape(H, Dh, M), (0, 2, 1))          # (H, M, Dh)
        kh = kt.reshape(H, Dh, M)                                    # (H, Dh, M)
        vh = vt.reshape(H, Dh, M)                                    # (H, Dh, M)

        # --- scaled dot-product attention (scale pre-folded into wq/bq) -------------
        scores = jnp.einsum("hqd,hdk->hqk", qh.astype(bf16), kh.astype(bf16),
                            preferred_element_type=jnp.float32)      # (H, M, M)
        scores = scores + mask                                       # fp32 masked scores
        scores = scores - jnp.max(scores, axis=-1, keepdims=True)
        p = jnp.exp(scores)
        p = p * pl.reciprocal(jnp.sum(p, axis=-1, keepdims=True), approx=True)

        # Context computed transposed: head re-assembly is a free reshape to (D, M).
        ctx_t = jnp.einsum("hdk,hqk->hdq", vh.astype(bf16), p.astype(bf16),
                           preferred_element_type=jnp.float32)       # (H, Dh, M)
        # Single output projection: (M, D) @ (D, D) — contraction depth D, not Dh.
        attn = lax.dot_general(ctx_t.reshape(D, M).astype(bf16), wo[...], lT,
                               preferred_element_type=jnp.float32) + bo[...]   # (M, D)

        # --- residual + LayerNorm1 (post-norm, PyTorch norm_first=False) ------------
        y = _layer_norm(x + attn, ln1w[...], ln1b[...])

        # --- feed-forward (ReLU) + residual + LayerNorm2 -----------------------------
        h1 = jnp.dot(y.astype(bf16), w1[...],
                     preferred_element_type=jnp.float32) + b1[...]
        h1 = jnp.maximum(h1, 0.0)
        h2 = jnp.dot(h1.astype(bf16), w2[...],
                     preferred_element_type=jnp.float32) + b2[...]
        x = _layer_norm(y + h2, ln2w[...], ln2b[...])

    if has_final:
        out = jnp.dot(x.astype(bf16), wl_ref[...],
                      preferred_element_type=jnp.float32) + bl_ref[...]
        o_ref[...] = out.reshape(BT, S, -1).astype(o_ref.dtype)
    else:
        o_ref[...] = x.reshape(BT, S, D).astype(o_ref.dtype)


# ----------------------------- wrappers -------------------------------------

def _const_spec(shape):
    zeros = (0,) * len(shape)
    return pl.BlockSpec(shape, lambda g, _z=zeros: _z)


def _chip_config():
    """Chip-aware tiling knobs: (rows-per-step cap, force-2-grid-steps, vmem limit)."""
    kind = ""
    try:
        kind = jax.devices()[0].device_kind.lower()
    except Exception:
        pass
    is_v5e = ("v5e" in kind) or ("v5 lite" in kind) or ("v5litepod" in kind)
    is_v7 = ("v7" in kind) or ("tpu7" in kind) or ("7x" in kind)
    try:
        vmem_cap = int(pltpu.get_tpu_info().vmem_capacity_bytes)
    except Exception:
        vmem_cap = (64 if is_v7 else 128) * 1024 * 1024
    # v5e MXU is 4x128^2 -> 128 rows fill it; v6e/v7x MXU is 2x256^2 -> 256 rows.
    row_cap = 128 if is_v5e else 256
    # Only v7x has 2 TensorCores; splitting the grid on single-TC chips is pure overhead.
    two_tc = is_v7
    # Conservative scoped-VMEM budget on 64-MiB chips (v7x), roomier on v5e/v6e (128 MiB).
    vmem_limit = 48 * 1024 * 1024 if vmem_cap <= 64 * 1024 * 1024 else 80 * 1024 * 1024
    return row_cap, two_tc, vmem_limit


def _pick_batch_tile(B, S, row_cap, two_tc):
    cap = max(1, row_cap // max(S, 1))
    if two_tc and B > 1:
        cap = min(cap, -(-B // 2))      # >= 2 grid steps so both TensorCores get work
    bt = max(1, min(B, cap))
    while B % bt:
        bt -= 1
    return bt


def _chunk_layers(prepared, budget_bytes):
    """Greedily group layers so each group's weights fit the VMEM budget."""
    chunks, cur, cur_bytes = [], [], 0
    for lw in prepared:
        nbytes = sum(w.size * w.dtype.itemsize for w in lw)
        if cur and cur_bytes + nbytes > budget_bytes:
            chunks.append(cur)
            cur, cur_bytes = [], 0
        cur.append(lw)
        cur_bytes += nbytes
    if cur:
        chunks.append(cur)
    return chunks


def _saliency_chunk_call(x, mask_tiles, pe, chunk_weights, final_wb, *,
                         nhead, add_pe, has_final, BT, vmem_limit):
    B, S, D = x.shape
    G = B // BT
    M = BT * S
    out_dim = final_wb[0].shape[1] if has_final else D
    out_dtype = jnp.float32 if has_final else jnp.bfloat16   # bf16 chunk boundaries

    inputs = [x, mask_tiles]
    in_specs = [pl.BlockSpec((BT, S, D), lambda g: (g, 0, 0)),
                pl.BlockSpec((1, M, M), lambda g: (g, 0, 0))]
    if add_pe:
        inputs.append(pe)
        in_specs.append(_const_spec((1, S, D)))
    for lw in chunk_weights:
        inputs.extend(lw)
        in_specs.extend(_const_spec(tuple(w.shape)) for w in lw)
    if has_final:
        inputs.extend(final_wb)
        in_specs.extend(_const_spec(tuple(w.shape)) for w in final_wb)

    return pl.pallas_call(
        functools.partial(saliency_chunk_kernel, nhead=nhead,
                          nlayers=len(chunk_weights), add_pe=add_pe,
                          has_final=has_final),
        out_shape=jax.ShapeDtypeStruct((B, S, out_dim), out_dtype),
        grid=(G,),
        in_specs=in_specs,
        out_specs=pl.BlockSpec((BT, S, out_dim), lambda g: (g, 0, 0)),
        compiler_params=pltpu.CompilerParams(
            dimension_semantics=("parallel",),
            vmem_limit_bytes=vmem_limit),
    )(*inputs)


def prepare_saliency_params(layers, w_lin, b_lin, nhead):
    """One-time hoisted weight re-layouts: pre-transposed / pre-scaled bf16 matmul
    weights and 2-D fp32 biases (no per-forward-call transpose/convert ops)."""
    bf16 = jnp.bfloat16
    f32 = jnp.float32
    prepared = []
    for p in layers:
        D = p["wq"].shape[0]
        F = p["w1"].shape[1]
        scale = 1.0 / math.sqrt(D // nhead)       # fold 1/sqrt(Dh) into q weights/bias
        prepared.append((
            (scale * p["wq"].T).astype(bf16), (scale * p["bq"]).reshape(D, 1).astype(f32),
            p["wk"].T.astype(bf16),           p["bk"].reshape(D, 1).astype(f32),
            p["wv"].T.astype(bf16),           p["bv"].reshape(D, 1).astype(f32),
            p["wo"].astype(bf16),             p["bo"].reshape(1, D).astype(f32),
            p["ln1_w"].reshape(1, D).astype(f32), p["ln1_b"].reshape(1, D).astype(f32),
            p["w1"].astype(bf16),             p["b1"].reshape(1, F).astype(f32),
            p["w2"].astype(bf16),             p["b2"].reshape(1, D).astype(f32),
            p["ln2_w"].reshape(1, D).astype(f32), p["ln2_b"].reshape(1, D).astype(f32),
        ))
    out_dim = w_lin.shape[1]
    final_wb = (w_lin.astype(bf16), b_lin.reshape(1, out_dim).astype(f32))
    return prepared, final_wb


def saliency_forward(embeddings, embed_mask, pe, prepared_layers, final_wb, *, nhead):
    B, S, D = embeddings.shape
    row_cap, two_tc, vmem_limit = _chip_config()
    BT = _pick_batch_tile(B, S, row_cap, two_tc)
    G = B // BT
    M = BT * S

    # Combined additive attention mask, precomputed once per call (outside the kernel):
    # block-diagonal over the batch tile (keeps attention per-sample when BT > 1) plus
    # the key-padding mask; fp32, clamped so stacked terms never exceed -1e30.
    # TODO(synk): fully key-padded rows softmax to ~uniform weights here; PyTorch yields NaN.
    pad = jnp.where(embed_mask, _NEG, 0.0).astype(jnp.float32)             # (B, S)
    blk = jnp.arange(M, dtype=jnp.int32) // S
    blockdiag = jnp.where(blk[:, None] == blk[None, :], 0.0, _NEG)         # (M, M)
    mask_tiles = jnp.maximum(blockdiag[None, :, :] + pad.reshape(G, 1, M), _NEG)

    # Pack as many layers per pallas_call as the VMEM weight budget allows; at demo
    # scale this is ALL layers + PE add + final Linear in one kernel.
    chunks = _chunk_layers(prepared_layers, budget_bytes=vmem_limit // 3)
    x = embeddings.astype(jnp.float32)
    n = len(chunks)
    for ci, chunk in enumerate(chunks):
        x = _saliency_chunk_call(
            x, mask_tiles, pe, chunk, final_wb,
            nhead=nhead, add_pe=(ci == 0), has_final=(ci == n - 1),
            BT=BT, vmem_limit=vmem_limit)
    return x


# ----------------------------- params / PE -----------------------------------

def make_positional_encoding(d_model, seq_len):
    position = jnp.arange(seq_len, dtype=jnp.float32)[:, None]
    div_term = jnp.exp(jnp.arange(0, d_model, 2, dtype=jnp.float32)
                       * (-math.log(10000.0) / d_model))
    pe = jnp.zeros((seq_len, d_model), dtype=jnp.float32)
    pe = pe.at[:, 0::2].set(jnp.sin(position * div_term))
    pe = pe.at[:, 1::2].set(jnp.cos(position * div_term))
    return pe[None, :, :]     # (1, S, D), batch_first


def init_saliency_params(key, input_dim, nhead, num_layers, output_dim, dim_ff=2048):
    # Deterministic synthetic init (no checkpoint loading); natural (in, out) fp32 layout.
    D, F = input_dim, dim_ff
    keys = jax.random.split(key, num_layers * 6 + 1)
    layers = []
    for l in range(num_layers):
        kq, kk, kv, ko, k1, k2 = keys[6 * l:6 * l + 6]
        layers.append({
            "wq": 0.02 * jax.random.normal(kq, (D, D), jnp.float32),
            "bq": jnp.zeros((D,), jnp.float32),
            "wk": 0.02 * jax.random.normal(kk, (D, D), jnp.float32),
            "bk": jnp.zeros((D,), jnp.float32),
            "wv": 0.02 * jax.random.normal(kv, (D, D), jnp.float32),
            "bv": jnp.zeros((D,), jnp.float32),
            "wo": 0.02 * jax.random.normal(ko, (D, D), jnp.float32),
            "bo": jnp.zeros((D,), jnp.float32),
            "ln1_w": jnp.ones((D,), jnp.float32), "ln1_b": jnp.zeros((D,), jnp.float32),
            "w1": 0.02 * jax.random.normal(k1, (D, F), jnp.float32),
            "b1": jnp.zeros((F,), jnp.float32),
            "w2": 0.02 * jax.random.normal(k2, (F, D), jnp.float32),
            "b2": jnp.zeros((D,), jnp.float32),
            "ln2_w": jnp.ones((D,), jnp.float32), "ln2_b": jnp.zeros((D,), jnp.float32),
        })
    w_lin = 0.02 * jax.random.normal(keys[-1], (input_dim, output_dim), jnp.float32)
    b_lin = jnp.zeros((output_dim,), jnp.float32)
    return layers, w_lin, b_lin


# ----------------------------- main ------------------------------------------

if __name__ == "__main__":
    B, S = 2, 8
    input_dim, nhead, num_layers, output_dim = 32, 4, 2, 16

    key = jax.random.PRNGKey(0)
    k_emb, k_param = jax.random.split(key)
    embeddings = jax.random.normal(k_emb, (B, S, input_dim), jnp.float32)
    # key-padding mask: last two positions of batch element 1 are padded
    embed_mask = jnp.zeros((B, S), dtype=bool).at[1, S - 2:].set(True)

    layers, w_lin, b_lin = init_saliency_params(
        k_param, input_dim, nhead, num_layers, output_dim)
    # One-time hoisted re-layouts (transposes / bf16 casts / bias reshapes).
    prepared_layers, final_wb = prepare_saliency_params(layers, w_lin, b_lin, nhead)
    pe = make_positional_encoding(input_dim, S)   # (1, S, D), built once and reused

    fwd = jax.jit(functools.partial(saliency_forward, nhead=nhead))
    out = fwd(embeddings, embed_mask, pe, prepared_layers, final_wb)
    out = jax.block_until_ready(out)
    assert out.shape == (B, S, output_dim)
    print("KERNEL_OK")
</pallas_src>

<mosaic_0001>
module attributes {stable_mosaic.version = 11 : i64} {
  func.func @saliency_chunk_kernel(%arg0: i32, %arg1: memref<2x8x32xf32, #tpu.memory_space<vmem>>, %arg2: memref<1x16x16xf32, #tpu.memory_space<vmem>>, %arg3: memref<1x8x32xf32, #tpu.memory_space<vmem>>, %arg4: memref<32x32xbf16, #tpu.memory_space<vmem>>, %arg5: memref<32x1xf32, #tpu.memory_space<vmem>>, %arg6: memref<32x32xbf16, #tpu.memory_space<vmem>>, %arg7: memref<32x1xf32, #tpu.memory_space<vmem>>, %arg8: memref<32x32xbf16, #tpu.memory_space<vmem>>, %arg9: memref<32x1xf32, #tpu.memory_space<vmem>>, %arg10: memref<32x32xbf16, #tpu.memory_space<vmem>>, %arg11: memref<1x32xf32, #tpu.memory_space<vmem>>, %arg12: memref<1x32xf32, #tpu.memory_space<vmem>>, %arg13: memref<1x32xf32, #tpu.memory_space<vmem>>, %arg14: memref<32x2048xbf16, #tpu.memory_space<vmem>>, %arg15: memref<1x2048xf32, #tpu.memory_space<vmem>>, %arg16: memref<2048x32xbf16, #tpu.memory_space<vmem>>, %arg17: memref<1x32xf32, #tpu.memory_space<vmem>>, %arg18: memref<1x32xf32, #tpu.memory_space<vmem>>, %arg19: memref<1x32xf32, #tpu.memory_space<vmem>>, %arg20: memref<32x32xbf16, #tpu.memory_space<vmem>>, %arg21: memref<32x1xf32, #tpu.memory_space<vmem>>, %arg22: memref<32x32xbf16, #tpu.memory_space<vmem>>, %arg23: memref<32x1xf32, #tpu.memory_space<vmem>>, %arg24: memref<32x32xbf16, #tpu.memory_space<vmem>>, %arg25: memref<32x1xf32, #tpu.memory_space<vmem>>, %arg26: memref<32x32xbf16, #tpu.memory_space<vmem>>, %arg27: memref<1x32xf32, #tpu.memory_space<vmem>>, %arg28: memref<1x32xf32, #tpu.memory_space<vmem>>, %arg29: memref<1x32xf32, #tpu.memory_space<vmem>>, %arg30: memref<32x2048xbf16, #tpu.memory_space<vmem>>, %arg31: memref<1x2048xf32, #tpu.memory_space<vmem>>, %arg32: memref<2048x32xbf16, #tpu.memory_space<vmem>>, %arg33: memref<1x32xf32, #tpu.memory_space<vmem>>, %arg34: memref<1x32xf32, #tpu.memory_space<vmem>>, %arg35: memref<1x32xf32, #tpu.memory_space<vmem>>, %arg36: memref<32x16xbf16, #tpu.memory_space<vmem>>, %arg37: memref<1x16xf32, #tpu.memory_space<vmem>>, %arg38: memref<2x8x16xf32, #tpu.memory_space<vmem>>) attributes {dimension_semantics = [#tpu.dimension_semantics<parallel>], iteration_bounds = array<i64: 1>, scalar_prefetch = 0 : i64, scratch_operands = 0 : i64, tpu.core_type = #tpu.core_type<tc>, window_params = [{transform_indices = @transform_0, window_bounds = array<i64: 2, 8, 32>}, {transform_indices = @transform_1, window_bounds = array<i64: 1, 16, 16>}, {pipeline_mode = #tpu.pipeline_mode<synchronous>, transform_indices = @transform_2, window_bounds = array<i64: 1, 8, 32>}, {pipeline_mode = #tpu.pipeline_mode<synchronous>, transform_indices = @transform_3, window_bounds = array<i64: 32, 32>}, {pipeline_mode = #tpu.pipeline_mode<synchronous>, transform_indices = @transform_4, window_bounds = array<i64: 32, 1>}, {pipeline_mode = #tpu.pipeline_mode<synchronous>, transform_indices = @transform_5, window_bounds = array<i64: 32, 32>}, {pipeline_mode = #tpu.pipeline_mode<synchronous>, transform_indices = @transform_6, window_bounds = array<i64: 32, 1>}, {pipeline_mode = #tpu.pipeline_mode<synchronous>, transform_indices = @transform_7, window_bounds = array<i64: 32, 32>}, {pipeline_mode = #tpu.pipeline_mode<synchronous>, transform_indices = @transform_8, window_bounds = array<i64: 32, 1>}, {pipeline_mode = #tpu.pipeline_mode<synchronous>, transform_indices = @transform_9, window_bounds = array<i64: 32, 32>}, {pipeline_mode = #tpu.pipeline_mode<synchronous>, transform_indices = @transform_10, window_bounds = array<i64: 1, 32>}, {pipeline_mode = #tpu.pipeline_mode<synchronous>, transform_indices = @transform_11, window_bounds = array<i64: 1, 32>}, {pipeline_mode = #tpu.pipeline_mode<synchronous>, transform_indices = @transform_12, window_bounds = array<i64: 1, 32>}, {pipeline_mode = #tpu.pipeline_mode<synchronous>, transform_indices = @transform_13, window_bounds = array<i64: 32, 2048>}, {pipeline_mode = #tpu.pipeline_mode<synchronous>, transform_indices = @transform_14, window_bounds = array<i64: 1, 2048>}, {pipeline_mode = #tpu.pipeline_mode<synchronous>, transform_indices = @transform_15, window_bounds = array<i64: 2048, 32>}, {pipeline_mode = #tpu.pipeline_mode<synchronous>, transform_indices = @transform_16, window_bounds = array<i64: 1, 32>}, {pipeline_mode = #tpu.pipeline_mode<synchronous>, transform_indices = @transform_17, window_bounds = array<i64: 1, 32>}, {pipeline_mode = #tpu.pipeline_mode<synchronous>, transform_indices = @transform_18, window_bounds = array<i64: 1, 32>}, {pipeline_mode = #tpu.pipeline_mode<synchronous>, transform_indices = @transform_19, window_bounds = array<i64: 32, 32>}, {pipeline_mode = #tpu.pipeline_mode<synchronous>, transform_indices = @transform_20, window_bounds = array<i64: 32, 1>}, {pipeline_mode = #tpu.pipeline_mode<synchronous>, transform_indices = @transform_21, window_bounds = array<i64: 32, 32>}, {pipeline_mode = #tpu.pipeline_mode<synchronous>, transform_indices = @transform_22, window_bounds = array<i64: 32, 1>}, {pipeline_mode = #tpu.pipeline_mode<synchronous>, transform_indices = @transform_23, window_bounds = array<i64: 32, 32>}, {pipeline_mode = #tpu.pipeline_mode<synchronous>, transform_indices = @transform_24, window_bounds = array<i64: 32, 1>}, {pipeline_mode = #tpu.pipeline_mode<synchronous>, transform_indices = @transform_25, window_bounds = array<i64: 32, 32>}, {pipeline_mode = #tpu.pipeline_mode<synchronous>, transform_indices = @transform_26, window_bounds = array<i64: 1, 32>}, {pipeline_mode = #tpu.pipeline_mode<synchronous>, transform_indices = @transform_27, window_bounds = array<i64: 1, 32>}, {pipeline_mode = #tpu.pipeline_mode<synchronous>, transform_indices = @transform_28, window_bounds = array<i64: 1, 32>}, {pipeline_mode = #tpu.pipeline_mode<synchronous>, transform_indices = @transform_29, window_bounds = array<i64: 32, 2048>}, {pipeline_mode = #tpu.pipeline_mode<synchronous>, transform_indices = @transform_30, window_bounds = array<i64: 1, 2048>}, {pipeline_mode = #tpu.pipeline_mode<synchronous>, transform_indices = @transform_31, window_bounds = array<i64: 2048, 32>}, {pipeline_mode = #tpu.pipeline_mode<synchronous>, transform_indices = @transform_32, window_bounds = array<i64: 1, 32>}, {pipeline_mode = #tpu.pipeline_mode<synchronous>, transform_indices = @transform_33, window_bounds = array<i64: 1, 32>}, {pipeline_mode = #tpu.pipeline_mode<synchronous>, transform_indices = @transform_34, window_bounds = array<i64: 1, 32>}, {pipeline_mode = #tpu.pipeline_mode<synchronous>, transform_indices = @transform_35, window_bounds = array<i64: 32, 16>}, {pipeline_mode = #tpu.pipeline_mode<synchronous>, transform_indices = @transform_36, window_bounds = array<i64: 1, 16>}, {transform_indices = @transform_37, window_bounds = array<i64: 2, 8, 16>}]} {
    %c0 = arith.constant 0 : index
    %c0_0 = arith.constant 0 : index
    %c0_1 = arith.constant 0 : index
    %0 = vector.load %arg1[%c0, %c0_0, %c0_1] : memref<2x8x32xf32, #tpu.memory_space<vmem>>, vector<2x8x32xf32>
    %c0_2 = arith.constant 0 : index
    %c0_3 = arith.constant 0 : index
    %c0_4 = arith.constant 0 : index
    %1 = vector.load %arg3[%c0_2, %c0_3, %c0_4] : memref<1x8x32xf32, #tpu.memory_space<vmem>>, vector<1x8x32xf32>
    %2 = vector.broadcast %1 : vector<1x8x32xf32> to vector<2x8x32xf32>
    %3 = arith.addf %0, %2 : vector<2x8x32xf32>
    %4 = vector.shape_cast %3 : vector<2x8x32xf32> to vector<16x32xf32>
    %c0_5 = arith.constant 0 : index
    %c0_6 = arith.constant 0 : index
    %c0_7 = arith.constant 0 : index
    %5 = vector.load %arg2[%c0_5, %c0_6, %c0_7] : memref<1x16x16xf32, #tpu.memory_space<vmem>>, vector<1x16x16xf32>
    %6 = arith.truncf %4 : vector<16x32xf32> to vector<16x32xbf16>
    %c0_8 = arith.constant 0 : index
    %c0_9 = arith.constant 0 : index
    %7 = vector.load %arg4[%c0_8, %c0_9] : memref<32x32xbf16, #tpu.memory_space<vmem>>, vector<32x32xbf16>
    %cst = arith.constant dense<0.000000e+00> : vector<32x16xf32>
    %8 = tpu.matmul %7, %6, %cst {dimension_numbers = #tpu.dot_dimension_numbers<[1], [1], [0], [0], [0, 0, 1, 0], [], []>} : vector<32x32xbf16>, vector<16x32xbf16>, vector<32x16xf32> -> vector<32x16xf32>
    %c0_10 = arith.constant 0 : index
    %c0_11 = arith.constant 0 : index
    %9 = vector.load %arg5[%c0_10, %c0_11] : memref<32x1xf32, #tpu.memory_space<vmem>>, vector<32x1xf32>
    %10 = vector.broadcast %9 : vector<32x1xf32> to vector<32x16xf32>
    %11 = arith.addf %8, %10 : vector<32x16xf32>
    %c0_12 = arith.constant 0 : index
    %c0_13 = arith.constant 0 : index
    %12 = vector.load %arg6[%c0_12, %c0_13] : memref<32x32xbf16, #tpu.memory_space<vmem>>, vector<32x32xbf16>
    %cst_14 = arith.constant dense<0.000000e+00> : vector<32x16xf32>
    %13 = tpu.matmul %12, %6, %cst_14 {dimension_numbers = #tpu.dot_dimension_numbers<[1], [1], [0], [0], [0, 0, 1, 0], [], []>} : vector<32x32xbf16>, vector<16x32xbf16>, vector<32x16xf32> -> vector<32x16xf32>
    %c0_15 = arith.constant 0 : index
    %c0_16 = arith.constant 0 : index
    %14 = vector.load %arg7[%c0_15, %c0_16] : memref<32x1xf32, #tpu.memory_space<vmem>>, vector<32x1xf32>
    %15 = vector.broadcast %14 : vector<32x1xf32> to vector<32x16xf32>
    %16 = arith.addf %13, %15 : vector<32x16xf32>
    %c0_17 = arith.constant 0 : index
    %c0_18 = arith.constant 0 : index
    %17 = vector.load %arg8[%c0_17, %c0_18] : memref<32x32xbf16, #tpu.memory_space<vmem>>, vector<32x32xbf16>
    %cst_19 = arith.constant dense<0.000000e+00> : vector<32x16xf32>
    %18 = tpu.matmul %17, %6, %cst_19 {dimension_numbers = #tpu.dot_dimension_numbers<[1], [1], [0], [0], [0, 0, 1, 0], [], []>} : vector<32x32xbf16>, vector<16x32xbf16>, vector<32x16xf32> -> vector<32x16xf32>
    %c0_20 = arith.constant 0 : index
    %c0_21 = arith.constant 0 : index
    %19 = vector.load %arg9[%c0_20, %c0_21] : memref<32x1xf32, #tpu.memory_space<vmem>>, vector<32x1xf32>
    %20 = vector.broadcast %19 : vector<32x1xf32> to vector<32x16xf32>
    %21 = arith.addf %18, %20 : vector<32x16xf32>
    %22 = vector.shape_cast %11 : vector<32x16xf32> to vector<4x8x16xf32>
    %23 = tpu.transpose %22, [0, 2, 1] : vector<4x8x16xf32> -> vector<4x16x8xf32>
    %24 = vector.shape_cast %16 : vector<32x16xf32> to vector<4x8x16xf32>
    %25 = vector.shape_cast %21 : vector<32x16xf32> to vector<4x8x16xf32>
    %26 = arith.truncf %23 : vector<4x16x8xf32> to vector<4x16x8xbf16>
    %27 = arith.truncf %24 : vector<4x8x16xf32> to vector<4x8x16xbf16>
    "tpu.trace_start"() <{level = 10 : i32, message = "hqd,hdk->hqk"}> : () -> ()
    %cst_22 = arith.constant dense<0.000000e+00> : vector<4x16x16xf32>
    %28 = tpu.matmul %26, %27, %cst_22 {dimension_numbers = #tpu.dot_dimension_numbers<[2], [1], [1], [2], [0, 0, 0, 1, 1, 2], [0], [0]>} : vector<4x16x8xbf16>, vector<4x8x16xbf16>, vector<4x16x16xf32> -> vector<4x16x16xf32>
    "tpu.trace_stop"() : () -> ()
    %29 = vector.broadcast %5 : vector<1x16x16xf32> to vector<4x16x16xf32>
    %30 = arith.addf %28, %29 : vector<4x16x16xf32>
    %cst_23 = arith.constant dense<0xFF800000> : vector<4x16xf32>
    %31 = vector.multi_reduction <maximumf>, %30, %cst_23 [2] : vector<4x16x16xf32> to vector<4x16xf32>
    %32 = vector.shape_cast %31 : vector<4x16xf32> to vector<4x16x1xf32>
    %33 = vector.broadcast %32 : vector<4x16x1xf32> to vector<4x16x16xf32>
    %34 = arith.subf %30, %33 : vector<4x16x16xf32>
    %35 = math.exp %34 : vector<4x16x16xf32>
    %cst_24 = arith.constant dense<0.000000e+00> : vector<4x16xf32>
    %36 = vector.multi_reduction <add>, %35, %cst_24 [2] : vector<4x16x16xf32> to vector<4x16xf32>
    %37 = vector.shape_cast %36 : vector<4x16xf32> to vector<4x16x1xf32>
    %38 = tpu.reciprocal %37 {approx = true} : vector<4x16x1xf32> -> vector<4x16x1xf32>
    %39 = vector.broadcast %38 : vector<4x16x1xf32> to vector<4x16x16xf32>
    %40 = arith.mulf %35, %39 : vector<4x16x16xf32>
    %41 = arith.truncf %25 : vector<4x8x16xf32> to vector<4x8x16xbf16>
    %42 = arith.truncf %40 : vector<4x16x16xf32> to vector<4x16x16xbf16>
    "tpu.trace_start"() <{level = 10 : i32, message = "hdk,hqk->hdq"}> : () -> ()
    %cst_25 = arith.constant dense<0.000000e+00> : vector<4x8x16xf32>
    %43 = tpu.matmul %41, %42, %cst_25 {dimension_numbers = #tpu.dot_dimension_numbers<[2], [2], [1], [1], [0, 0, 0, 1, 1, 1], [0], [0]>} : vector<4x8x16xbf16>, vector<4x16x16xbf16>, vector<4x8x16xf32> -> vector<4x8x16xf32>
    "tpu.trace_stop"() : () -> ()
    %44 = vector.shape_cast %43 : vector<4x8x16xf32> to vector<32x16xf32>
    %45 = arith.truncf %44 : vector<32x16xf32> to vector<32x16xbf16>
    %c0_26 = arith.constant 0 : index
    %c0_27 = arith.constant 0 : index
    %46 = vector.load %arg10[%c0_26, %c0_27] : memref<32x32xbf16, #tpu.memory_space<vmem>>, vector<32x32xbf16>
    %cst_28 = arith.constant dense<0.000000e+00> : vector<16x32xf32>
    %47 = tpu.matmul %45, %46, %cst_28 {dimension_numbers = #tpu.dot_dimension_numbers<[0], [0], [1], [1], [0, 1, 1, 1], [], []>} : vector<32x16xbf16>, vector<32x32xbf16>, vector<16x32xf32> -> vector<16x32xf32>
    %c0_29 = arith.constant 0 : index
    %c0_30 = arith.constant 0 : index
    %48 = vector.load %arg11[%c0_29, %c0_30] : memref<1x32xf32, #tpu.memory_space<vmem>>, vector<1x32xf32>
    %49 = vector.broadcast %48 : vector<1x32xf32> to vector<16x32xf32>
    %50 = arith.addf %47, %49 : vector<16x32xf32>
    %51 = arith.addf %4, %50 : vector<16x32xf32>
    %c0_31 = arith.constant 0 : index
    %c0_32 = arith.constant 0 : index
    %52 = vector.load %arg12[%c0_31, %c0_32] : memref<1x32xf32, #tpu.memory_space<vmem>>, vector<1x32xf32>
    %c0_33 = arith.constant 0 : index
    %c0_34 = arith.constant 0 : index
    %53 = vector.load %arg13[%c0_33, %c0_34] : memref<1x32xf32, #tpu.memory_space<vmem>>, vector<1x32xf32>
    %cst_35 = arith.constant dense<0.000000e+00> : vector<16xf32>
    %54 = vector.multi_reduction <add>, %51, %cst_35 [1] : vector<16x32xf32> to vector<16xf32>
    %55 = vector.shape_cast %54 : vector<16xf32> to vector<16x1xf32>
    %cst_36 = arith.constant 3.200000e+01 : f32
    %56 = vector.broadcast %cst_36 : f32 to vector<16x1xf32>
    %57 = arith.divf %55, %56 : vector<16x1xf32>
    %58 = vector.broadcast %57 : vector<16x1xf32> to vector<16x32xf32>
    %59 = arith.subf %51, %58 : vector<16x32xf32>
    %60 = arith.mulf %59, %59 : vector<16x32xf32>
    %cst_37 = arith.constant dense<0.000000e+00> : vector<16xf32>
    %61 = vector.multi_reduction <add>, %60, %cst_37 [1] : vector<16x32xf32> to vector<16xf32>
    %62 = vector.shape_cast %61 : vector<16xf32> to vector<16x1xf32>
    %cst_38 = arith.constant 3.200000e+01 : f32
    %63 = vector.broadcast %cst_38 : f32 to vector<16x1xf32>
    %64 = arith.divf %62, %63 : vector<16x1xf32>
    %65 = vector.broadcast %57 : vector<16x1xf32> to vector<16x32xf32>
    %66 = arith.subf %51, %65 : vector<16x32xf32>
    %cst_39 = arith.constant 9.99999974E-6 : f32
    %67 = vector.broadcast %cst_39 : f32 to vector<16x1xf32>
    %68 = arith.addf %64, %67 : vector<16x1xf32>
    %69 = math.rsqrt %68 : vector<16x1xf32>
    %70 = vector.broadcast %69 : vector<16x1xf32> to vector<16x32xf32>
    %71 = arith.mulf %66, %70 : vector<16x32xf32>
    %72 = vector.broadcast %52 : vector<1x32xf32> to vector<16x32xf32>
    %73 = arith.mulf %71, %72 : vector<16x32xf32>
    %74 = vector.broadcast %53 : vector<1x32xf32> to vector<16x32xf32>
    %75 = arith.addf %73, %74 : vector<16x32xf32>
    %76 = arith.truncf %75 : vector<16x32xf32> to vector<16x32xbf16>
    %c0_40 = arith.constant 0 : index
    %c0_41 = arith.constant 0 : index
    %77 = vector.load %arg14[%c0_40, %c0_41] : memref<32x2048xbf16, #tpu.memory_space<vmem>>, vector<32x2048xbf16>
    %cst_42 = arith.constant dense<0.000000e+00> : vector<16x2048xf32>
    %78 = tpu.matmul %76, %77, %cst_42 {dimension_numbers = #tpu.dot_dimension_numbers<[1], [0], [0], [1], [0, 0, 1, 1], [], []>} : vector<16x32xbf16>, vector<32x2048xbf16>, vector<16x2048xf32> -> vector<16x2048xf32>
    %c0_43 = arith.constant 0 : index
    %c0_44 = arith.constant 0 : index
    %79 = vector.load %arg15[%c0_43, %c0_44] : memref<1x2048xf32, #tpu.memory_space<vmem>>, vector<1x2048xf32>
    %80 = vector.broadcast %79 : vector<1x2048xf32> to vector<16x2048xf32>
    %81 = arith.addf %78, %80 : vector<16x2048xf32>
    %cst_45 = arith.constant 0.000000e+00 : f32
    %82 = vector.broadcast %cst_45 : f32 to vector<16x2048xf32>
    %83 = arith.maximumf %81, %82 : vector<16x2048xf32>
    %84 = arith.truncf %83 : vector<16x2048xf32> to vector<16x2048xbf16>
    %c0_46 = arith.constant 0 : index
    %c0_47 = arith.constant 0 : index
    %85 = vector.load %arg16[%c0_46, %c0_47] : memref<2048x32xbf16, #tpu.memory_space<vmem>>, vector<2048x32xbf16>
    %cst_48 = arith.constant dense<0.000000e+00> : vector<16x32xf32>
    %86 = tpu.matmul %84, %85, %cst_48 {dimension_numbers = #tpu.dot_dimension_numbers<[1], [0], [0], [1], [0, 0, 1, 1], [], []>} : vector<16x2048xbf16>, vector<2048x32xbf16>, vector<16x32xf32> -> vector<16x32xf32>
    %c0_49 = arith.constant 0 : index
    %c0_50 = arith.constant 0 : index
    %87 = vector.load %arg17[%c0_49, %c0_50] : memref<1x32xf32, #tpu.memory_space<vmem>>, vector<1x32xf32>
    %88 = vector.broadcast %87 : vector<1x32xf32> to vector<16x32xf32>
    %89 = arith.addf %86, %88 : vector<16x32xf32>
    %90 = arith.addf %75, %89 : vector<16x32xf32>
    %c0_51 = arith.constant 0 : index
    %c0_52 = arith.constant 0 : index
    %91 = vector.load %arg18[%c0_51, %c0_52] : memref<1x32xf32, #tpu.memory_space<vmem>>, vector<1x32xf32>
    %c0_53 = arith.constant 0 : index
    %c0_54 = arith.constant 0 : index
    %92 = vector.load %arg19[%c0_53, %c0_54] : memref<1x32xf32, #tpu.memory_space<vmem>>, vector<1x32xf32>
    %cst_55 = arith.constant dense<0.000000e+00> : vector<16xf32>
    %93 = vector.multi_reduction <add>, %90, %cst_55 [1] : vector<16x32xf32> to vector<16xf32>
    %94 = vector.shape_cast %93 : vector<16xf32> to vector<16x1xf32>
    %cst_56 = arith.constant 3.200000e+01 : f32
    %95 = vector.broadcast %cst_56 : f32 to vector<16x1xf32>
    %96 = arith.divf %94, %95 : vector<16x1xf32>
    %97 = vector.broadcast %96 : vector<16x1xf32> to vector<16x32xf32>
    %98 = arith.subf %90, %97 : vector<16x32xf32>
    %99 = arith.mulf %98, %98 : vector<16x32xf32>
    %cst_57 = arith.constant dense<0.000000e+00> : vector<16xf32>
    %100 = vector.multi_reduction <add>, %99, %cst_57 [1] : vector<16x32xf32> to vector<16xf32>
    %101 = vector.shape_cast %100 : vector<16xf32> to vector<16x1xf32>
    %cst_58 = arith.constant 3.200000e+01 : f32
    %102 = vector.broadcast %cst_58 : f32 to vector<16x1xf32>
    %103 = arith.divf %101, %102 : vector<16x1xf32>
    %104 = vector.broadcast %96 : vector<16x1xf32> to vector<16x32xf32>
    %105 = arith.subf %90, %104 : vector<16x32xf32>
    %cst_59 = arith.constant 9.99999974E-6 : f32
    %106 = vector.broadcast %cst_59 : f32 to vector<16x1xf32>
    %107 = arith.addf %103, %106 : vector<16x1xf32>
    %108 = math.rsqrt %107 : vector<16x1xf32>
    %109 = vector.broadcast %108 : vector<16x1xf32> to vector<16x32xf32>
    %110 = arith.mulf %105, %109 : vector<16x32xf32>
    %111 = vector.broadcast %91 : vector<1x32xf32> to vector<16x32xf32>
    %112 = arith.mulf %110, %111 : vector<16x32xf32>
    %113 = vector.broadcast %92 : vector<1x32xf32> to vector<16x32xf32>
    %114 = arith.addf %112, %113 : vector<16x32xf32>
    %115 = arith.truncf %114 : vector<16x32xf32> to vector<16x32xbf16>
    %c0_60 = arith.constant 0 : index
    %c0_61 = arith.constant 0 : index
    %116 = vector.load %arg20[%c0_60, %c0_61] : memref<32x32xbf16, #tpu.memory_space<vmem>>, vector<32x32xbf16>
    %cst_62 = arith.constant dense<0.000000e+00> : vector<32x16xf32>
    %117 = tpu.matmul %116, %115, %cst_62 {dimension_numbers = #tpu.dot_dimension_numbers<[1], [1], [0], [0], [0, 0, 1, 0], [], []>} : vector<32x32xbf16>, vector<16x32xbf16>, vector<32x16xf32> -> vector<32x16xf32>
    %c0_63 = arith.constant 0 : index
    %c0_64 = arith.constant 0 : index
    %118 = vector.load %arg21[%c0_63, %c0_64] : memref<32x1xf32, #tpu.memory_space<vmem>>, vector<32x1xf32>
    %119 = vector.broadcast %118 : vector<32x1xf32> to vector<32x16xf32>
    %120 = arith.addf %117, %119 : vector<32x16xf32>
    %c0_65 = arith.constant 0 : index
    %c0_66 = arith.constant 0 : index
    %121 = vector.load %arg22[%c0_65, %c0_66] : memref<32x32xbf16, #tpu.memory_space<vmem>>, vector<32x32xbf16>
    %cst_67 = arith.constant dense<0.000000e+00> : vector<32x16xf32>
    %122 = tpu.matmul %121, %115, %cst_67 {dimension_numbers = #tpu.dot_dimension_numbers<[1], [1], [0], [0], [0, 0, 1, 0], [], []>} : vector<32x32xbf16>, vector<16x32xbf16>, vector<32x16xf32> -> vector<32x16xf32>
    %c0_68 = arith.constant 0 : index
    %c0_69 = arith.constant 0 : index
    %123 = vector.load %arg23[%c0_68, %c0_69] : memref<32x1xf32, #tpu.memory_space<vmem>>, vector<32x1xf32>
    %124 = vector.broadcast %123 : vector<32x1xf32> to vector<32x16xf32>
    %125 = arith.addf %122, %124 : vector<32x16xf32>
    %c0_70 = arith.constant 0 : index
    %c0_71 = arith.constant 0 : index
    %126 = vector.load %arg24[%c0_70, %c0_71] : memref<32x32xbf16, #tpu.memory_space<vmem>>, vector<32x32xbf16>
    %cst_72 = arith.constant dense<0.000000e+00> : vector<32x16xf32>
    %127 = tpu.matmul %126, %115, %cst_72 {dimension_numbers = #tpu.dot_dimension_numbers<[1], [1], [0], [0], [0, 0, 1, 0], [], []>} : vector<32x32xbf16>, vector<16x32xbf16>, vector<32x16xf32> -> vector<32x16xf32>
    %c0_73 = arith.constant 0 : index
    %c0_74 = arith.constant 0 : index
    %128 = vector.load %arg25[%c0_73, %c0_74] : memref<32x1xf32, #tpu.memory_space<vmem>>, vector<32x1xf32>
    %129 = vector.broadcast %128 : vector<32x1xf32> to vector<32x16xf32>
    %130 = arith.addf %127, %129 : vector<32x16xf32>
    %131 = vector.shape_cast %120 : vector<32x16xf32> to vector<4x8x16xf32>
    %132 = tpu.transpose %131, [0, 2, 1] : vector<4x8x16xf32> -> vector<4x16x8xf32>
    %133 = vector.shape_cast %125 : vector<32x16xf32> to vector<4x8x16xf32>
    %134 = vector.shape_cast %130 : vector<32x16xf32> to vector<4x8x16xf32>
    %135 = arith.truncf %132 : vector<4x16x8xf32> to vector<4x16x8xbf16>
    %136 = arith.truncf %133 : vector<4x8x16xf32> to vector<4x8x16xbf16>
    "tpu.trace_start"() <{level = 10 : i32, message = "hqd,hdk->hqk"}> : () -> ()
    %cst_75 = arith.constant dense<0.000000e+00> : vector<4x16x16xf32>
    %137 = tpu.matmul %135, %136, %cst_75 {dimension_numbers = #tpu.dot_dimension_numbers<[2], [1], [1], [2], [0, 0, 0, 1, 1, 2], [0], [0]>} : vector<4x16x8xbf16>, vector<4x8x16xbf16>, vector<4x16x16xf32> -> vector<4x16x16xf32>
    "tpu.trace_stop"() : () -> ()
    %138 = vector.broadcast %5 : vector<1x16x16xf32> to vector<4x16x16xf32>
    %139 = arith.addf %137, %138 : vector<4x16x16xf32>
    %cst_76 = arith.constant dense<0xFF800000> : vector<4x16xf32>
    %140 = vector.multi_reduction <maximumf>, %139, %cst_76 [2] : vector<4x16x16xf32> to vector<4x16xf32>
    %141 = vector.shape_cast %140 : vector<4x16xf32> to vector<4x16x1xf32>
    %142 = vector.broadcast %141 : vector<4x16x1xf32> to vector<4x16x16xf32>
    %143 = arith.subf %139, %142 : vector<4x16x16xf32>
    %144 = math.exp %143 : vector<4x16x16xf32>
    %cst_77 = arith.constant dense<0.000000e+00> : vector<4x16xf32>
    %145 = vector.multi_reduction <add>, %144, %cst_77 [2] : vector<4x16x16xf32> to vector<4x16xf32>
    %146 = vector.shape_cast %145 : vector<4x16xf32> to vector<4x16x1xf32>
    %147 = tpu.reciprocal %146 {approx = true} : vector<4x16x1xf32> -> vector<4x16x1xf32>
    %148 = vector.broadcast %147 : vector<4x16x1xf32> to vector<4x16x16xf32>
    %149 = arith.mulf %144, %148 : vector<4x16x16xf32>
    %150 = arith.truncf %134 : vector<4x8x16xf32> to vector<4x8x16xbf16>
    %151 = arith.truncf %149 : vector<4x16x16xf32> to vector<4x16x16xbf16>
    "tpu.trace_start"() <{level = 10 : i32, message = "hdk,hqk->hdq"}> : () -> ()
    %cst_78 = arith.constant dense<0.000000e+00> : vector<4x8x16xf32>
    %152 = tpu.matmul %150, %151, %cst_78 {dimension_numbers = #tpu.dot_dimension_numbers<[2], [2], [1], [1], [0, 0, 0, 1, 1, 1], [0], [0]>} : vector<4x8x16xbf16>, vector<4x16x16xbf16>, vector<4x8x16xf32> -> vector<4x8x16xf32>
    "tpu.trace_stop"() : () -> ()
    %153 = vector.shape_cast %152 : vector<4x8x16xf32> to vector<32x16xf32>
    %154 = arith.truncf %153 : vector<32x16xf32> to vector<32x16xbf16>
    %c0_79 = arith.constant 0 : index
    %c0_80 = arith.constant 0 : index
    %155 = vector.load %arg26[%c0_79, %c0_80] : memref<32x32xbf16, #tpu.memory_space<vmem>>, vector<32x32xbf16>
    %cst_81 = arith.constant dense<0.000000e+00> : vector<16x32xf32>
    %156 = tpu.matmul %154, %155, %cst_81 {dimension_numbers = #tpu.dot_dimension_numbers<[0], [0], [1], [1], [0, 1, 1, 1], [], []>} : vector<32x16xbf16>, vector<32x32xbf16>, vector<16x32xf32> -> vector<16x32xf32>
    %c0_82 = arith.constant 0 : index
    %c0_83 = arith.constant 0 : index
    %157 = vector.load %arg27[%c0_82, %c0_83] : memref<1x32xf32, #tpu.memory_space<vmem>>, vector<1x32xf32>
    %158 = vector.broadcast %157 : vector<1x32xf32> to vector<16x32xf32>
    %159 = arith.addf %156, %158 : vector<16x32xf32>
    %160 = arith.addf %114, %159 : vector<16x32xf32>
    %c0_84 = arith.constant 0 : index
    %c0_85 = arith.constant 0 : index
    %161 = vector.load %arg28[%c0_84, %c0_85] : memref<1x32xf32, #tpu.memory_space<vmem>>, vector<1x32xf32>
    %c0_86 = arith.constant 0 : index
    %c0_87 = arith.constant 0 : index
    %162 = vector.load %arg29[%c0_86, %c0_87] : memref<1x32xf32, #tpu.memory_space<vmem>>, vector<1x32xf32>
    %cst_88 = arith.constant dense<0.000000e+00> : vector<16xf32>
    %163 = vector.multi_reduction <add>, %160, %cst_88 [1] : vector<16x32xf32> to vector<16xf32>
    %164 = vector.shape_cast %163 : vector<16xf32> to vector<16x1xf32>
    %cst_89 = arith.constant 3.200000e+01 : f32
    %165 = vector.broadcast %cst_89 : f32 to vector<16x1xf32>
    %166 = arith.divf %164, %165 : vector<16x1xf32>
    %167 = vector.broadcast %166 : vector<16x1xf32> to vector<16x32xf32>
    %168 = arith.subf %160, %167 : vector<16x32xf32>
    %169 = arith.mulf %168, %168 : vector<16x32xf32>
    %cst_90 = arith.constant dense<0.000000e+00> : vector<16xf32>
    %170 = vector.multi_reduction <add>, %169, %cst_90 [1] : vector<16x32xf32> to vector<16xf32>
    %171 = vector.shape_cast %170 : vector<16xf32> to vector<16x1xf32>
    %cst_91 = arith.constant 3.200000e+01 : f32
    %172 = vector.broadcast %cst_91 : f32 to vector<16x1xf32>
    %173 = arith.divf %171, %172 : vector<16x1xf32>
    %174 = vector.broadcast %166 : vector<16x1xf32> to vector<16x32xf32>
    %175 = arith.subf %160, %174 : vector<16x32xf32>
    %cst_92 = arith.constant 9.99999974E-6 : f32
    %176 = vector.broadcast %cst_92 : f32 to vector<16x1xf32>
    %177 = arith.addf %173, %176 : vector<16x1xf32>
    %178 = math.rsqrt %177 : vector<16x1xf32>
    %179 = vector.broadcast %178 : vector<16x1xf32> to vector<16x32xf32>
    %180 = arith.mulf %175, %179 : vector<16x32xf32>
    %181 = vector.broadcast %161 : vector<1x32xf32> to vector<16x32xf32>
    %182 = arith.mulf %180, %181 : vector<16x32xf32>
    %183 = vector.broadcast %162 : vector<1x32xf32> to vector<16x32xf32>
    %184 = arith.addf %182, %183 : vector<16x32xf32>
    %185 = arith.truncf %184 : vector<16x32xf32> to vector<16x32xbf16>
    %c0_93 = arith.constant 0 : index
    %c0_94 = arith.constant 0 : index
    %186 = vector.load %arg30[%c0_93, %c0_94] : memref<32x2048xbf16, #tpu.memory_space<vmem>>, vector<32x2048xbf16>
    %cst_95 = arith.constant dense<0.000000e+00> : vector<16x2048xf32>
    %187 = tpu.matmul %185, %186, %cst_95 {dimension_numbers = #tpu.dot_dimension_numbers<[1], [0], [0], [1], [0, 0, 1, 1], [], []>} : vector<16x32xbf16>, vector<32x2048xbf16>, vector<16x2048xf32> -> vector<16x2048xf32>
    %c0_96 = arith.constant 0 : index
    %c0_97 = arith.constant 0 : index
    %188 = vector.load %arg31[%c0_96, %c0_97] : memref<1x2048xf32, #tpu.memory_space<vmem>>, vector<1x2048xf32>
    %189 = vector.broadcast %188 : vector<1x2048xf32> to vector<16x2048xf32>
    %190 = arith.addf %187, %189 : vector<16x2048xf32>
    %cst_98 = arith.constant 0.000000e+00 : f32
    %191 = vector.broadcast %cst_98 : f32 to vector<16x2048xf32>
    %192 = arith.maximumf %190, %191 : vector<16x2048xf32>
    %193 = arith.truncf %192 : vector<16x2048xf32> to vector<16x2048xbf16>
    %c0_99 = arith.constant 0 : index
    %c0_100 = arith.constant 0 : index
    %194 = vector.load %arg32[%c0_99, %c0_100] : memref<2048x32xbf16, #tpu.memory_space<vmem>>, vector<2048x32xbf16>
    %cst_101 = arith.constant dense<0.000000e+00> : vector<16x32xf32>
    %195 = tpu.matmul %193, %194, %cst_101 {dimension_numbers = #tpu.dot_dimension_numbers<[1], [0], [0], [1], [0, 0, 1, 1], [], []>} : vector<16x2048xbf16>, vector<2048x32xbf16>, vector<16x32xf32> -> vector<16x32xf32>
    %c0_102 = arith.constant 0 : index
    %c0_103 = arith.constant 0 : index
    %196 = vector.load %arg33[%c0_102, %c0_103] : memref<1x32xf32, #tpu.memory_space<vmem>>, vector<1x32xf32>
    %197 = vector.broadcast %196 : vector<1x32xf32> to vector<16x32xf32>
    %198 = arith.addf %195, %197 : vector<16x32xf32>
    %199 = arith.addf %184, %198 : vector<16x32xf32>
    %c0_104 = arith.constant 0 : index
    %c0_105 = arith.constant 0 : index
    %200 = vector.load %arg34[%c0_104, %c0_105] : memref<1x32xf32, #tpu.memory_space<vmem>>, vector<1x32xf32>
    %c0_106 = arith.constant 0 : index
    %c0_107 = arith.constant 0 : index
    %201 = vector.load %arg35[%c0_106, %c0_107] : memref<1x32xf32, #tpu.memory_space<vmem>>, vector<1x32xf32>
    %cst_108 = arith.constant dense<0.000000e+00> : vector<16xf32>
    %202 = vector.multi_reduction <add>, %199, %cst_108 [1] : vector<16x32xf32> to vector<16xf32>
    %203 = vector.shape_cast %202 : vector<16xf32> to vector<16x1xf32>
    %cst_109 = arith.constant 3.200000e+01 : f32
    %204 = vector.broadcast %cst_109 : f32 to vector<16x1xf32>
    %205 = arith.divf %203, %204 : vector<16x1xf32>
    %206 = vector.broadcast %205 : vector<16x1xf32> to vector<16x32xf32>
    %207 = arith.subf %199, %206 : vector<16x32xf32>
    %208 = arith.mulf %207, %207 : vector<16x32xf32>
    %cst_110 = arith.constant dense<0.000000e+00> : vector<16xf32>
    %209 = vector.multi_reduction <add>, %208, %cst_110 [1] : vector<16x32xf32> to vector<16xf32>
    %210 = vector.shape_cast %209 : vector<16xf32> to vector<16x1xf32>
    %cst_111 = arith.constant 3.200000e+01 : f32
    %211 = vector.broadcast %cst_111 : f32 to vector<16x1xf32>
    %212 = arith.divf %210, %211 : vector<16x1xf32>
    %213 = vector.broadcast %205 : vector<16x1xf32> to vector<16x32xf32>
    %214 = arith.subf %199, %213 : vector<16x32xf32>
    %cst_112 = arith.constant 9.99999974E-6 : f32
    %215 = vector.broadcast %cst_112 : f32 to vector<16x1xf32>
    %216 = arith.addf %212, %215 : vector<16x1xf32>
    %217 = math.rsqrt %216 : vector<16x1xf32>
    %218 = vector.broadcast %217 : vector<16x1xf32> to vector<16x32xf32>
    %219 = arith.mulf %214, %218 : vector<16x32xf32>
    %220 = vector.broadcast %200 : vector<1x32xf32> to vector<16x32xf32>
    %221 = arith.mulf %219, %220 : vector<16x32xf32>
    %222 = vector.broadcast %201 : vector<1x32xf32> to vector<16x32xf32>
    %223 = arith.addf %221, %222 : vector<16x32xf32>
    %224 = arith.truncf %223 : vector<16x32xf32> to vector<16x32xbf16>
    %c0_113 = arith.constant 0 : index
    %c0_114 = arith.constant 0 : index
    %225 = vector.load %arg36[%c0_113, %c0_114] : memref<32x16xbf16, #tpu.memory_space<vmem>>, vector<32x16xbf16>
    %cst_115 = arith.constant dense<0.000000e+00> : vector<16x16xf32>
    %226 = tpu.matmul %224, %225, %cst_115 {dimension_numbers = #tpu.dot_dimension_numbers<[1], [0], [0], [1], [0, 0, 1, 1], [], []>} : vector<16x32xbf16>, vector<32x16xbf16>, vector<16x16xf32> -> vector<16x16xf32>
    %c0_116 = arith.constant 0 : index
    %c0_117 = arith.constant 0 : index
    %227 = vector.load %arg37[%c0_116, %c0_117] : memref<1x16xf32, #tpu.memory_space<vmem>>, vector<1x16xf32>
    %228 = vector.broadcast %227 : vector<1x16xf32> to vector<16x16xf32>
    %229 = arith.addf %226, %228 : vector<16x16xf32>
    %230 = vector.shape_cast %229 : vector<16x16xf32> to vector<2x8x16xf32>
    %c0_118 = arith.constant 0 : index
    %c0_119 = arith.constant 0 : index
    %c0_120 = arith.constant 0 : index
    %231 = vector.load %arg38[%c0_118, %c0_119, %c0_120] : memref<2x8x16xf32, #tpu.memory_space<vmem>>, vector<2x8x16xf32>
    tpu.vector_store %arg38[%c0_118, %c0_119, %c0_120], %230 {strides = array<i32>} : memref<2x8x16xf32, #tpu.memory_space<vmem>>, vector<2x8x16xf32>,
    return
  }
  func.func @transform_0(%arg0: i32) -> (i32, i32, i32) {
    %c0_i32 = arith.constant 0 : i32
    %c0_i32_0 = arith.constant 0 : i32
    %c0_i32_1 = arith.constant 0 : i32
    return %arg0, %c0_i32, %c0_i32_0 : i32, i32, i32
  }
  func.func @transform_1(%arg0: i32) -> (i32, i32, i32) {
    %c0_i32 = arith.constant 0 : i32
    %c0_i32_0 = arith.constant 0 : i32
    %c0_i32_1 = arith.constant 0 : i32
    return %arg0, %c0_i32, %c0_i32_0 : i32, i32, i32
  }
  func.func @transform_2(%arg0: i32) -> (i32, i32, i32) {
    %c0_i32 = arith.constant 0 : i32
    %c0_i32_0 = arith.constant 0 : i32
    %c0_i32_1 = arith.constant 0 : i32
    %c0_i32_2 = arith.constant 0 : i32
    return %c0_i32, %c0_i32_0, %c0_i32_1 : i32, i32, i32
  }
  func.func @transform_3(%arg0: i32) -> (i32, i32) {
    %c0_i32 = arith.constant 0 : i32
    %c0_i32_0 = arith.constant 0 : i32
    %c0_i32_1 = arith.constant 0 : i32
    return %c0_i32, %c0_i32_0 : i32, i32
  }
  func.func @transform_4(%arg0: i32) -> (i32, i32) {
    %c0_i32 = arith.constant 0 : i32
    %c0_i32_0 = arith.constant 0 : i32
    %c0_i32_1 = arith.constant 0 : i32
    return %c0_i32, %c0_i32_0 : i32, i32
  }
  func.func @transform_5(%arg0: i32) -> (i32, i32) {
    %c0_i32 = arith.constant 0 : i32
    %c0_i32_0 = arith.constant 0 : i32
    %c0_i32_1 = arith.constant 0 : i32
    return %c0_i32, %c0_i32_0 : i32, i32
  }
  func.func @transform_6(%arg0: i32) -> (i32, i32) {
    %c0_i32 = arith.constant 0 : i32
    %c0_i32_0 = arith.constant 0 : i32
    %c0_i32_1 = arith.constant 0 : i32
    return %c0_i32, %c0_i32_0 : i32, i32
  }
  func.func @transform_7(%arg0: i32) -> (i32, i32) {
    %c0_i32 = arith.constant 0 : i32
    %c0_i32_0 = arith.constant 0 : i32
    %c0_i32_1 = arith.constant 0 : i32
    return %c0_i32, %c0_i32_0 : i32, i32
  }
  func.func @transform_8(%arg0: i32) -> (i32, i32) {
    %c0_i32 = arith.constant 0 : i32
    %c0_i32_0 = arith.constant 0 : i32
    %c0_i32_1 = arith.constant 0 : i32
    return %c0_i32, %c0_i32_0 : i32, i32
  }
  func.func @transform_9(%arg0: i32) -> (i32, i32) {
    %c0_i32 = arith.constant 0 : i32
    %c0_i32_0 = arith.constant 0 : i32
    %c0_i32_1 = arith.constant 0 : i32
    return %c0_i32, %c0_i32_0 : i32, i32
  }
  func.func @transform_10(%arg0: i32) -> (i32, i32) {
    %c0_i32 = arith.constant 0 : i32
    %c0_i32_0 = arith.constant 0 : i32
    %c0_i32_1 = arith.constant 0 : i32
    return %c0_i32, %c0_i32_0 : i32, i32
  }
  func.func @transform_11(%arg0: i32) -> (i32, i32) {
    %c0_i32 = arith.constant 0 : i32
    %c0_i32_0 = arith.constant 0 : i32
    %c0_i32_1 = arith.constant 0 : i32
    return %c0_i32, %c0_i32_0 : i32, i32
  }
  func.func @transform_12(%arg0: i32) -> (i32, i32) {
    %c0_i32 = arith.constant 0 : i32
    %c0_i32_0 = arith.constant 0 : i32
    %c0_i32_1 = arith.constant 0 : i32
    return %c0_i32, %c0_i32_0 : i32, i32
  }
  func.func @transform_13(%arg0: i32) -> (i32, i32) {
    %c0_i32 = arith.constant 0 : i32
    %c0_i32_0 = arith.constant 0 : i32
    %c0_i32_1 = arith.constant 0 : i32
    return %c0_i32, %c0_i32_0 : i32, i32
  }
  func.func @transform_14(%arg0: i32) -> (i32, i32) {
    %c0_i32 = arith.constant 0 : i32
    %c0_i32_0 = arith.constant 0 : i32
    %c0_i32_1 = arith.constant 0 : i32
    return %c0_i32, %c0_i32_0 : i32, i32
  }
  func.func @transform_15(%arg0: i32) -> (i32, i32) {
    %c0_i32 = arith.constant 0 : i32
    %c0_i32_0 = arith.constant 0 : i32
    %c0_i32_1 = arith.constant 0 : i32
    return %c0_i32, %c0_i32_0 : i32, i32
  }
  func.func @transform_16(%arg0: i32) -> (i32, i32) {
    %c0_i32 = arith.constant 0 : i32
    %c0_i32_0 = arith.constant 0 : i32
    %c0_i32_1 = arith.constant 0 : i32
    return %c0_i32, %c0_i32_0 : i32, i32
  }
  func.func @transform_17(%arg0: i32) -> (i32, i32) {
    %c0_i32 = arith.constant 0 : i32
    %c0_i32_0 = arith.constant 0 : i32
    %c0_i32_1 = arith.constant 0 : i32
    return %c0_i32, %c0_i32_0 : i32, i32
  }
  func.func @transform_18(%arg0: i32) -> (i32, i32) {
    %c0_i32 = arith.constant 0 : i32
    %c0_i32_0 = arith.constant 0 : i32
    %c0_i32_1 = arith.constant 0 : i32
    return %c0_i32, %c0_i32_0 : i32, i32
  }
  func.func @transform_19(%arg0: i32) -> (i32, i32) {
    %c0_i32 = arith.constant 0 : i32
    %c0_i32_0 = arith.constant 0 : i32
    %c0_i32_1 = arith.constant 0 : i32
    return %c0_i32, %c0_i32_0 : i32, i32
  }
  func.func @transform_20(%arg0: i32) -> (i32, i32) {
    %c0_i32 = arith.constant 0 : i32
    %c0_i32_0 = arith.constant 0 : i32
    %c0_i32_1 = arith.constant 0 : i32
    return %c0_i32, %c0_i32_0 : i32, i32
  }
  func.func @transform_21(%arg0: i32) -> (i32, i32) {
    %c0_i32 = arith.constant 0 : i32
    %c0_i32_0 = arith.constant 0 : i32
    %c0_i32_1 = arith.constant 0 : i32
    return %c0_i32, %c0_i32_0 : i32, i32
  }
  func.func @transform_22(%arg0: i32) -> (i32, i32) {
    %c0_i32 = arith.constant 0 : i32
    %c0_i32_0 = arith.constant 0 : i32
    %c0_i32_1 = arith.constant 0 : i32
    return %c0_i32, %c0_i32_0 : i32, i32
  }
  func.func @transform_23(%arg0: i32) -> (i32, i32) {
    %c0_i32 = arith.constant 0 : i32
    %c0_i32_0 = arith.constant 0 : i32
    %c0_i32_1 = arith.constant 0 : i32
    return %c0_i32, %c0_i32_0 : i32, i32
  }
  func.func @transform_24(%arg0: i32) -> (i32, i32) {
    %c0_i32 = arith.constant 0 : i32
    %c0_i32_0 = arith.constant 0 : i32
    %c0_i32_1 = arith.constant 0 : i32
    return %c0_i32, %c0_i32_0 : i32, i32
  }
  func.func @transform_25(%arg0: i32) -> (i32, i32) {
    %c0_i32 = arith.constant 0 : i32
    %c0_i32_0 = arith.constant 0 : i32
    %c0_i32_1 = arith.constant 0 : i32
    return %c0_i32, %c0_i32_0 : i32, i32
  }
  func.func @transform_26(%arg0: i32) -> (i32, i32) {
    %c0_i32 = arith.constant 0 : i32
    %c0_i32_0 = arith.constant 0 : i32
    %c0_i32_1 = arith.constant 0 : i32
    return %c0_i32, %c0_i32_0 : i32, i32
  }
  func.func @transform_27(%arg0: i32) -> (i32, i32) {
    %c0_i32 = arith.constant 0 : i32
    %c0_i32_0 = arith.constant 0 : i32
    %c0_i32_1 = arith.constant 0 : i32
    return %c0_i32, %c0_i32_0 : i32, i32
  }
  func.func @transform_28(%arg0: i32) -> (i32, i32) {
    %c0_i32 = arith.constant 0 : i32
    %c0_i32_0 = arith.constant 0 : i32
    %c0_i32_1 = arith.constant 0 : i32
    return %c0_i32, %c0_i32_0 : i32, i32
  }
  func.func @transform_29(%arg0: i32) -> (i32, i32) {
    %c0_i32 = arith.constant 0 : i32
    %c0_i32_0 = arith.constant 0 : i32
    %c0_i32_1 = arith.constant 0 : i32
    return %c0_i32, %c0_i32_0 : i32, i32
  }
  func.func @transform_30(%arg0: i32) -> (i32, i32) {
    %c0_i32 = arith.constant 0 : i32
    %c0_i32_0 = arith.constant 0 : i32
    %c0_i32_1 = arith.constant 0 : i32
    return %c0_i32, %c0_i32_0 : i32, i32
  }
  func.func @transform_31(%arg0: i32) -> (i32, i32) {
    %c0_i32 = arith.constant 0 : i32
    %c0_i32_0 = arith.constant 0 : i32
    %c0_i32_1 = arith.constant 0 : i32
    return %c0_i32, %c0_i32_0 : i32, i32
  }
  func.func @transform_32(%arg0: i32) -> (i32, i32) {
    %c0_i32 = arith.constant 0 : i32
    %c0_i32_0 = arith.constant 0 : i32
    %c0_i32_1 = arith.constant 0 : i32
    return %c0_i32, %c0_i32_0 : i32, i32
  }
  func.func @transform_33(%arg0: i32) -> (i32, i32) {
    %c0_i32 = arith.constant 0 : i32
    %c0_i32_0 = arith.constant 0 : i32
    %c0_i32_1 = arith.constant 0 : i32
    return %c0_i32, %c0_i32_0 : i32, i32
  }
  func.func @transform_34(%arg0: i32) -> (i32, i32) {
    %c0_i32 = arith.constant 0 : i32
    %c0_i32_0 = arith.constant 0 : i32
    %c0_i32_1 = arith.constant 0 : i32
    return %c0_i32, %c0_i32_0 : i32, i32
  }
  func.func @transform_35(%arg0: i32) -> (i32, i32) {
    %c0_i32 = arith.constant 0 : i32
    %c0_i32_0 = arith.constant 0 : i32
    %c0_i32_1 = arith.constant 0 : i32
    return %c0_i32, %c0_i32_0 : i32, i32
  }
  func.func @transform_36(%arg0: i32) -> (i32, i32) {
    %c0_i32 = arith.constant 0 : i32
    %c0_i32_0 = arith.constant 0 : i32
    %c0_i32_1 = arith.constant 0 : i32
    return %c0_i32, %c0_i32_0 : i32, i32
  }
  func.func @transform_37(%arg0: i32) -> (i32, i32, i32) {
    %c0_i32 = arith.constant 0 : i32
    %c0_i32_0 = arith.constant 0 : i32
    %c0_i32_1 = arith.constant 0 : i32
    return %arg0, %c0_i32, %c0_i32_0 : i32, i32, i32
  }
}

</mosaic_0001>

<bundles_post_ra>
// kernel: saliency_forward.1
= control target key start
LH: loop header
LB: loop body
LE: loop exit
PB: predicated region body
PF: predicated region fallthrough
CT: control target
= control target key end

     0   :  { %s9304_s6 = smov 1   ;;  %s9305_s10 = smov 2   ;;  %s10217_s0 = inlined_call_operand.smem [shape: u32[38], index: -1, kind: input, shape index: {}] }
   0x1   :  { %s9395_s5 = sld [smem:[%s10217_s0]]   ;;  %s9306_s14 = smov 3  }
   0x2   :  { %s9400_s9 = sld [smem:[%s10217_s0 + %s9304_s6]]   ;;  %s9307_s18 = smov 4  }
   0x3   :  { %s9405_s13 = sld [smem:[%s10217_s0 + %s9305_s10]]   ;;  %s9308_s22 = smov 5  }
   0x4   :  { %s9410_s17 = sld [smem:[%s10217_s0 + %s9306_s14]]   ;;  %s9309_s26 = smov 6  }
   0x5   :  { %s9415_s21 = sld [smem:[%s10217_s0 + %s9307_s18]]   ;;  %s9310_s30 = smov 7  }
   0x6   :  { %s9420_s25 = sld [smem:[%s10217_s0 + %s9308_s22]]   ;;  %s9311_s4 = smov 8  }
   0x7   :  { %10238 = sst [smem:[#allocation80_spill]] %s9395_s5  ;;  %s9312_s10 = smov 9  }
   0x8   :  { %s9425_s29 = sld [smem:[%s10217_s0 + %s9309_s26]]   ;;  %s9313_s15 = smov 10  }
   0x9   :  { %10239 = sst [smem:[#allocation81_spill]] %s9405_s13  ;;  %s9314_s20 = smov 11  }
   0xa   :  { %s9430_s3 = sld [smem:[%s10217_s0 + %s9310_s30]]   ;;  %s9315_s26 = smov 12  }
   0xb   :  { %10240 = sst [smem:[#allocation82_spill]] %s9415_s21  ;;  %s9316_s1 = smov 13  }
   0xc   :  { %s9435_s8 = sld [smem:[%s10217_s0 + %s9311_s4]]   ;;  %s9317_s7 = smov 14  }
   0xd   :  { %s9440_s14 = sld [smem:[%s10217_s0 + %s9312_s10]]   ;;  %s9319_s22 = smov 16  }
   0xe   :  { %10241 = sst [smem:[#allocation83_spill]] %s9425_s29  ;;  %s9320_s28 = smov 17  }
   0xf   :  { %s9445_s19 = sld [smem:[%s10217_s0 + %s9313_s15]]   ;;  %s9318_s15 = smov 15  }
  0x10   :  { %s9450_s24 = sld [smem:[%s10217_s0 + %s9314_s20]]  }
  0x11   :  { %s9455_s30 = sld [smem:[%s10217_s0 + %s9315_s26]]  }
  0x12   :  { %10242 = sst [smem:[#allocation84_spill]] %s9435_s8 }
  0x13   :  { %s9460_s6 = sld [smem:[%s10217_s0 + %s9316_s1]]  }
  0x14   :  { %s9465_s12 = sld [smem:[%s10217_s0 + %s9317_s7]]   ;;  %s9321_s7 = smov 18  }
  0x15   :  { %10243 = sst [smem:[#allocation85_spill]] %s9445_s19 }
  0x16   :  { %s9470_s20 = sld [smem:[%s10217_s0 + %s9318_s15]]   ;;  %s9322_s15 = smov 19  }
  0x17   :  { %10244 = sst [smem:[#allocation86_spill]] %s9455_s30 }
  0x18   :  { %s9475_s27 = sld [smem:[%s10217_s0 + %s9319_s22]]   ;;  %s9323_s22 = smov 20  }
  0x19   :  { %s9480_s4 = sld [smem:[%s10217_s0 + %s9320_s28]]   ;;  %s9324_s28 = smov 21  }
  0x1a   :  { %10245 = sst [smem:[#allocation87_spill]] %s9465_s12 }
  0x1b   :  { %s9485_s12 = sld [smem:[%s10217_s0 + %s9321_s7]]   ;;  %s9325_s7 = smov 22  }
  0x1c   :  { %s9490_s30 = sld [smem:[%s10217_s0 + %s9322_s15]]   ;;  %s9326_s15 = smov 23  }
  0x1d   :  { %s9500_s19 = sld [smem:[%s10217_s0 + %s9324_s28]]   ;;  %s9328_s28 = smov 25  }
  0x1e   :  { %10246 = sst [smem:[#allocation88_spill]] %s9475_s27 }
  0x1f   :  { %s9495_s27 = sld [smem:[%s10217_s0 + %s9323_s22]]   ;;  %s9327_s22 = smov 24  }
  0x20   :  { %s9510_s8 = sld [smem:[%s10217_s0 + %s9326_s15]]   ;;  %s9330_s15 = smov 27  }
  0x21   :  { %10247 = sst [smem:[#allocation89_spill]] %s9485_s12 }
  0x22   :  { %s9505_s12 = sld [smem:[%s10217_s0 + %s9325_s7]]   ;;  %s9329_s7 = smov 26  }
  0x23   :  { %s9520_s29 = sld [smem:[%s10217_s0 + %s9328_s28]]   ;;  %s9332_s28 = smov 29  }
  0x24   :  { %s9530_s21 = sld [smem:[%s10217_s0 + %s9330_s15]]   ;;  %s9334_s15 = smov 31  }
  0x25   :  { %10248 = sst [smem:[#allocation90_spill]] %s9495_s27 }
  0x26   :  { %s9515_s27 = sld [smem:[%s10217_s0 + %s9327_s22]]   ;;  %s9331_s22 = smov 28  }
  0x27   :  { %s9540_s13 = sld [smem:[%s10217_s0 + %s9332_s28]]   ;;  %s9336_s28 = smov 33  }
  0x28   :  { %10249 = sst [smem:[#allocation91_spill]] %s9505_s12 }
  0x29   :  { %s9525_s12 = sld [smem:[%s10217_s0 + %s9329_s7]]   ;;  %s9333_s7 = smov 30  }
  0x2a   :  { %s9550_s5 = sld [smem:[%s10217_s0 + %s9334_s15]]   ;;  %s9338_s15 = smov 35  }
  0x2c   :  { %10250 = sst [smem:[#allocation92_spill]] %s9515_s27 }
  0x2d   :  { %s9535_s27 = sld [smem:[%s10217_s0 + %s9331_s22]]   ;;  %s9335_s22 = smov 32  }
  0x2e   :  { %10253 = sst [smem:[#allocation95_spill]] %s9540_s13 }
  0x2f   :  { %10251 = sst [smem:[#allocation93_spill]] %s9525_s12 }
  0x30   :  { %s9545_s12 = sld [smem:[%s10217_s0 + %s9333_s7]]   ;;  %s9337_s7 = smov 34  }
  0x31   :  { %10255 = sst [smem:[#allocation97_spill]] %s9550_s5 }
  0x32   :  { %s9560_s13 = sld [smem:[%s10217_s0 + %s9336_s28]]   ;;  %s9340_s28 = smov 37  }
  0x33   :  { %10252 = sst [smem:[#allocation94_spill]] %s9535_s27 }
  0x34   :  { %s9555_s27 = sld [smem:[%s10217_s0 + %s9335_s22]]   ;;  %s9339_s22 = smov 36  }
  0x35   :  { %s9570_s5 = sld [smem:[%s10217_s0 + %s9338_s15]]  }
  0x36   :  { %10254 = sst [smem:[#allocation96_spill]] %s9545_s12 }
  0x37   :  { %s9565_s12 = sld [smem:[%s10217_s0 + %s9337_s7]]  }
  0x38   :  { %10257 = sst [smem:[#allocation99_spill]] %s9560_s13 }
  0x39   :  { %s9580_s13 = sld [smem:[%s10217_s0 + %s9340_s28]]  }
  0x3a   :  { %10256 = sst [smem:[#allocation98_spill]] %s9555_s27 }
  0x3b   :  { %s9575_s27 = sld [smem:[%s10217_s0 + %s9339_s22]]  }
  0x3c   :  { %80 = vsyncpa [#allocation3], 0 }
  0x3d   :  { %81 = vsyncpa [#allocation6], 0 }
  0x3e   :  { %82 = vsyncpa [#allocation9], 0 }
  0x3f   :  { %83 = vsyncpa [#allocation12], 0 }
  0x40   :  { %84 = vsyncpa [#allocation15], 0 }
  0x41   :  { %85 = vsyncpa [#allocation18], 0 }
  0x42   :  { %86 = vsyncpa [#allocation21], 0 }
  0x43   :  { %87 = vsyncpa [#allocation24], 0 }
  0x44   :  { %88 = vsyncpa [#allocation27], 0 }
  0x45   :  { %89 = vsyncpa [#allocation30], 0 }
  0x46   :  { %90 = vsyncpa [#allocation33], 0 }
  0x47   :  { %91 = vsyncpa [#allocation36], 0 }
  0x48   :  { %92 = vsyncpa [#allocation39], 0 }
  0x49   :  { %93 = vsyncpa [#allocation42], 0 }
  0x4a   :  { %94 = vsyncpa [#allocation45], 0 }
  0x4b   :  { %95 = vsyncpa [#allocation48], 0 }
  0x4c   :  { %96 = vsyncpa [#allocation51], 0 }
  0x4d   :  { %97 = vsyncpa [#allocation54], 0 }
  0x4e   :  { %98 = vsyncpa [#allocation57], 0 }
  0x4f   :  { %99 = vsyncpa [#allocation4], 0  ;;  %s9341_s0 = smov [#allocation5]   ;;  %s9342_s10 = smov [#allocation8]  }
  0x50   :  { %s117_s7 = sshll.u32 %s9341_s0, 4  ;;  %s139_s11 = sshll.u32 %s9342_s10, 4  ;;  %s118_s7 = int_to_ptr.vmem [resolvable:$true] %s117_s7  ;;  %s9582_s11 = int_to_ptr.vmem [resolvable:$true] %s139_s11 }
  0x51   :  { %s8428_s15 = scalar_lea.hbm %s9400_s9, 256 }
  0x52   :  { %p8429_p0 = scmp.ne.s32.totalorder %s9400_s9, %s8428_s15  ;;  %p8432_p1 = scmp.lt.u32.totalorder %s8428_s15, %s9400_s9 }
  0x54   :  { %p8434_p2 = pnand %p8432_p1, %p8429_p0 }
  0x56   :  { %8437 = shalt.err (!%p8434_p2)
}
  0x57   :  { %s8438_s16 = scalar_lea.vmem %s118_s7, 256  ;;  %p8443_p4 = scmp.lt.s32.totalorder %s118_s7, %s118_s7 }
  0x58   :  { %p8439_p3 = scmp.ne.s32.totalorder %s118_s7, %s8438_s16  ;;  %p8444_p5 = scmp.lt.s32.totalorder %s8438_s16, %s8438_s16 }
  0x5a   :  { %p8445_p6 = por %p8444_p5, %p8443_p4 }
  0x5c   :  { %p8446_p7 = pnand %p8445_p6, %p8439_p3 }
  0x5e   :  { %8449 = shalt.err (!%p8446_p7)
}
  0x5f   :  { %s9343_s18 = smov 128   ;;  %s9344_s22 = smov 8  }
  0x60   :  { %123 = dma.hbm_to_vmem [thread:$0]  %s9400_s9, 256, %s118_s7, [#allocation6], %s9343_s18, %s9343_s18, %s9344_s22  }
  0x61   :  { %s8450_s23 = scalar_lea.hbm %s9410_s17, 256 }
  0x62   :  { %p8451_p8 = scmp.ne.s32.totalorder %s9410_s17, %s8450_s23  ;;  %p8454_p9 = scmp.lt.u32.totalorder %s8450_s23, %s9410_s17 }
  0x64   :  { %p8456_p10 = pnand %p8454_p9, %p8451_p8 }
  0x66   :  { %8459 = shalt.err (!%p8456_p10)
}
  0x67   :  { %s8460_s26 = scalar_lea.vmem %s9582_s11, 256  ;;  %p8465_p12 = scmp.lt.s32.totalorder %s9582_s11, %s9582_s11 }
  0x68   :  { %p8461_p11 = scmp.ne.s32.totalorder %s9582_s11, %s8460_s26  ;;  %p8466_p13 = scmp.lt.s32.totalorder %s8460_s26, %s8460_s26 }
  0x6a   :  { %p8467_p0 = por %p8466_p13, %p8465_p12 }
  0x6c   :  { %p8468_p1 = pnand %p8467_p0, %p8461_p11 }
  0x6e   :  { %8471 = shalt.err (!%p8468_p1)
}
  0x6f   :  { %s9345_s28 = smov 64   ;;  %s9346_s9 = smov 4  }
  0x70   :  { %145 = dma.hbm_to_vmem [thread:$0]  %s9410_s17, 256, %s9582_s11, [#allocation9], %s9345_s28, %s9345_s28, %s9346_s9  }
  0x71   :  { %s9347_s1 = smov [#allocation11]   ;;  %s9348_s0 = smov [#allocation14]  }
  0x72   :  { %s163_s2 = sshll.u32 %s9347_s1, 4  ;;  %s187_s7 = sshll.u32 %s9348_s0, 4  ;;  %s164_s2 = int_to_ptr.vmem [resolvable:$true] %s163_s2  ;;  %s9603_s7 = int_to_ptr.vmem [resolvable:$true] %s187_s7 }
  0x73   :  { %s8472_s10 = scalar_lea.hbm %s9420_s25, 256 }
  0x74   :  { %p8473_p2 = scmp.ne.s32.totalorder %s9420_s25, %s8472_s10  ;;  %p8476_p3 = scmp.lt.u32.totalorder %s8472_s10, %s9420_s25 }
  0x76   :  { %p8478_p4 = pnand %p8476_p3, %p8473_p2 }
  0x78   :  { %8481 = shalt.err (!%p8478_p4)
}
  0x79   :  { %s8482_s15 = scalar_lea.vmem %s164_s2, 256  ;;  %p8487_p6 = scmp.lt.s32.totalorder %s164_s2, %s164_s2 }
  0x7a   :  { %p8483_p5 = scmp.ne.s32.totalorder %s164_s2, %s8482_s15  ;;  %p8488_p7 = scmp.lt.s32.totalorder %s8482_s15, %s8482_s15 }
  0x7c   :  { %p8489_p8 = por %p8488_p7, %p8487_p6 }
  0x7e   :  { %p8490_p9 = pnand %p8489_p8, %p8483_p5 }
  0x80   :  { %8493 = shalt.err (!%p8490_p9)
}
  0x81   :  { %169 = dma.hbm_to_vmem [thread:$0]  %s9420_s25, 256, %s164_s2, [#allocation12], %s9345_s28, %s9345_s28, %s9346_s9  }
  0x82   :  { %s8494_s17 = scalar_lea.hbm %s9430_s3, 256 }
  0x83   :  { %p8495_p10 = scmp.ne.s32.totalorder %s9430_s3, %s8494_s17  ;;  %p8498_p11 = scmp.lt.u32.totalorder %s8494_s17, %s9430_s3 }
  0x85   :  { %p8500_p12 = pnand %p8498_p11, %p8495_p10 }
  0x87   :  { %8503 = shalt.err (!%p8500_p12)
}
  0x88   :  { %s8504_s11 = scalar_lea.vmem %s9603_s7, 256  ;;  %p8509_p0 = scmp.lt.s32.totalorder %s9603_s7, %s9603_s7 }
  0x89   :  { %p8505_p13 = scmp.ne.s32.totalorder %s9603_s7, %s8504_s11  ;;  %p8510_p1 = scmp.lt.s32.totalorder %s8504_s11, %s8504_s11 }
  0x8b   :  { %p8511_p2 = por %p8510_p1, %p8509_p0 }
  0x8d   :  { %p8512_p3 = pnand %p8511_p2, %p8505_p13 }
  0x8f   :  { %8515 = shalt.err (!%p8512_p3)
}
  0x90   :  { %193 = dma.hbm_to_vmem [thread:$0]  %s9430_s3, 256, %s9603_s7, [#allocation15], %s9345_s28, %s9345_s28, %s9346_s9  }
  0x91   :  { %s9349_s25 = smov [#allocation17]   ;;  %s9350_s23 = smov [#allocation20]  }
  0x92   :  { %s211_s16 = sshll.u32 %s9349_s25, 4  ;;  %s234_s26 = sshll.u32 %s9350_s23, 4  ;;  %s212_s16 = int_to_ptr.vmem [resolvable:$true] %s211_s16  ;;  %s235_s26 = int_to_ptr.vmem [resolvable:$true] %s234_s26 }
  0x93   :  { %s8516_s1 = scalar_lea.hbm %s9440_s14, 256 }
  0x94   :  { %p8517_p4 = scmp.ne.s32.totalorder %s9440_s14, %s8516_s1  ;;  %p8520_p5 = scmp.lt.u32.totalorder %s8516_s1, %s9440_s14 }
  0x96   :  { %p8522_p6 = pnand %p8520_p5, %p8517_p4 }
  0x98   :  { %8525 = shalt.err (!%p8522_p6)
}
  0x99   :  { %s8526_s2 = scalar_lea.vmem %s212_s16, 256  ;;  %p8531_p8 = scmp.lt.s32.totalorder %s212_s16, %s212_s16 }
  0x9a   :  { %p8527_p7 = scmp.ne.s32.totalorder %s212_s16, %s8526_s2  ;;  %p8532_p9 = scmp.lt.s32.totalorder %s8526_s2, %s8526_s2 }
  0x9c   :  { %p8533_p10 = por %p8532_p9, %p8531_p8 }
  0x9e   :  { %p8534_p11 = pnand %p8533_p10, %p8527_p7 }
  0xa0   :  { %8537 = shalt.err (!%p8534_p11)
}
  0xa1   :  { %217 = dma.hbm_to_vmem [thread:$0]  %s9440_s14, 256, %s212_s16, [#allocation18], %s9345_s28, %s9345_s28, %s9346_s9  }
  0xa2   :  { %s8538_s3 = scalar_lea.hbm %s9450_s24, 16 }
  0xa3   :  { %p8539_p12 = scmp.ne.s32.totalorder %s9450_s24, %s8538_s3  ;;  %p8542_p13 = scmp.lt.u32.totalorder %s8538_s3, %s9450_s24 }
  0xa5   :  { %p8544_p0 = pnand %p8542_p13, %p8539_p12 }
  0xa7   :  { %8547 = shalt.err (!%p8544_p0)
}
  0xa8   :  { %s8548_s0 = scalar_lea.vmem %s235_s26, 16  ;;  %s8552_s7 = scalar_lea.vmem %s235_s26, 32 }
  0xa9   :  { %p8549_p1 = scmp.ne.s32.totalorder %s235_s26, %s8548_s0  ;;  %p8553_p2 = scmp.lt.s32.totalorder %s235_s26, %s235_s26 }
  0xaa   :  { %p8554_p3 = scmp.lt.s32.totalorder %s8552_s7, %s8548_s0 }
  0xac   :  { %p8555_p4 = por %p8554_p3, %p8553_p2 }
  0xae   :  { %p8556_p5 = pnand %p8555_p4, %p8549_p1 }
  0xb0   :  { %8559 = shalt.err (!%p8556_p5)
}
  0xb1   :  { %237 = dma.hbm_to_vmem [thread:$0]  %s9450_s24, 16, %s235_s26, [#allocation21]  }
  0xb2   :  { %s9351_s10 = smov [#allocation23]   ;;  %s9352_s15 = smov [#allocation26]  }
  0xb3   :  { %s253_s14 = sshll.u32 %s9351_s10, 4  ;;  %s275_s17 = sshll.u32 %s9352_s15, 4  ;;  %s254_s14 = int_to_ptr.vmem [resolvable:$true] %s253_s14  ;;  %s276_s17 = int_to_ptr.vmem [resolvable:$true] %s275_s17 }
  0xb4   :  { %s8560_s11 = scalar_lea.hbm %s9460_s6, 4096 }
  0xb5   :  { %p8561_p6 = scmp.ne.s32.totalorder %s9460_s6, %s8560_s11  ;;  %p8564_p7 = scmp.lt.u32.totalorder %s8560_s11, %s9460_s6 }
  0xb7   :  { %p8566_p8 = pnand %p8564_p7, %p8561_p6 }
  0xb9   :  { %8569 = shalt.err (!%p8566_p8)
}
  0xba   :  { %s8570_s25 = scalar_lea.vmem %s254_s14, 4096  ;;  %p8575_p10 = scmp.lt.s32.totalorder %s254_s14, %s254_s14 }
  0xbb   :  { %p8571_p9 = scmp.ne.s32.totalorder %s254_s14, %s8570_s25  ;;  %p8576_p11 = scmp.lt.s32.totalorder %s8570_s25, %s8570_s25 }
  0xbd   :  { %p8577_p12 = por %p8576_p11, %p8575_p10 }
  0xbf   :  { %p8578_p13 = pnand %p8577_p12, %p8571_p9 }
  0xc1   :  { %8581 = shalt.err (!%p8578_p13)
}
  0xc2   :  { %s9353_s16 = smov 1024   ;;  %s8582_s24 = scalar_lea.hbm %s9470_s20, 16384 }
  0xc3   :  { %259 = dma.hbm_to_vmem [thread:$0]  %s9460_s6, 4096, %s254_s14, [#allocation24], %s9353_s16, %s9353_s16, %s9345_s28  }
  0xc4   :  { %p8583_p0 = scmp.ne.s32.totalorder %s9470_s20, %s8582_s24  ;;  %p8586_p1 = scmp.lt.u32.totalorder %s8582_s24, %s9470_s20 }
  0xc6   :  { %p8588_p2 = pnand %p8586_p1, %p8583_p0 }
  0xc8   :  { %8591 = shalt.err (!%p8588_p2)
}
  0xc9   :  { %s8592_s23 = scalar_lea.vmem %s276_s17, 16384  ;;  %p8597_p4 = scmp.lt.s32.totalorder %s276_s17, %s276_s17 }
  0xca   :  { %p8593_p3 = scmp.ne.s32.totalorder %s276_s17, %s8592_s23  ;;  %p8598_p5 = scmp.lt.s32.totalorder %s8592_s23, %s8592_s23 }
  0xcc   :  { %p8599_p6 = por %p8598_p5, %p8597_p4 }
  0xce   :  { %p8600_p7 = pnand %p8599_p6, %p8593_p3 }
  0xd0   :  { %8603 = shalt.err (!%p8600_p7)
}
  0xd1   :  { %281 = dma.hbm_to_vmem [thread:$0]  %s9470_s20, 16384, %s276_s17, [#allocation27], %s9345_s28, %s9345_s28, %s9346_s9  }
  0xd2   :  { %s9354_s6 = smov [#allocation29]   ;;  %s9355_s1 = smov [#allocation32]  }
  0xd3   :  { %s298_s26 = sshll.u32 %s9354_s6, 4  ;;  %s317_s2 = sshll.u32 %s9355_s1, 4  ;;  %s299_s26 = int_to_ptr.vmem [resolvable:$true] %s298_s26  ;;  %s318_s2 = int_to_ptr.vmem [resolvable:$true] %s317_s2 }
  0xd4   :  { %s8604_s3 = scalar_lea.hbm %s9480_s4, 16 }
  0xd5   :  { %p8605_p8 = scmp.ne.s32.totalorder %s9480_s4, %s8604_s3  ;;  %p8608_p9 = scmp.lt.u32.totalorder %s8604_s3, %s9480_s4 }
  0xd7   :  { %p8610_p10 = pnand %p8608_p9, %p8605_p8 }
  0xd9   :  { %8613 = shalt.err (!%p8610_p10)
}
  0xda   :  { %s8614_s0 = scalar_lea.vmem %s299_s26, 16  ;;  %s8618_s7 = scalar_lea.vmem %s299_s26, 32 }
  0xdb   :  { %p8615_p11 = scmp.ne.s32.totalorder %s299_s26, %s8614_s0  ;;  %p8619_p12 = scmp.lt.s32.totalorder %s299_s26, %s299_s26 }
  0xdc   :  { %p8620_p13 = scmp.lt.s32.totalorder %s8618_s7, %s8614_s0 }
  0xde   :  { %p8621_p0 = por %p8620_p13, %p8619_p12 }
  0xe0   :  { %p8622_p1 = pnand %p8621_p0, %p8615_p11 }
  0xe2   :  { %8625 = shalt.err (!%p8622_p1)
}
  0xe3   :  { %301 = dma.hbm_to_vmem [thread:$0]  %s9480_s4, 16, %s299_s26, [#allocation30]  }
  0xe4   :  { %s8626_s20 = scalar_lea.hbm %s9490_s30, 256 }
  0xe5   :  { %p8627_p2 = scmp.ne.s32.totalorder %s9490_s30, %s8626_s20  ;;  %p8630_p3 = scmp.lt.u32.totalorder %s8626_s20, %s9490_s30 }
  0xe7   :  { %p8632_p4 = pnand %p8630_p3, %p8627_p2 }
  0xe9   :  { %8635 = shalt.err (!%p8632_p4)
}
  0xea   :  { %s8636_s10 = scalar_lea.vmem %s318_s2, 256  ;;  %p8641_p6 = scmp.lt.s32.totalorder %s318_s2, %s318_s2 }
  0xeb   :  { %p8637_p5 = scmp.ne.s32.totalorder %s318_s2, %s8636_s10  ;;  %p8642_p7 = scmp.lt.s32.totalorder %s8636_s10, %s8636_s10 }
  0xed   :  { %p8643_p8 = por %p8642_p7, %p8641_p6 }
  0xef   :  { %p8644_p9 = pnand %p8643_p8, %p8637_p5 }
  0xf1   :  { %8647 = shalt.err (!%p8644_p9)
}
  0xf2   :  { %323 = dma.hbm_to_vmem [thread:$0]  %s9490_s30, 256, %s318_s2, [#allocation33], %s9345_s28, %s9345_s28, %s9346_s9  }
  0xf3   :  { %s9356_s4 = smov [#allocation35]   ;;  %s9357_s15 = smov [#allocation38]  }
  0xf4   :  { %s341_s14 = sshll.u32 %s9356_s4, 4  ;;  %s365_s17 = sshll.u32 %s9357_s15, 4  ;;  %s342_s14 = int_to_ptr.vmem [resolvable:$true] %s341_s14  ;;  %s366_s17 = int_to_ptr.vmem [resolvable:$true] %s365_s17 }
  0xf5   :  { %s8648_s11 = scalar_lea.hbm %s9500_s19, 256 }
  0xf6   :  { %p8649_p10 = scmp.ne.s32.totalorder %s9500_s19, %s8648_s11  ;;  %p8652_p11 = scmp.lt.u32.totalorder %s8648_s11, %s9500_s19 }
  0xf8   :  { %p8654_p12 = pnand %p8652_p11, %p8649_p10 }
  0xfa   :  { %8657 = shalt.err (!%p8654_p12)
}
  0xfb   :  { %s8658_s25 = scalar_lea.vmem %s342_s14, 256  ;;  %p8663_p0 = scmp.lt.s32.totalorder %s342_s14, %s342_s14 }
  0xfc   :  { %p8659_p13 = scmp.ne.s32.totalorder %s342_s14, %s8658_s25  ;;  %p8664_p1 = scmp.lt.s32.totalorder %s8658_s25, %s8658_s25 }
  0xfe   :  { %p8665_p2 = por %p8664_p1, %p8663_p0 }
 0x100   :  { %p8666_p3 = pnand %p8665_p2, %p8659_p13 }
 0x102   :  { %8669 = shalt.err (!%p8666_p3)
}
 0x103   :  { %347 = dma.hbm_to_vmem [thread:$0]  %s9500_s19, 256, %s342_s14, [#allocation36], %s9345_s28, %s9345_s28, %s9346_s9  }
 0x104   :  { %s8670_s30 = scalar_lea.hbm %s9510_s8, 256 }
 0x105   :  { %p8671_p4 = scmp.ne.s32.totalorder %s9510_s8, %s8670_s30  ;;  %p8674_p5 = scmp.lt.u32.totalorder %s8670_s30, %s9510_s8 }
 0x107   :  { %p8676_p6 = pnand %p8674_p5, %p8671_p4 }
 0x109   :  { %8679 = shalt.err (!%p8676_p6)
}
 0x10a   :  { %s8680_s24 = scalar_lea.vmem %s366_s17, 256  ;;  %p8685_p8 = scmp.lt.s32.totalorder %s366_s17, %s366_s17 }
 0x10b   :  { %p8681_p7 = scmp.ne.s32.totalorder %s366_s17, %s8680_s24  ;;  %p8686_p9 = scmp.lt.s32.totalorder %s8680_s24, %s8680_s24 }
 0x10d   :  { %p8687_p10 = por %p8686_p9, %p8685_p8 }
 0x10f   :  { %p8688_p11 = pnand %p8687_p10, %p8681_p7 }
 0x111   :  { %8691 = shalt.err (!%p8688_p11)
}
 0x112   :  { %371 = dma.hbm_to_vmem [thread:$0]  %s9510_s8, 256, %s366_s17, [#allocation39], %s9345_s28, %s9345_s28, %s9346_s9  }
 0x113   :  { %s9358_s19 = smov [#allocation41]   ;;  %s9359_s6 = smov [#allocation44]  }
 0x114   :  { %s389_s23 = sshll.u32 %s9358_s19, 4  ;;  %s412_s26 = sshll.u32 %s9359_s6, 4  ;;  %s390_s23 = int_to_ptr.vmem [resolvable:$true] %s389_s23  ;;  %s413_s26 = int_to_ptr.vmem [resolvable:$true] %s412_s26 }
 0x115   :  { %s8692_s1 = scalar_lea.hbm %s9520_s29, 256 }
 0x116   :  { %p8693_p12 = scmp.ne.s32.totalorder %s9520_s29, %s8692_s1  ;;  %p8696_p13 = scmp.lt.u32.totalorder %s8692_s1, %s9520_s29 }
 0x118   :  { %p8698_p0 = pnand %p8696_p13, %p8693_p12 }
 0x11a   :  { %8701 = shalt.err (!%p8698_p0)
}
 0x11b   :  { %s8702_s2 = scalar_lea.vmem %s390_s23, 256  ;;  %p8707_p2 = scmp.lt.s32.totalorder %s390_s23, %s390_s23 }
 0x11c   :  { %p8703_p1 = scmp.ne.s32.totalorder %s390_s23, %s8702_s2  ;;  %p8708_p3 = scmp.lt.s32.totalorder %s8702_s2, %s8702_s2 }
 0x11e   :  { %p8709_p4 = por %p8708_p3, %p8707_p2 }
 0x120   :  { %p8710_p5 = pnand %p8709_p4, %p8703_p1 }
 0x122   :  { %8713 = shalt.err (!%p8710_p5)
}
 0x123   :  { %395 = dma.hbm_to_vmem [thread:$0]  %s9520_s29, 256, %s390_s23, [#allocation42], %s9345_s28, %s9345_s28, %s9346_s9  }
 0x124   :  { %s8714_s8 = scalar_lea.hbm %s9530_s21, 16 }
 0x125   :  { %p8715_p6 = scmp.ne.s32.totalorder %s9530_s21, %s8714_s8  ;;  %p8718_p7 = scmp.lt.u32.totalorder %s8714_s8, %s9530_s21 }
 0x127   :  { %p8720_p8 = pnand %p8718_p7, %p8715_p6 }
 0x129   :  { %8723 = shalt.err (!%p8720_p8)
}
 0x12a   :  { %s8724_s3 = scalar_lea.vmem %s413_s26, 16  ;;  %s8728_s0 = scalar_lea.vmem %s413_s26, 32 }
 0x12b   :  { %p8725_p9 = scmp.ne.s32.totalorder %s413_s26, %s8724_s3  ;;  %p8729_p10 = scmp.lt.s32.totalorder %s413_s26, %s413_s26 }
 0x12c   :  { %p8730_p11 = scmp.lt.s32.totalorder %s8728_s0, %s8724_s3 }
 0x12e   :  { %p8731_p12 = por %p8730_p11, %p8729_p10 }
 0x130   :  { %p8732_p13 = pnand %p8731_p12, %p8725_p9 }
 0x132   :  { %8735 = shalt.err (!%p8732_p13)
}
 0x133   :  { %s10258_s7 = sld [smem:[#allocation95_spill]]  ;;  %s9360_s29 = smov [#allocation47]  }
 0x134   :  { %415 = dma.hbm_to_vmem [thread:$0]  %s9530_s21, 16, %s413_s26, [#allocation45]  }
 0x135   :  { %s431_s20 = sshll.u32 %s9360_s29, 4  ;;  %s9361_s10 = smov [#allocation50]   ;;  %s432_s20 = int_to_ptr.vmem [resolvable:$true] %s431_s20 }
 0x136   :  { %s453_s4 = sshll.u32 %s9361_s10, 4  ;;  %s454_s4 = int_to_ptr.vmem [resolvable:$true] %s453_s4 }
 0x139   :  { %s8736_s14 = scalar_lea.hbm %s10258_s7, 4096 }
 0x13a   :  { %p8737_p0 = scmp.ne.s32.totalorder %s10258_s7, %s8736_s14  ;;  %p8740_p1 = scmp.lt.u32.totalorder %s8736_s14, %s10258_s7 }
 0x13c   :  { %p8742_p2 = pnand %p8740_p1, %p8737_p0 }
 0x13e   :  { %8745 = shalt.err (!%p8742_p2)
}
 0x13f   :  { %s8746_s15 = scalar_lea.vmem %s432_s20, 4096  ;;  %p8751_p4 = scmp.lt.s32.totalorder %s432_s20, %s432_s20 }
 0x140   :  { %p8747_p3 = scmp.ne.s32.totalorder %s432_s20, %s8746_s15  ;;  %p8752_p5 = scmp.lt.s32.totalorder %s8746_s15, %s8746_s15 }
 0x142   :  { %p8753_p6 = por %p8752_p5, %p8751_p4 }
 0x144   :  { %p8754_p7 = pnand %p8753_p6, %p8747_p3 }
 0x146   :  { %8757 = shalt.err (!%p8754_p7)
}
 0x147   :  { %s10259_s21 = sld [smem:[#allocation97_spill]] }
 0x148   :  { %437 = dma.hbm_to_vmem [thread:$0]  %s10258_s7, 4096, %s432_s20, [#allocation48], %s9353_s16, %s9353_s16, %s9345_s28  }
 0x14d   :  { %s8758_s17 = scalar_lea.hbm %s10259_s21, 16384 }
 0x14e   :  { %p8759_p8 = scmp.ne.s32.totalorder %s10259_s21, %s8758_s17  ;;  %p8762_p9 = scmp.lt.u32.totalorder %s8758_s17, %s10259_s21 }
 0x150   :  { %p8764_p10 = pnand %p8762_p9, %p8759_p8 }
 0x152   :  { %8767 = shalt.err (!%p8764_p10)
}
 0x153   :  { %s8768_s11 = scalar_lea.vmem %s454_s4, 16384  ;;  %p8773_p12 = scmp.lt.s32.totalorder %s454_s4, %s454_s4 }
 0x154   :  { %p8769_p11 = scmp.ne.s32.totalorder %s454_s4, %s8768_s11  ;;  %p8774_p13 = scmp.lt.s32.totalorder %s8768_s11, %s8768_s11 }
 0x156   :  { %p8775_p0 = por %p8774_p13, %p8773_p12 }
 0x158   :  { %p8776_p1 = pnand %p8775_p0, %p8769_p11 }
 0x15a   :  { %8779 = shalt.err (!%p8776_p1)
}
 0x15b   :  { %s10260_s25 = sld [smem:[#allocation99_spill]]  ;;  %s9362_s16 = smov [#allocation53]  }
 0x15c   :  { %459 = dma.hbm_to_vmem [thread:$0]  %s10259_s21, 16384, %s454_s4, [#allocation51], %s9345_s28, %s9345_s28, %s9346_s9  }
 0x15d   :  { %s476_s30 = sshll.u32 %s9362_s16, 4  ;;  %s9363_s24 = smov [#allocation56]   ;;  %s477_s30 = int_to_ptr.vmem [resolvable:$true] %s476_s30 }
 0x15e   :  { %s495_s19 = sshll.u32 %s9363_s24, 4  ;;  %s496_s19 = int_to_ptr.vmem [resolvable:$true] %s495_s19 }
 0x161   :  { %s8780_s23 = scalar_lea.hbm %s10260_s25, 16 }
 0x162   :  { %p8781_p2 = scmp.ne.s32.totalorder %s10260_s25, %s8780_s23  ;;  %p8784_p3 = scmp.lt.u32.totalorder %s8780_s23, %s10260_s25 }
 0x164   :  { %p8786_p4 = pnand %p8784_p3, %p8781_p2 }
 0x166   :  { %8789 = shalt.err (!%p8786_p4)
}
 0x167   :  { %s8790_s6 = scalar_lea.vmem %s477_s30, 16  ;;  %s8794_s26 = scalar_lea.vmem %s477_s30, 32 }
 0x168   :  { %p8791_p5 = scmp.ne.s32.totalorder %s477_s30, %s8790_s6  ;;  %p8795_p6 = scmp.lt.s32.totalorder %s477_s30, %s477_s30 }
 0x169   :  { %p8796_p7 = scmp.lt.s32.totalorder %s8794_s26, %s8790_s6 }
 0x16b   :  { %p8797_p8 = por %p8796_p7, %p8795_p6 }
 0x16d   :  { %p8798_p9 = pnand %p8797_p8, %p8791_p5 }
 0x16f   :  { %8801 = shalt.err (!%p8798_p9)
}
 0x170   :  { %479 = dma.hbm_to_vmem [thread:$0]  %s10260_s25, 16, %s477_s30, [#allocation54]  }
 0x171   :  { %s8802_s1 = scalar_lea.hbm %s9570_s5, 256 }
 0x172   :  { %p8803_p10 = scmp.ne.s32.totalorder %s9570_s5, %s8802_s1  ;;  %p8806_p11 = scmp.lt.u32.totalorder %s8802_s1, %s9570_s5 }
 0x174   :  { %p8808_p12 = pnand %p8806_p11, %p8803_p10 }
 0x176   :  { %8811 = shalt.err (!%p8808_p12)
}
 0x177   :  { %s8812_s2 = scalar_lea.vmem %s496_s19, 256  ;;  %p8817_p0 = scmp.lt.s32.totalorder %s496_s19, %s496_s19 }
 0x178   :  { %p8813_p13 = scmp.ne.s32.totalorder %s496_s19, %s8812_s2  ;;  %p8818_p1 = scmp.lt.s32.totalorder %s8812_s2, %s8812_s2 }
 0x17a   :  { %p8819_p2 = por %p8818_p1, %p8817_p0 }
 0x17c   :  { %p8820_p3 = pnand %p8819_p2, %p8813_p13 }
 0x17e   :  { %8823 = shalt.err (!%p8820_p3)
}
 0x17f   :  { %s10261_s8 = sld [smem:[#allocation80_spill]]  ;;  %s9364_s3 = smov [#allocation2]  }
 0x180   :  { %501 = dma.hbm_to_vmem [thread:$0]  %s9570_s5, 256, %s496_s19, [#allocation57], %s9345_s28, %s9345_s28, %s9346_s9  }
 0x181   :  { %s105_s0 = sshll.u32 %s9364_s3, 4  ;;  %s9365_s7 = smov [#allocation7]   ;;  %s106_s0 = int_to_ptr.vmem [resolvable:$true] %s105_s0 }
 0x182   :  { %s130_s29 = sshll.u32 %s9365_s7, 4  ;;  %s131_s29 = int_to_ptr.vmem [resolvable:$true] %s130_s29 }
 0x185   :  { %s8824_s20 = scalar_lea.hbm %s10261_s8, 256 }
 0x186   :  { %p8825_p4 = scmp.ne.s32.totalorder %s10261_s8, %s8824_s20  ;;  %p8828_p5 = scmp.lt.u32.totalorder %s8824_s20, %s10261_s8 }
 0x188   :  { %p8830_p6 = pnand %p8828_p5, %p8825_p4 }
 0x18a   :  { %8833 = shalt.err (!%p8830_p6)
}
 0x18b   :  { %s8834_s10 = scalar_lea.vmem %s106_s0, 256  ;;  %p8839_p8 = scmp.lt.s32.totalorder %s106_s0, %s106_s0 }
 0x18c   :  { %p8835_p7 = scmp.ne.s32.totalorder %s106_s0, %s8834_s10  ;;  %p8840_p9 = scmp.lt.s32.totalorder %s8834_s10, %s8834_s10 }
 0x18e   :  { %p8841_p10 = por %p8840_p9, %p8839_p8 }
 0x190   :  { %p8842_p11 = pnand %p8841_p10, %p8835_p7 }
 0x192   :  { %8845 = shalt.err (!%p8842_p11)
}
 0x193   :  { %s10262_s5 = sld [smem:[#allocation81_spill]] }
 0x194   :  { %111 = dma.hbm_to_vmem [thread:$0]  %s10261_s8, 256, %s106_s0, [#allocation3], %s9343_s18, %s9343_s18, %s9344_s22  }
 0x199   :  { %s8846_s28 = scalar_lea.hbm %s10262_s5, 128 }
 0x19a   :  { %p8847_p12 = scmp.ne.s32.totalorder %s10262_s5, %s8846_s28  ;;  %p8850_p13 = scmp.lt.u32.totalorder %s8846_s28, %s10262_s5 }
 0x19c   :  { %p8852_p0 = pnand %p8850_p13, %p8847_p12 }
 0x19e   :  { %8855 = shalt.err (!%p8852_p0)
}
 0x19f   :  { %s8856_s9 = scalar_lea.vmem %s131_s29, 128  ;;  %p8861_p2 = scmp.lt.s32.totalorder %s131_s29, %s131_s29 }
 0x1a0   :  { %p8857_p1 = scmp.ne.s32.totalorder %s131_s29, %s8856_s9  ;;  %p8862_p3 = scmp.lt.s32.totalorder %s8856_s9, %s8856_s9 }
 0x1a2   :  { %p8863_p4 = por %p8862_p3, %p8861_p2 }
 0x1a4   :  { %p8864_p5 = pnand %p8863_p4, %p8857_p1 }
 0x1a6   :  { %8867 = shalt.err (!%p8864_p5)
}
 0x1a7   :  { %s10263_s4 = sld [smem:[#allocation82_spill]]  ;;  %s9366_s14 = smov [#allocation10]  }
 0x1a8   :  { %133 = dma.hbm_to_vmem [thread:$0]  %s10262_s5, 128, %s131_s29, [#allocation6]  }
 0x1a9   :  { %s151_s15 = sshll.u32 %s9366_s14, 4  ;;  %s9367_s21 = smov [#allocation13]   ;;  %s152_s15 = int_to_ptr.vmem [resolvable:$true] %s151_s15 }
 0x1aa   :  { %s175_s17 = sshll.u32 %s9367_s21, 4  ;;  %s176_s17 = int_to_ptr.vmem [resolvable:$true] %s175_s17 }
 0x1ad   :  { %s8868_s11 = scalar_lea.hbm %s10263_s4, 512 }
 0x1ae   :  { %p8869_p6 = scmp.ne.s32.totalorder %s10263_s4, %s8868_s11  ;;  %p8872_p7 = scmp.lt.u32.totalorder %s8868_s11, %s10263_s4 }
 0x1b0   :  { %p8874_p8 = pnand %p8872_p7, %p8869_p6 }
 0x1b2   :  { %8877 = shalt.err (!%p8874_p8)
}
 0x1b3   :  { %s8878_s25 = scalar_lea.vmem %s152_s15, 512  ;;  %p8883_p10 = scmp.lt.s32.totalorder %s152_s15, %s152_s15 }
 0x1b4   :  { %p8879_p9 = scmp.ne.s32.totalorder %s152_s15, %s8878_s25  ;;  %p8884_p11 = scmp.lt.s32.totalorder %s8878_s25, %s8878_s25 }
 0x1b6   :  { %p8885_p12 = por %p8884_p11, %p8883_p10 }
 0x1b8   :  { %p8886_p13 = pnand %p8885_p12, %p8879_p9 }
 0x1ba   :  { %8889 = shalt.err (!%p8886_p13)
}
 0x1bb   :  { %s10264_s16 = sld [smem:[#allocation83_spill]] }
 0x1bc   :  { %157 = dma.hbm_to_vmem [thread:$0]  %s10263_s4, 512, %s152_s15, [#allocation9], %s9343_s18, %s9343_s18, %s9344_s22  }
 0x1c1   :  { %s8890_s30 = scalar_lea.hbm %s10264_s16, 512 }
 0x1c2   :  { %p8891_p0 = scmp.ne.s32.totalorder %s10264_s16, %s8890_s30  ;;  %p8894_p1 = scmp.lt.u32.totalorder %s8890_s30, %s10264_s16 }
 0x1c4   :  { %p8896_p2 = pnand %p8894_p1, %p8891_p0 }
 0x1c6   :  { %8899 = shalt.err (!%p8896_p2)
}
 0x1c7   :  { %s8900_s24 = scalar_lea.vmem %s176_s17, 512  ;;  %p8905_p4 = scmp.lt.s32.totalorder %s176_s17, %s176_s17 }
 0x1c8   :  { %p8901_p3 = scmp.ne.s32.totalorder %s176_s17, %s8900_s24  ;;  %p8906_p5 = scmp.lt.s32.totalorder %s8900_s24, %s8900_s24 }
 0x1ca   :  { %p8907_p6 = por %p8906_p5, %p8905_p4 }
 0x1cc   :  { %p8908_p7 = pnand %p8907_p6, %p8901_p3 }
 0x1ce   :  { %8911 = shalt.err (!%p8908_p7)
}
 0x1cf   :  { %s10265_s19 = sld [smem:[#allocation84_spill]]  ;;  %s9368_s23 = smov [#allocation16]  }
 0x1d0   :  { %181 = dma.hbm_to_vmem [thread:$0]  %s10264_s16, 512, %s176_s17, [#allocation12], %s9343_s18, %s9343_s18, %s9344_s22  }
 0x1d1   :  { %s199_s6 = sshll.u32 %s9368_s23, 4  ;;  %s9369_s26 = smov [#allocation19]   ;;  %s200_s6 = int_to_ptr.vmem [resolvable:$true] %s199_s6 }
 0x1d2   :  { %s224_s1 = sshll.u32 %s9369_s26, 4  ;;  %s225_s1 = int_to_ptr.vmem [resolvable:$true] %s224_s1 }
 0x1d5   :  { %s8912_s2 = scalar_lea.hbm %s10265_s19, 512 }
 0x1d6   :  { %p8913_p8 = scmp.ne.s32.totalorder %s10265_s19, %s8912_s2  ;;  %p8916_p9 = scmp.lt.u32.totalorder %s8912_s2, %s10265_s19 }
 0x1d8   :  { %p8918_p10 = pnand %p8916_p9, %p8913_p8 }
 0x1da   :  { %8921 = shalt.err (!%p8918_p10)
}
 0x1db   :  { %s8922_s8 = scalar_lea.vmem %s200_s6, 512  ;;  %p8927_p12 = scmp.lt.s32.totalorder %s200_s6, %s200_s6 }
 0x1dc   :  { %p8923_p11 = scmp.ne.s32.totalorder %s200_s6, %s8922_s8  ;;  %p8928_p13 = scmp.lt.s32.totalorder %s8922_s8, %s8922_s8 }
 0x1de   :  { %p8929_p0 = por %p8928_p13, %p8927_p12 }
 0x1e0   :  { %p8930_p1 = pnand %p8929_p0, %p8923_p11 }
 0x1e2   :  { %8933 = shalt.err (!%p8930_p1)
}
 0x1e3   :  { %s10266_s3 = sld [smem:[#allocation85_spill]] }
 0x1e4   :  { %205 = dma.hbm_to_vmem [thread:$0]  %s10265_s19, 512, %s200_s6, [#allocation15], %s9343_s18, %s9343_s18, %s9344_s22  }
 0x1e9   :  { %s8934_s0 = scalar_lea.hbm %s10266_s3, 16 }
 0x1ea   :  { %p8935_p2 = scmp.ne.s32.totalorder %s10266_s3, %s8934_s0  ;;  %p8938_p3 = scmp.lt.u32.totalorder %s8934_s0, %s10266_s3 }
 0x1ec   :  { %p8940_p4 = pnand %p8938_p3, %p8935_p2 }
 0x1ee   :  { %8943 = shalt.err (!%p8940_p4)
}
 0x1ef   :  { %s8944_s7 = scalar_lea.vmem %s225_s1, 16  ;;  %s8948_s29 = scalar_lea.vmem %s225_s1, 32 }
 0x1f0   :  { %p8945_p5 = scmp.ne.s32.totalorder %s225_s1, %s8944_s7  ;;  %p8949_p6 = scmp.lt.s32.totalorder %s225_s1, %s225_s1 }
 0x1f1   :  { %p8950_p7 = scmp.lt.s32.totalorder %s8948_s29, %s8944_s7 }
 0x1f3   :  { %p8951_p8 = por %p8950_p7, %p8949_p6 }
 0x1f5   :  { %p8952_p9 = pnand %p8951_p8, %p8945_p5 }
 0x1f7   :  { %8955 = shalt.err (!%p8952_p9)
}
 0x1f8   :  { %s10267_s20 = sld [smem:[#allocation86_spill]]  ;;  %s9370_s10 = smov [#allocation22]  }
 0x1f9   :  { %227 = dma.hbm_to_vmem [thread:$0]  %s10266_s3, 16, %s225_s1, [#allocation18]  }
 0x1fa   :  { %s244_s5 = sshll.u32 %s9370_s10, 4  ;;  %s9371_s28 = smov [#allocation25]   ;;  %s245_s5 = int_to_ptr.vmem [resolvable:$true] %s244_s5 }
 0x1fb   :  { %s266_s9 = sshll.u32 %s9371_s28, 4  ;;  %s267_s9 = int_to_ptr.vmem [resolvable:$true] %s266_s9 }
 0x1fe   :  { %s8956_s4 = scalar_lea.hbm %s10267_s20, 16 }
 0x1ff   :  { %p8957_p10 = scmp.ne.s32.totalorder %s10267_s20, %s8956_s4  ;;  %p8960_p11 = scmp.lt.u32.totalorder %s8956_s4, %s10267_s20 }
 0x201   :  { %p8962_p12 = pnand %p8960_p11, %p8957_p10 }
 0x203   :  { %8965 = shalt.err (!%p8962_p12)
}
 0x204   :  { %s8966_s14 = scalar_lea.vmem %s245_s5, 16  ;;  %s8970_s15 = scalar_lea.vmem %s245_s5, 32 }
 0x205   :  { %p8967_p13 = scmp.ne.s32.totalorder %s245_s5, %s8966_s14  ;;  %p8971_p0 = scmp.lt.s32.totalorder %s245_s5, %s245_s5 }
 0x206   :  { %p8972_p1 = scmp.lt.s32.totalorder %s8970_s15, %s8966_s14 }
 0x208   :  { %p8973_p2 = por %p8972_p1, %p8971_p0 }
 0x20a   :  { %p8974_p3 = pnand %p8973_p2, %p8967_p13 }
 0x20c   :  { %8977 = shalt.err (!%p8974_p3)
}
 0x20d   :  { %s10268_s21 = sld [smem:[#allocation87_spill]] }
 0x20e   :  { %247 = dma.hbm_to_vmem [thread:$0]  %s10267_s20, 16, %s245_s5, [#allocation21]  }
 0x213   :  { %s8978_s17 = scalar_lea.hbm %s10268_s21, 256 }
 0x214   :  { %p8979_p4 = scmp.ne.s32.totalorder %s10268_s21, %s8978_s17  ;;  %p8982_p5 = scmp.lt.u32.totalorder %s8978_s17, %s10268_s21 }
 0x216   :  { %p8984_p6 = pnand %p8982_p5, %p8979_p4 }
 0x218   :  { %8987 = shalt.err (!%p8984_p6)
}
 0x219   :  { %s8988_s11 = scalar_lea.vmem %s267_s9, 256  ;;  %p8993_p8 = scmp.lt.s32.totalorder %s267_s9, %s267_s9 }
 0x21a   :  { %p8989_p7 = scmp.ne.s32.totalorder %s267_s9, %s8988_s11  ;;  %p8994_p9 = scmp.lt.s32.totalorder %s8988_s11, %s8988_s11 }
 0x21c   :  { %p8995_p10 = por %p8994_p9, %p8993_p8 }
 0x21e   :  { %p8996_p11 = pnand %p8995_p10, %p8989_p7 }
 0x220   :  { %8999 = shalt.err (!%p8996_p11)
}
 0x221   :  { %s10269_s25 = sld [smem:[#allocation88_spill]]  ;;  %s9372_s16 = smov [#allocation28]  }
 0x222   :  { %269 = dma.hbm_to_vmem [thread:$0]  %s10268_s21, 256, %s267_s9, [#allocation24]  }
 0x223   :  { %s288_s30 = sshll.u32 %s9372_s16, 4  ;;  %s9373_s24 = smov [#allocation31]   ;;  %s289_s30 = int_to_ptr.vmem [resolvable:$true] %s288_s30 }
 0x224   :  { %s308_s19 = sshll.u32 %s9373_s24, 4  ;;  %s309_s19 = int_to_ptr.vmem [resolvable:$true] %s308_s19 }
 0x227   :  { %s9000_s23 = scalar_lea.hbm %s10269_s25, 16 }
 0x228   :  { %p9001_p12 = scmp.ne.s32.totalorder %s10269_s25, %s9000_s23  ;;  %p9004_p13 = scmp.lt.u32.totalorder %s9000_s23, %s10269_s25 }
 0x22a   :  { %p9006_p0 = pnand %p9004_p13, %p9001_p12 }
 0x22c   :  { %9009 = shalt.err (!%p9006_p0)
}
 0x22d   :  { %s9010_s6 = scalar_lea.vmem %s289_s30, 16  ;;  %s9014_s26 = scalar_lea.vmem %s289_s30, 32 }
 0x22e   :  { %p9011_p1 = scmp.ne.s32.totalorder %s289_s30, %s9010_s6  ;;  %p9015_p2 = scmp.lt.s32.totalorder %s289_s30, %s289_s30 }
 0x22f   :  { %p9016_p3 = scmp.lt.s32.totalorder %s9014_s26, %s9010_s6 }
 0x231   :  { %p9017_p4 = por %p9016_p3, %p9015_p2 }
 0x233   :  { %p9018_p5 = pnand %p9017_p4, %p9011_p1 }
 0x235   :  { %9021 = shalt.err (!%p9018_p5)
}
 0x236   :  { %s10270_s1 = sld [smem:[#allocation89_spill]] }
 0x237   :  { %291 = dma.hbm_to_vmem [thread:$0]  %s10269_s25, 16, %s289_s30, [#allocation27]  }
 0x23c   :  { %s9022_s2 = scalar_lea.hbm %s10270_s1, 16 }
 0x23d   :  { %p9023_p6 = scmp.ne.s32.totalorder %s10270_s1, %s9022_s2  ;;  %p9026_p7 = scmp.lt.u32.totalorder %s9022_s2, %s10270_s1 }
 0x23f   :  { %p9028_p8 = pnand %p9026_p7, %p9023_p6 }
 0x241   :  { %9031 = shalt.err (!%p9028_p8)
}
 0x242   :  { %s9032_s8 = scalar_lea.vmem %s309_s19, 16  ;;  %s9036_s3 = scalar_lea.vmem %s309_s19, 32 }
 0x243   :  { %p9033_p9 = scmp.ne.s32.totalorder %s309_s19, %s9032_s8  ;;  %p9037_p10 = scmp.lt.s32.totalorder %s309_s19, %s309_s19 }
 0x244   :  { %p9038_p11 = scmp.lt.s32.totalorder %s9036_s3, %s9032_s8 }
 0x246   :  { %p9039_p12 = por %p9038_p11, %p9037_p10 }
 0x248   :  { %p9040_p13 = pnand %p9039_p12, %p9033_p9 }
 0x24a   :  { %9043 = shalt.err (!%p9040_p13)
}
 0x24b   :  { %s10271_s0 = sld [smem:[#allocation90_spill]]  ;;  %s9374_s7 = smov [#allocation34]  }
 0x24c   :  { %311 = dma.hbm_to_vmem [thread:$0]  %s10270_s1, 16, %s309_s19, [#allocation30]  }
 0x24d   :  { %s329_s29 = sshll.u32 %s9374_s7, 4  ;;  %s9375_s20 = smov [#allocation37]   ;;  %s330_s29 = int_to_ptr.vmem [resolvable:$true] %s329_s29 }
 0x24e   :  { %s353_s10 = sshll.u32 %s9375_s20, 4  ;;  %s354_s10 = int_to_ptr.vmem [resolvable:$true] %s353_s10 }
 0x251   :  { %s9044_s5 = scalar_lea.hbm %s10271_s0, 512 }
 0x252   :  { %p9045_p0 = scmp.ne.s32.totalorder %s10271_s0, %s9044_s5  ;;  %p9048_p1 = scmp.lt.u32.totalorder %s9044_s5, %s10271_s0 }
 0x254   :  { %p9050_p2 = pnand %p9048_p1, %p9045_p0 }
 0x256   :  { %9053 = shalt.err (!%p9050_p2)
}
 0x257   :  { %s9054_s28 = scalar_lea.vmem %s330_s29, 512  ;;  %p9059_p4 = scmp.lt.s32.totalorder %s330_s29, %s330_s29 }
 0x258   :  { %p9055_p3 = scmp.ne.s32.totalorder %s330_s29, %s9054_s28  ;;  %p9060_p5 = scmp.lt.s32.totalorder %s9054_s28, %s9054_s28 }
 0x25a   :  { %p9061_p6 = por %p9060_p5, %p9059_p4 }
 0x25c   :  { %p9062_p7 = pnand %p9061_p6, %p9055_p3 }
 0x25e   :  { %9065 = shalt.err (!%p9062_p7)
}
 0x25f   :  { %s10272_s9 = sld [smem:[#allocation91_spill]] }
 0x260   :  { %335 = dma.hbm_to_vmem [thread:$0]  %s10271_s0, 512, %s330_s29, [#allocation33], %s9343_s18, %s9343_s18, %s9344_s22  }
 0x265   :  { %s9066_s4 = scalar_lea.hbm %s10272_s9, 512 }
 0x266   :  { %p9067_p8 = scmp.ne.s32.totalorder %s10272_s9, %s9066_s4  ;;  %p9070_p9 = scmp.lt.u32.totalorder %s9066_s4, %s10272_s9 }
 0x268   :  { %p9072_p10 = pnand %p9070_p9, %p9067_p8 }
 0x26a   :  { %9075 = shalt.err (!%p9072_p10)
}
 0x26b   :  { %s9076_s14 = scalar_lea.vmem %s354_s10, 512  ;;  %p9081_p12 = scmp.lt.s32.totalorder %s354_s10, %s354_s10 }
 0x26c   :  { %p9077_p11 = scmp.ne.s32.totalorder %s354_s10, %s9076_s14  ;;  %p9082_p13 = scmp.lt.s32.totalorder %s9076_s14, %s9076_s14 }
 0x26e   :  { %p9083_p0 = por %p9082_p13, %p9081_p12 }
 0x270   :  { %p9084_p1 = pnand %p9083_p0, %p9077_p11 }
 0x272   :  { %9087 = shalt.err (!%p9084_p1)
}
 0x273   :  { %s10273_s15 = sld [smem:[#allocation92_spill]]  ;;  %s9376_s21 = smov [#allocation40]  }
 0x274   :  { %359 = dma.hbm_to_vmem [thread:$0]  %s10272_s9, 512, %s354_s10, [#allocation36], %s9343_s18, %s9343_s18, %s9344_s22  }
 0x275   :  { %s377_s17 = sshll.u32 %s9376_s21, 4  ;;  %s9377_s11 = smov [#allocation43]   ;;  %s378_s17 = int_to_ptr.vmem [resolvable:$true] %s377_s17 }
 0x276   :  { %s402_s25 = sshll.u32 %s9377_s11, 4  ;;  %s403_s25 = int_to_ptr.vmem [resolvable:$true] %s402_s25 }
 0x279   :  { %s9088_s16 = scalar_lea.hbm %s10273_s15, 512 }
 0x27a   :  { %p9089_p2 = scmp.ne.s32.totalorder %s10273_s15, %s9088_s16  ;;  %p9092_p3 = scmp.lt.u32.totalorder %s9088_s16, %s10273_s15 }
 0x27c   :  { %p9094_p4 = pnand %p9092_p3, %p9089_p2 }
 0x27e   :  { %9097 = shalt.err (!%p9094_p4)
}
 0x27f   :  { %s9098_s30 = scalar_lea.vmem %s378_s17, 512  ;;  %p9103_p6 = scmp.lt.s32.totalorder %s378_s17, %s378_s17 }
 0x280   :  { %p9099_p5 = scmp.ne.s32.totalorder %s378_s17, %s9098_s30  ;;  %p9104_p7 = scmp.lt.s32.totalorder %s9098_s30, %s9098_s30 }
 0x282   :  { %p9105_p8 = por %p9104_p7, %p9103_p6 }
 0x284   :  { %p9106_p9 = pnand %p9105_p8, %p9099_p5 }
 0x286   :  { %9109 = shalt.err (!%p9106_p9)
}
 0x287   :  { %s10274_s24 = sld [smem:[#allocation93_spill]] }
 0x288   :  { %383 = dma.hbm_to_vmem [thread:$0]  %s10273_s15, 512, %s378_s17, [#allocation39], %s9343_s18, %s9343_s18, %s9344_s22  }
 0x28d   :  { %s9110_s19 = scalar_lea.hbm %s10274_s24, 16 }
 0x28e   :  { %p9111_p10 = scmp.ne.s32.totalorder %s10274_s24, %s9110_s19  ;;  %p9114_p11 = scmp.lt.u32.totalorder %s9110_s19, %s10274_s24 }
 0x290   :  { %p9116_p12 = pnand %p9114_p11, %p9111_p10 }
 0x292   :  { %9119 = shalt.err (!%p9116_p12)
}
 0x293   :  { %s9120_s23 = scalar_lea.vmem %s403_s25, 16  ;;  %s9124_s6 = scalar_lea.vmem %s403_s25, 32 }
 0x294   :  { %p9121_p13 = scmp.ne.s32.totalorder %s403_s25, %s9120_s23  ;;  %p9125_p0 = scmp.lt.s32.totalorder %s403_s25, %s403_s25 }
 0x295   :  { %p9126_p1 = scmp.lt.s32.totalorder %s9124_s6, %s9120_s23 }
 0x297   :  { %p9127_p2 = por %p9126_p1, %p9125_p0 }
 0x299   :  { %p9128_p3 = pnand %p9127_p2, %p9121_p13 }
 0x29b   :  { %9131 = shalt.err (!%p9128_p3)
}
 0x29c   :  { %s10275_s26 = sld [smem:[#allocation94_spill]]  ;;  %s9378_s1 = smov [#allocation46]  }
 0x29d   :  { %405 = dma.hbm_to_vmem [thread:$0]  %s10274_s24, 16, %s403_s25, [#allocation42]  }
 0x29e   :  { %s422_s2 = sshll.u32 %s9378_s1, 4  ;;  %s9379_s8 = smov [#allocation49]   ;;  %s423_s2 = int_to_ptr.vmem [resolvable:$true] %s422_s2 }
 0x29f   :  { %s444_s3 = sshll.u32 %s9379_s8, 4  ;;  %s445_s3 = int_to_ptr.vmem [resolvable:$true] %s444_s3 }
 0x2a2   :  { %s9132_s0 = scalar_lea.hbm %s10275_s26, 16 }
 0x2a3   :  { %p9133_p4 = scmp.ne.s32.totalorder %s10275_s26, %s9132_s0  ;;  %p9136_p5 = scmp.lt.u32.totalorder %s9132_s0, %s10275_s26 }
 0x2a5   :  { %p9138_p6 = pnand %p9136_p5, %p9133_p4 }
 0x2a7   :  { %9141 = shalt.err (!%p9138_p6)
}
 0x2a8   :  { %s9142_s7 = scalar_lea.vmem %s423_s2, 16  ;;  %s9146_s29 = scalar_lea.vmem %s423_s2, 32 }
 0x2a9   :  { %p9143_p7 = scmp.ne.s32.totalorder %s423_s2, %s9142_s7  ;;  %p9147_p8 = scmp.lt.s32.totalorder %s423_s2, %s423_s2 }
 0x2aa   :  { %p9148_p9 = scmp.lt.s32.totalorder %s9146_s29, %s9142_s7 }
 0x2ac   :  { %p9149_p10 = por %p9148_p9, %p9147_p8 }
 0x2ae   :  { %p9150_p11 = pnand %p9149_p10, %p9143_p7 }
 0x2b0   :  { %9153 = shalt.err (!%p9150_p11)
}
 0x2b1   :  { %s10276_s20 = sld [smem:[#allocation96_spill]] }
 0x2b2   :  { %425 = dma.hbm_to_vmem [thread:$0]  %s10275_s26, 16, %s423_s2, [#allocation45]  }
 0x2b7   :  { %s9154_s10 = scalar_lea.hbm %s10276_s20, 256 }
 0x2b8   :  { %p9155_p12 = scmp.ne.s32.totalorder %s10276_s20, %s9154_s10  ;;  %p9158_p13 = scmp.lt.u32.totalorder %s9154_s10, %s10276_s20 }
 0x2ba   :  { %p9160_p0 = pnand %p9158_p13, %p9155_p12 }
 0x2bc   :  { %9163 = shalt.err (!%p9160_p0)
}
 0x2bd   :  { %s9164_s5 = scalar_lea.vmem %s445_s3, 256  ;;  %p9169_p2 = scmp.lt.s32.totalorder %s445_s3, %s445_s3 }
 0x2be   :  { %p9165_p1 = scmp.ne.s32.totalorder %s445_s3, %s9164_s5  ;;  %p9170_p3 = scmp.lt.s32.totalorder %s9164_s5, %s9164_s5 }
 0x2c0   :  { %p9171_p4 = por %p9170_p3, %p9169_p2 }
 0x2c2   :  { %p9172_p5 = pnand %p9171_p4, %p9165_p1 }
 0x2c4   :  { %9175 = shalt.err (!%p9172_p5)
}
 0x2c5   :  { %s10277_s28 = sld [smem:[#allocation98_spill]]  ;;  %s9380_s9 = smov [#allocation52]  }
 0x2c6   :  { %447 = dma.hbm_to_vmem [thread:$0]  %s10276_s20, 256, %s445_s3, [#allocation48]  }
 0x2c7   :  { %s466_s4 = sshll.u32 %s9380_s9, 4  ;;  %s9381_s14 = smov [#allocation55]   ;;  %s467_s4 = int_to_ptr.vmem [resolvable:$true] %s466_s4 }
 0x2c8   :  { %s486_s15 = sshll.u32 %s9381_s14, 4  ;;  %s487_s15 = int_to_ptr.vmem [resolvable:$true] %s486_s15 }
 0x2cb   :  { %s9176_s21 = scalar_lea.hbm %s10277_s28, 16 }
 0x2cc   :  { %p9177_p6 = scmp.ne.s32.totalorder %s10277_s28, %s9176_s21  ;;  %p9180_p7 = scmp.lt.u32.totalorder %s9176_s21, %s10277_s28 }
 0x2ce   :  { %p9182_p8 = pnand %p9180_p7, %p9177_p6 }
 0x2d0   :  { %9185 = shalt.err (!%p9182_p8)
}
 0x2d1   :  { %s9186_s17 = scalar_lea.vmem %s467_s4, 16  ;;  %s9190_s11 = scalar_lea.vmem %s467_s4, 32 }
 0x2d2   :  { %p9187_p9 = scmp.ne.s32.totalorder %s467_s4, %s9186_s17  ;;  %p9191_p10 = scmp.lt.s32.totalorder %s467_s4, %s467_s4 }
 0x2d3   :  { %p9192_p11 = scmp.lt.s32.totalorder %s9190_s11, %s9186_s17 }
 0x2d5   :  { %p9193_p12 = por %p9192_p11, %p9191_p10 }
 0x2d7   :  { %p9194_p13 = pnand %p9193_p12, %p9187_p9 }
 0x2d9   :  { %9197 = shalt.err (!%p9194_p13)
}
 0x2da   :  { %469 = dma.hbm_to_vmem [thread:$0]  %s10277_s28, 16, %s467_s4, [#allocation51]  }
 0x2db   :  { %s9198_s25 = scalar_lea.hbm %s9565_s12, 16 }
 0x2dc   :  { %p9199_p0 = scmp.ne.s32.totalorder %s9565_s12, %s9198_s25  ;;  %p9202_p1 = scmp.lt.u32.totalorder %s9198_s25, %s9565_s12 }
 0x2de   :  { %p9204_p2 = pnand %p9202_p1, %p9199_p0 }
 0x2e0   :  { %9207 = shalt.err (!%p9204_p2)
}
 0x2e1   :  { %s9208_s16 = scalar_lea.vmem %s487_s15, 16  ;;  %s9212_s30 = scalar_lea.vmem %s487_s15, 32 }
 0x2e2   :  { %p9209_p3 = scmp.ne.s32.totalorder %s487_s15, %s9208_s16  ;;  %p9213_p4 = scmp.lt.s32.totalorder %s487_s15, %s487_s15 }
 0x2e3   :  { %p9214_p5 = scmp.lt.s32.totalorder %s9212_s30, %s9208_s16 }
 0x2e5   :  { %p9215_p6 = por %p9214_p5, %p9213_p4 }
 0x2e7   :  { %p9216_p7 = pnand %p9215_p6, %p9209_p3 }
 0x2e9   :  { %9219 = shalt.err (!%p9216_p7)
}
 0x2ea   :  { %489 = dma.hbm_to_vmem [thread:$0]  %s9565_s12, 16, %s487_s15, [#allocation54]  }
 0x2eb   :  { %s9382_s24 = smov [#allocation58]   ;;  %s9220_s23 = scalar_lea.hbm %s9575_s27, 16 }
 0x2ec   :  { %s508_s19 = sshll.u32 %s9382_s24, 4  ;;  %p9221_p8 = scmp.ne.s32.totalorder %s9575_s27, %s9220_s23  ;;  %s509_s19 = int_to_ptr.vmem [resolvable:$true] %s508_s19 }
 0x2ed   :  { %p9224_p9 = scmp.lt.u32.totalorder %s9220_s23, %s9575_s27 }
 0x2ef   :  { %p9226_p10 = pnand %p9224_p9, %p9221_p8 }
 0x2f1   :  { %9229 = shalt.err (!%p9226_p10)
}
 0x2f2   :  { %s9230_s6 = scalar_lea.vmem %s509_s19, 16  ;;  %s9234_s26 = scalar_lea.vmem %s509_s19, 32 }
 0x2f3   :  { %p9231_p11 = scmp.ne.s32.totalorder %s509_s19, %s9230_s6  ;;  %p9235_p12 = scmp.lt.s32.totalorder %s509_s19, %s509_s19 }
 0x2f4   :  { %p9236_p13 = scmp.lt.s32.totalorder %s9234_s26, %s9230_s6 }
 0x2f6   :  { %p9237_p0 = por %p9236_p13, %p9235_p12 }
 0x2f8   :  { %p9238_p1 = pnand %p9237_p0, %p9231_p11 }
 0x2fa   :  { %9241 = shalt.err (!%p9238_p1)
}
 0x2fb   :  { %511 = dma.hbm_to_vmem [thread:$0]  %s9575_s27, 16, %s509_s19, [#allocation57]  }
 0x2fc   :  { %9264 = dma.done.wait [#allocation3], 256  }
 0x2fd   :  { %9265 = vsyncadd [#allocation3], 4294967040 }
 0x2fe   :  { %9266 = dma.done.wait [#allocation6], 384  }
 0x2ff   :  { %9267 = vsyncadd [#allocation6], 4294966912 }
 0x300   :  { %9268 = dma.done.wait [#allocation9], 768  }
 0x301   :  { %9269 = vsyncadd [#allocation9], 4294966528 }
 0x302   :  { %9270 = dma.done.wait [#allocation12], 768  }
 0x303   :  { %9271 = vsyncadd [#allocation12], 4294966528 }
 0x304   :  { %9272 = dma.done.wait [#allocation15], 768  }
 0x305   :  { %9273 = vsyncadd [#allocation15], 4294966528 }
 0x306   :  { %9274 = dma.done.wait [#allocation18], 272  }
 0x307   :  { %9275 = vsyncadd [#allocation18], 4294967024 }
 0x308   :  { %9276 = dma.done.wait [#allocation21], 32  }
 0x309   :  { %9277 = vsyncadd [#allocation21], 4294967264 }
 0x30a   :  { %9278 = dma.done.wait [#allocation24], 4352  }
 0x30b   :  { %9279 = vsyncadd [#allocation24], 4294962944 }
 0x30c   :  { %9280 = dma.done.wait [#allocation27], 16400  }
 0x30d   :  { %9281 = vsyncadd [#allocation27], 4294950896 }
 0x30e   :  { %9282 = dma.done.wait [#allocation30], 32  }
 0x30f   :  { %9283 = vsyncadd [#allocation30], 4294967264 }
 0x310   :  { %9284 = dma.done.wait [#allocation33], 768  }
 0x311   :  { %9285 = vsyncadd [#allocation33], 4294966528 }
 0x312   :  { %9286 = dma.done.wait [#allocation36], 768  }
 0x313   :  { %9287 = vsyncadd [#allocation36], 4294966528 }
 0x314   :  { %9288 = dma.done.wait [#allocation39], 768  }
 0x315   :  { %9289 = vsyncadd [#allocation39], 4294966528 }
 0x316   :  { %9290 = dma.done.wait [#allocation42], 272  }
 0x317   :  { %9291 = vsyncadd [#allocation42], 4294967024 }
 0x318   :  { %9292 = dma.done.wait [#allocation45], 32  }
 0x319   :  { %9293 = vsyncadd [#allocation45], 4294967264 }
 0x31a   :  { %9294 = dma.done.wait [#allocation48], 4352  }
 0x31b   :  { %9295 = vsyncadd [#allocation48], 4294962944 }
 0x31c   :  { %9296 = dma.done.wait [#allocation51], 16400  }
 0x31d   :  { %9297 = vsyncadd [#allocation51], 4294950896 }
 0x31e   :  { %9298 = dma.done.wait [#allocation54], 32  }
 0x31f   :  { %9299 = vsyncadd [#allocation54], 4294967264 }
 0x320   :  { %9300 = dma.done.wait [#allocation57], 272  }
 0x321   :  { %9301 = vsyncadd [#allocation57], 4294967024  ;;  %v9383_v0 = vmov 0   ;;  %v624_v1 = vld [vmem:[#allocation2] sm:$0xff]  ;;  %v625_v2 = vld [vmem:[#allocation2 + $0x8] sm:$0xff]  ;;  %vm670_vm0 = vcmask 261120  }
 0x322   :  { %8022 = vset.pattern.permute.xlu0 %v9383_v0  ;;  %8023 = vset.pattern.permute.xlu1 %v9383_v0  ;;  %v626_v3 = vld [vmem:[#allocation7] sm:$0xff]  ;;  %v8072_v6 = vld [vmem:[#allocation8] sm:$0xff]   ;;  %v8073_v7 = vld [vmem:[#allocation11] sm:$0xff]   ;;  %v9384_v20 = vmov 0.0   ;;  %vm1055_vm1 = vcmask 1043456   ;;  %vm9385_vm2 = vmmov 0  }
 0x323   :  { %v9809_v4 = vadd.f32 %v626_v3, %v624_v1  ;;  %v9811_v5 = vadd.f32 %v626_v3, %v625_v2  ;;  %7779 = vmatprep.mubr.msk.bf16.mxu0 %vm670_vm0, %v8072_v6  ;;  %7785 = vmatprep.mubr.msk.bf16.mxu1 %vm670_vm0, %v8073_v7  ;;  %v636_v10 = vld [vmem:[#allocation10] sm:$0xff]  ;;  %v638_v11 = vld [vmem:[#allocation10 + $0x10] sm:$0xff]  ;;  %v8074_v12 = vld [vmem:[#allocation8 + $0x8] sm:$0xff]   ;;  %vm1051_vm3 = vcmask 64512   ;;  %vm1241_vm4 = vcmask 130048   ;;  %s9386_s12 = smov [#allocation59]  }
 0x324   :  { %v8075_v13 = vld [vmem:[#allocation11 + $0x8] sm:$0xff]   ;;  %642 = vperm.xlu0 %8022, %v636_v10   ;;  %652 = vperm.xlu1 %8023, %v638_v11   ;;  %v639_v15 = vld [vmem:[#allocation10 + $0x18] sm:$0xff]  ;;  %v733_v16 = vld [vmem:[#allocation13] sm:$0xff]  ;;  %s6901_s27 = sshll.u32 %s9386_s12, 4  ;;  %s6902_s27 = int_to_ptr.vmem [resolvable:$true] %s6901_s27 }
 0x325   :  { %v631_v8 = vpack.c.bf16 %v9811_v5, %v9809_v4  ;;  %v637_v14 = vld [vmem:[#allocation10 + $0x8] sm:$0xff]  ;;  %v734_v17 = vld [vmem:[#allocation13 + $0x8] sm:$0xff]  ;;  %v735_v18 = vld [vmem:[#allocation13 + $0x10] sm:$0xff]  ;;  %s9242_s1 = scalar_lea.vmem %s6902_s27, 256  ;;  %p9247_p3 = scmp.lt.s32.totalorder %s6902_s27, %s6902_s27 }
 0x326   :  { %v736_v19 = vld [vmem:[#allocation13 + $0x18] sm:$0xff]  ;;  %v8076_v21 = vld [vmem:[#allocation14] sm:$0xff]   ;;  %v8077_v22 = vld [vmem:[#allocation14 + $0x8] sm:$0xff]   ;;  %p9243_p2 = scmp.ne.s32.totalorder %s6902_s27, %s9242_s1  ;;  %p9248_p4 = scmp.lt.s32.totalorder %s9242_s1, %s9242_s1 }
 0x327   :  { %7933 = vmatprep.subr.msk.bf16.mxu0 %vm670_vm0, %v631_v8  ;;  %7934 = vmatprep.subr.msk.bf16.mxu1 %vm670_vm0, %v631_v8  ;;  %v678_v9 = vsel %vm670_vm0, %v631_v8, 0 }
 0x328   :  { %7778 = vmatpush3.bf16.xpose.msra.mxu0 %v678_v9  ;;  %7784 = vmatpush3.bf16.xpose.msra.mxu1 %v678_v9  ;;  %p9249_p5 = por %p9248_p4, %p9247_p3 }
 0x329   :  { %7935 = vmatprep.subr.msk.bf16.mxu0 %vm670_vm0, %v631_v8  ;;  %647 = vperm.xlu0 %8022, %v637_v14  }
 0x32a   :  { %657 = vperm.xlu1 %8023, %v639_v15   ;;  %7795 = vmatprep.subr.bf16.mxu1 %v9384_v20  ;;  %p9250_p6 = pnand %p9249_p5, %p9243_p2 }
 0x32d   :  { %739 = vperm.xlu0 %8022, %v733_v16   ;;  %v629_v16 = vld [vmem:[#allocation5] sm:$0xff] }
 0x32e   :  { %744 = vperm.xlu1 %8023, %v734_v17  }
 0x32f   :  { %7780 = vmatmul.mubr.msk.bf16.vlgmr.msra.gmra.mrb[0].mxu0 %vm670_vm0, %v8074_v12  ;;  %7786 = vmatmul.mubr.msk.bf16.vlgmr.msra.gmra.mrb[0].mxu1 %vm670_vm0, %v8075_v13 }
 0x330   :  { %7790 = vmatpush3.bf16.xpose.msra.mxu0 %v678_v9  ;;  %7791 = vmatprep.mubr.msk.bf16.mxu0 %vm670_vm0, %v8076_v21 }
 0x331   :  { %749 = vperm.xlu0 %8022, %v735_v18   ;;  %7801 = vmatprep.subr.bf16.mxu0 %v9384_v20 }
 0x332   :  { %754 = vperm.xlu1 %8023, %v736_v19   ;;  %7797 = vmatprep.mubr.msk.bf16.mxu1 %vm9385_vm2, %v9384_v20  ;;  %v630_v19 = vld [vmem:[#allocation5 + $0x8] sm:$0xff] }
 0x337   :  { %7792 = vmatmul.mubr.msk.bf16.vlgmr.msra.gmra.mrb[4].mxu0 %vm670_vm0, %v8077_v22 }
 0x338   :  { %7803 = vmatprep.mubr.msk.bf16.mxu0 %vm9385_vm2, %v9384_v20 }
 0x3a3   :  { %v643_v23 = vpop.permute.xlu0 %642  ;;  %v653_v24 = vpop.permute.xlu1 %652 }
 0x3a8   :  { %v648_v25 = vpop.permute.xlu0 %647 }
 0x3a9   :  { %v658_v26 = vpop.permute.xlu1 %657 }
 0x3ac   :  { %v740_v27 = vpop.permute.xlu0 %739 }
 0x3ad   :  { %v745_v28 = vpop.permute.xlu1 %744 }
 0x3b0   :  { %v750_v54 = vpop.permute.xlu0 %749 }
 0x3b1   :  { %v755_v53 = vpop.permute.xlu1 %754 }
 0x402   :  { %v7781_v29 = vpop.f32.mrb[0].mxu0  ;;  %v7787_v30 = vpop.f32.mrb[0].mxu1 }
 0x403   :  { %v714_v31 = vpop.f32.mrb[1].mxu0  ;;  %v807_v32 = vpop.f32.mrb[1].mxu1  ;;  %v723_v36 = vadd.f32 %v7781_v29, %v653_v24  ;;  %v816_v55 = vadd.f32 %v7787_v30, %v750_v54 }
 0x404   :  { %v808_v33 = vadd.f32 %v807_v32, %v740_v27  ;;  %v7782_v34 = vpop.f32.mrb[2].mxu0  ;;  %v7788_v35 = vpop.f32.mrb[2].mxu1  ;;  %v715_v40 = vadd.f32 %v714_v31, %v643_v23 }
 0x405   :  { %v726_v37 = vadd.f32 %v7782_v34, %v658_v26  ;;  %v717_v38 = vpop.f32.mrb[3].mxu0  ;;  %v810_v39 = vpop.f32.mrb[3].mxu1  ;;  %v819_v56 = vadd.f32 %v7788_v35, %v755_v53  ;;  %v1049_v59 = vpack.c.bf16 %v816_v55, %v816_v55  ;;  %v826_v55 = vld [vmem:[#allocation16] sm:$0xff] }
 0x406   :  { %v1047_v41 = vpack.c.bf16 %v808_v33, %v808_v33  ;;  %v718_v42 = vadd.f32 %v717_v38, %v648_v25  ;;  %v811_v43 = vadd.f32 %v810_v39, %v745_v28 }
 0x407   :  { %v8036_v44 = vpack.i.bf16 %v726_v37, %v723_v36  ;;  %v1050_v60 = vpack.c.bf16 %v819_v56, %v819_v56  ;;  %v1151_v8 = vsel %vm1055_vm1, %v1049_v59, 0 }
 0x408   :  { %v1057_v45 = vsel %vm1055_vm1, %v1047_v41, 0  ;;  %v8024_v46 = vpack.i.bf16 %v718_v42, %v715_v40  ;;  %v1048_v47 = vpack.c.bf16 %v811_v43, %v811_v43 }
 0x409   :  { %7796 = vmatpush3.bf16.msra.mxu1 %v1057_v45  ;;  %8037 = vxpose.xlu1.b32.start.end [1/1] (short) (narrow) %v8036_v44, 16  ;;  %v1198_v9 = vsel %vm1055_vm1, %v1050_v60, 0 }
 0x40a   :  { %8025 = vxpose.xlu0.b32.start.end [1/1] (short) (narrow) %v8024_v46, 16  ;;  %v1104_v48 = vsel %vm1055_vm1, %v1048_v47, 0  ;;  %7807 = vmatprep.subr.bf16.mxu1 %v9384_v20  ;;  %v9835_v49 = vpop.f32.mrb[4].mxu0 }
 0x40b   :  { %7802 = vmatpush3.bf16.msra.mxu0 %v1104_v48  ;;  %v9837_v50 = vpop.f32.mrb[5].mxu0 }
 0x40c   :  { %7813 = vmatprep.subr.bf16.mxu0 %v9384_v20  ;;  %v9839_v51 = vpop.f32.mrb[6].mxu0 }
 0x40d   :  { %v9841_v52 = vpop.f32.mrb[7].mxu0 }
 0x489   :  { %v8038_v57 = vpop.trf.xlu1 }
 0x48a   :  { %v8026_v58 = vpop.trf.xlu0  ;;  %v8042_v10 = vunpack.i.h.bf16 %v8038_v57  ;;  %v8039_v11 = vunpack.i.l.bf16 %v8038_v57 }
 0x48b   :  { %v8030_v62 = vunpack.i.h.bf16 %v8026_v58  ;;  %v8027_v63 = vunpack.i.l.bf16 %v8026_v58 }
 0x48d   :  { %v8043_v61 = vpop.trf.xlu1 }
 0x48e   :  { %v8031_v1 = vpop.trf.xlu0  ;;  %v8047_v12 = vunpack.i.h.bf16 %v8043_v61  ;;  %v8044_v13 = vunpack.i.l.bf16 %v8043_v61 }
 0x48f   :  { %v8035_v2 = vunpack.i.h.bf16 %v8031_v1  ;;  %v8032_v3 = vunpack.i.l.bf16 %v8031_v1 }
 0x490   :  { %v1045_v14 = vpack.c.bf16 %v8044_v13, %v8039_v11  ;;  %v1046_v15 = vpack.c.bf16 %v8047_v12, %v8042_v10 }
 0x491   :  { %v1043_v6 = vpack.c.bf16 %v8032_v3, %v8027_v63  ;;  %v1044_v7 = vpack.c.bf16 %v8035_v2, %v8030_v62 }
 0x493   :  { %7798 = vmatmul.mubr.msk.bf16.vlgmr.msra.gmra.mrb[4].mxu1 %vm1051_vm3, %v1043_v6  ;;  %7804 = vmatmul.mubr.msk.bf16.vlgmr.msra.gmra.mrb[8].mxu0 %vm1051_vm3, %v1044_v7 }
 0x494   :  { %7808 = vmatpush3.bf16.msra.mxu1 %v1151_v8  ;;  %7814 = vmatpush3.bf16.msra.mxu0 %v1198_v9 }
 0x495   :  { %7809 = vmatprep.mubr.msk.bf16.mxu1 %vm9385_vm2, %v9384_v20  ;;  %7815 = vmatprep.mubr.msk.bf16.mxu0 %vm9385_vm2, %v9384_v20 }
 0x496   :  { %7819 = vmatprep.subr.bf16.mxu1 %v9384_v20  ;;  %7825 = vmatprep.subr.bf16.mxu0 %v9384_v20 }
 0x49b   :  { %7810 = vmatmul.mubr.msk.bf16.vlgmr.msra.gmra.mrb[8].mxu1 %vm1051_vm3, %v1045_v14  ;;  %7816 = vmatmul.mubr.msk.bf16.vlgmr.msra.gmra.mrb[12].mxu0 %vm1051_vm3, %v1046_v15 }
 0x49c   :  { %7821 = vmatprep.mubr.msk.bf16.mxu1 %vm9385_vm2, %v9384_v20  ;;  %7827 = vmatprep.mubr.msk.bf16.mxu0 %vm9385_vm2, %v9384_v20 }
 0x566   :  { %v1093_v17 = vpop.f32.mrb[4].mxu1  ;;  %v1140_v18 = vpop.f32.mrb[8].mxu0 }
 0x567   :  { %v1094_v21 = vadd.f32 %v1093_v17, %v629_v16  ;;  %v7799_v22 = vpop.f32.mrb[5].mxu1  ;;  %v7805_v23 = vpop.f32.mrb[9].mxu0  ;;  %v1141_v26 = vadd.f32 %v1140_v18, %v629_v16 }
 0x568   :  { %v1096_v24 = vpop.f32.mrb[6].mxu1  ;;  %v1143_v25 = vpop.f32.mrb[10].mxu0 }
 0x569   :  { %v1097_v27 = vadd.f32 %v1096_v24, %v630_v19  ;;  %v7800_v28 = vpop.f32.mrb[7].mxu1  ;;  %v7806_v29 = vpop.f32.mrb[11].mxu0  ;;  %v1242_v30 = vsel %vm1241_vm4, %v1094_v21, -inf  ;;  %v1144_v32 = vadd.f32 %v1143_v25, %v630_v19  ;;  %v1248_v33 = vsel %vm1241_vm4, %v1141_v26, -inf }
 0x56a   :  { %1243 = vmax.xlane.f32.xlu0 %v1242_v30 }
 0x56b   :  { %v1245_v31 = vsel %vm1241_vm4, %v1097_v27, -inf  ;;  %v1251_v45 = vsel %vm1241_vm4, %v1144_v32, -inf }
 0x56c   :  { %1246 = vmax.xlane.f32.xlu1 %v1245_v31 }
 0x56e   :  { %v1234_v34 = vpop.f32.mrb[12].mxu0  ;;  %1249 = vmax.xlane.f32.xlu0 %v1248_v33  ;;  %v1187_v35 = vpop.f32.mrb[8].mxu1 }
 0x56f   :  { %v1188_v36 = vadd.f32 %v1187_v35, %v629_v16  ;;  %v7811_v37 = vpop.f32.mrb[9].mxu1  ;;  %v7817_v38 = vpop.f32.mrb[13].mxu0  ;;  %v1235_v41 = vadd.f32 %v1234_v34, %v629_v16 }
 0x570   :  { %v1190_v39 = vpop.f32.mrb[10].mxu1  ;;  %v1237_v40 = vpop.f32.mrb[14].mxu0  ;;  %v829_v37 = vld [vmem:[#allocation16 + $0x18] sm:$0xff]  ;;  %v827_v38 = vld [vmem:[#allocation16 + $0x8] sm:$0xff] }
 0x571   :  { %v1191_v42 = vadd.f32 %v1190_v39, %v630_v19  ;;  %v7812_v43 = vpop.f32.mrb[11].mxu1  ;;  %v7818_v44 = vpop.f32.mrb[15].mxu0  ;;  %v1254_v46 = vsel %vm1241_vm4, %v1188_v36, -inf  ;;  %v1238_v47 = vadd.f32 %v1237_v40, %v630_v19  ;;  %v1260_v48 = vsel %vm1241_vm4, %v1235_v41, -inf }
 0x572   :  { %1252 = vmax.xlane.f32.xlu0 %v1251_v45  ;;  %1255 = vmax.xlane.f32.xlu1 %v1254_v46 }
 0x573   :  { %v1257_v53 = vsel %vm1241_vm4, %v1191_v42, -inf  ;;  %v1263_v54 = vsel %vm1241_vm4, %v1238_v47, -inf }
 0x576   :  { %1261 = vmax.xlane.f32.xlu1 %v1260_v48  ;;  %1258 = vmax.xlane.f32.xlu0 %v1257_v53 }
 0x57a   :  { %1264 = vmax.xlane.f32.xlu0 %v1263_v54 }
 0x587   :  { %832 = vperm.xlu1 %8023, %v826_v55  }
 0x5f7   :  { %v1244_v56 = vpop.xlane.xlu0 %1243 }
 0x5f8   :  { %v1266_v57 = vsub.f32 %v1094_v21, %v1244_v56 }
 0x5f9   :  { %v1247_v58 = vpop.xlane.xlu1 %1246 }
 0x5fa   :  { %v1274_v59 = vmul.f32 1.442695, %v1266_v57  ;;  %v1267_v60 = vsub.f32 %v1097_v27, %v1247_v58 }
 0x5fb   :  { %v1250_v61 = vpop.xlane.xlu0 %1249 }
 0x5fc   :  { %8346 = vpow2.f32 %v1274_v59  ;;  %v1276_v62 = vmul.f32 1.442695, %v1267_v60  ;;  %v1268_v63 = vsub.f32 %v1141_v26, %v1250_v61 }
 0x5fe   :  { %8348 = vpow2.f32 %v1276_v62  ;;  %v1278_v1 = vmul.f32 1.442695, %v1268_v63 }
 0x5ff   :  { %v1253_v2 = vpop.xlane.xlu0 %1252  ;;  %v1256_v3 = vpop.xlane.xlu1 %1255 }
 0x600   :  { %8350 = vpow2.f32 %v1278_v1  ;;  %v1269_v6 = vsub.f32 %v1144_v32, %v1253_v2  ;;  %v1270_v7 = vsub.f32 %v1188_v36, %v1256_v3  ;;  %v828_v36 = vld [vmem:[#allocation16 + $0x10] sm:$0xff] }
 0x602   :  { %v1280_v8 = vmul.f32 1.442695, %v1269_v6  ;;  %v1282_v9 = vmul.f32 1.442695, %v1270_v7 }
 0x603   :  { %v1262_v10 = vpop.xlane.xlu1 %1261  ;;  %v1259_v11 = vpop.xlane.xlu0 %1258 }
 0x604   :  { %8352 = vpow2.f32 %v1280_v8  ;;  %v1272_v12 = vsub.f32 %v1235_v41, %v1262_v10  ;;  %v1271_v13 = vsub.f32 %v1191_v42, %v1259_v11 }
 0x605   :  { %8354 = vpow2.f32 %v1282_v9 }
 0x606   :  { %v8347_v14 = vpop.eup %8346  ;;  %v1286_v15 = vmul.f32 1.442695, %v1272_v12  ;;  %v1284_v16 = vmul.f32 1.442695, %v1271_v13 }
 0x607   :  { %v1265_v17 = vpop.xlane.xlu0 %1264  ;;  %v1290_v18 = vsel %vm1241_vm4, %v8347_v14, 0.0  ;;  %v833_v39 = vpop.permute.xlu1 %832 }
 0x608   :  { %v8349_v19 = vpop.eup %8348  ;;  %8356 = vpow2.f32 %v1286_v15  ;;  %v1273_v21 = vsub.f32 %v1238_v47, %v1265_v17  ;;  %1291 = vadd.xlane.f32.xlu1 %v1290_v18  ;;  %v901_v60 = vadd.f32 %v9837_v50, %v833_v39 }
 0x609   :  { %8358 = vpow2.f32 %v1284_v16  ;;  %v1293_v22 = vsel %vm1241_vm4, %v8349_v19, 0.0 }
 0x60a   :  { %v8351_v23 = vpop.eup %8350  ;;  %v1288_v24 = vmul.f32 1.442695, %v1273_v21  ;;  %1294 = vadd.xlane.f32.xlu0 %v1293_v22  ;;  %v1330_v2 = vpack.c.bf16 %v901_v60, %v901_v60 }
 0x60b   :  { %v1296_v25 = vsel %vm1241_vm4, %v8351_v23, 0.0 }
 0x60c   :  { %8360 = vpow2.f32 %v1288_v24  ;;  %1297 = vadd.xlane.f32.xlu1 %v1296_v25  ;;  %v8079_v25 = vld [vmem:[#allocation17 + $0x8] sm:$0xff]  }
 0x60e   :  { %v8353_v26 = vpop.eup %8352 }
 0x60f   :  { %v8355_v27 = vpop.eup %8354  ;;  %v1299_v28 = vsel %vm1241_vm4, %v8353_v26, 0.0 }
 0x610   :  { %v1302_v29 = vsel %vm1241_vm4, %v8355_v27, 0.0  ;;  %1300 = vadd.xlane.f32.xlu0 %v1299_v28 }
 0x611   :  { %1303 = vadd.xlane.f32.xlu1 %v1302_v29 }
 0x612   :  { %v8357_v30 = vpop.eup %8356 }
 0x613   :  { %v8359_v31 = vpop.eup %8358  ;;  %v1308_v32 = vsel %vm1241_vm4, %v8357_v30, 0.0 }
 0x614   :  { %v1305_v33 = vsel %vm1241_vm4, %v8359_v31, 0.0 }
 0x615   :  { %1309 = vadd.xlane.f32.xlu1 %v1308_v32  ;;  %1306 = vadd.xlane.f32.xlu0 %v1305_v33 }
 0x616   :  { %v8361_v34 = vpop.eup %8360 }
 0x617   :  { %v1311_v35 = vsel %vm1241_vm4, %v8361_v34, 0.0 }
 0x619   :  { %1312 = vadd.xlane.f32.xlu0 %v1311_v35 }
 0x626   :  { %842 = vperm.xlu1 %8023, %v828_v36  }
 0x62a   :  { %847 = vperm.xlu1 %8023, %v829_v37  }
 0x62f   :  { %837 = vperm.xlu0 %8022, %v827_v38  }
 0x695   :  { %v1292_v40 = vpop.xlane.xlu1 %1291 }
 0x696   :  { %8362 = vrcp.f32 %v1292_v40 }
 0x697   :  { %v1295_v41 = vpop.xlane.xlu0 %1294 }
 0x698   :  { %8364 = vrcp.f32 %v1295_v41 }
 0x699   :  { %v1298_v42 = vpop.xlane.xlu1 %1297 }
 0x69a   :  { %8366 = vrcp.f32 %v1298_v42 }
 0x69d   :  { %v1301_v43 = vpop.xlane.xlu0 %1300 }
 0x69e   :  { %v1304_v44 = vpop.xlane.xlu1 %1303  ;;  %8368 = vrcp.f32 %v1301_v43 }
 0x69f   :  { %8370 = vrcp.f32 %v1304_v44  ;;  %v6988_v44 = vld [vmem:[#allocation19] ss:$0 sm:$0xff] }
 0x6a0   :  { %v8363_v45 = vpop.eup %8362 }
 0x6a1   :  { %v1322_v53 = vmul.f32 %v8363_v45, %v8347_v14 }
 0x6a2   :  { %v8365_v46 = vpop.eup %8364  ;;  %v1310_v47 = vpop.xlane.xlu1 %1309 }
 0x6a3   :  { %v1307_v48 = vpop.xlane.xlu0 %1306  ;;  %v1323_v54 = vmul.f32 %v8365_v46, %v8349_v19 }
 0x6a4   :  { %8372 = vrcp.f32 %v1307_v48  ;;  %v8367_v56 = vpop.eup %8366 }
 0x6a5   :  { %8374 = vrcp.f32 %v1310_v47  ;;  %v1334_v55 = vpack.c.bf16 %v1323_v54, %v1322_v53  ;;  %v1324_v61 = vmul.f32 %v8367_v56, %v8351_v23 }
 0x6a6   :  { %v843_v9 = vpop.permute.xlu1 %842 }
 0x6a7   :  { %v1313_v57 = vpop.xlane.xlu0 %1312  ;;  %v1342_v58 = vsel %vm1241_vm4, %v1334_v55, 0 }
 0x6a8   :  { %8376 = vrcp.f32 %v1313_v57  ;;  %v8369_v59 = vpop.eup %8368  ;;  %7820 = vmatpush3.bf16.xpose.msra.mxu1 %v1342_v58 }
 0x6a9   :  { %v1325_v62 = vmul.f32 %v8369_v59, %v8353_v26  ;;  %7831 = vmatprep.subr.bf16.mxu1 %v9384_v20  ;;  %v8371_v1 = vpop.eup %8370 }
 0x6aa   :  { %v1326_v11 = vmul.f32 %v8371_v1, %v8355_v27  ;;  %v848_v19 = vpop.permute.xlu1 %847 }
 0x6ab   :  { %v1335_v63 = vpack.c.bf16 %v1325_v62, %v1324_v61  ;;  %v912_v22 = vadd.f32 %v9839_v51, %v848_v19 }
 0x6ad   :  { %v1388_v3 = vsel %vm1241_vm4, %v1335_v63, 0  ;;  %v1333_v24 = vpack.c.bf16 %v912_v22, %v912_v22  ;;  %v1665_v22 = vld [vmem:[#allocation23 + $0x50] sm:$0xff] }
 0x6ae   :  { %v8373_v6 = vpop.eup %8372  ;;  %v838_v7 = vpop.permute.xlu0 %837  ;;  %7826 = vmatpush3.bf16.xpose.msra.mxu0 %v1388_v3 }
 0x6af   :  { %v8375_v8 = vpop.eup %8374  ;;  %v904_v10 = vadd.f32 %v9841_v52, %v838_v7  ;;  %7822 = vmatmul.mubr.msk.bf16.vlgmr.msra.gmra.mrb[12].mxu1 %vm1241_vm4, %v1330_v2  ;;  %v1327_v50 = vmul.f32 %v8373_v6, %v8359_v31  ;;  %7837 = vmatprep.subr.bf16.mxu0 %v9384_v20  ;;  %v909_v52 = vadd.f32 %v9835_v49, %v843_v9  ;;  %v8078_v49 = vld [vmem:[#allocation17] sm:$0xff]   ;;  %v1655_v7 = vld [vmem:[#allocation23] sm:$0xff] }
 0x6b0   :  { %7833 = vmatprep.mubr.msk.bf16.mxu1 %vm9385_vm2, %v9384_v20  ;;  %v1328_v14 = vmul.f32 %v8375_v8, %v8357_v30  ;;  %v1656_v8 = vld [vmem:[#allocation23 + $0x8] sm:$0xff] }
 0x6b1   :  { %v1336_v13 = vpack.c.bf16 %v1327_v50, %v1326_v11  ;;  %v1331_v16 = vpack.c.bf16 %v904_v10, %v904_v10  ;;  %v1332_v23 = vpack.c.bf16 %v909_v52, %v909_v52  ;;  %v1664_v10 = vld [vmem:[#allocation23 + $0x48] sm:$0xff] }
 0x6b2   :  { %v8377_v12 = vpop.eup %8376  ;;  %v6996_v50 = vcombine.low %v1656_v8, %v1664_v10 }
 0x6b3   :  { %v1329_v15 = vmul.f32 %v8377_v12, %v8361_v34  ;;  %v1434_v17 = vsel %vm1241_vm4, %v1336_v13, 0  ;;  %v6997_v12 = vcombine.high %v1656_v8, %v1664_v10  ;;  %v1671_v13 = vld [vmem:[#allocation23 + $0x80] sm:$0xff]  ;;  %v1669_v8 = vld [vmem:[#allocation23 + $0x70] sm:$0xff]  ;;  %v1670_v10 = vld [vmem:[#allocation23 + $0x78] sm:$0xff] }
 0x6b4   :  { %7832 = vmatpush3.bf16.xpose.msra.mxu1 %v1434_v17  ;;  %v1680_v17 = vld [vmem:[#allocation23 + $0xc8] sm:$0xff] }
 0x6b5   :  { %v1337_v18 = vpack.c.bf16 %v1329_v15, %v1328_v14  ;;  %7828 = vmatmul.mubr.msk.bf16.vlgmr.msra.gmra.mrb[16].mxu0 %vm1241_vm4, %v1331_v16  ;;  %7843 = vmatprep.subr.bf16.mxu1 %v9384_v20  ;;  %v1679_v14 = vld [vmem:[#allocation23 + $0xc0] sm:$0xff]  ;;  %v1672_v15 = vld [vmem:[#allocation23 + $0x88] sm:$0xff] }
 0x6b6   :  { %7839 = vmatprep.mubr.msk.bf16.mxu0 %vm9385_vm2, %v9384_v20  ;;  %v7011_v16 = vcombine.high %v1671_v13, %v1679_v14  ;;  %v7012_v52 = vcombine.low %v1672_v15, %v1680_v17  ;;  %v7013_v19 = vcombine.high %v1672_v15, %v1680_v17  ;;  %v1685_v15 = vld [vmem:[#allocation23 + $0xf0] sm:$0xff]  ;;  %v1686_v17 = vld [vmem:[#allocation23 + $0xf8] sm:$0xff] }
 0x6b7   :  { %v1480_v21 = vsel %vm1241_vm4, %v1337_v18, 0  ;;  %v7010_v18 = vcombine.low %v1671_v13, %v1679_v14  ;;  %v1677_v14 = vld [vmem:[#allocation23 + $0xb0] sm:$0xff] }
 0x6b8   :  { %7838 = vmatpush3.bf16.xpose.msra.mxu0 %v1480_v21  ;;  %v1657_v21 = vld [vmem:[#allocation23 + $0x10] sm:$0xff] }
 0x6bb   :  { %7834 = vmatmul.mubr.msk.bf16.vlgmr.msra.gmra.mrb[16].mxu1 %vm1241_vm4, %v1332_v23  ;;  %v1658_v23 = vld [vmem:[#allocation23 + $0x18] sm:$0xff] }
 0x6bc   :  { %7847 = vmatprep.mubr.msk.bf16.mxu1 %vm9385_vm2, %v9384_v20  ;;  %7844 = vmatpush3.bf16.msra.mxu1 %v8078_v49  ;;  %v1666_v49 = vld [vmem:[#allocation23 + $0x58] sm:$0xff] }
 0x6bd   :  { %7845 = vmatprep.subr.bf16.mxu1 %v9384_v20 }
 0x6bf   :  { %7840 = vmatmul.mubr.msk.bf16.vlgmr.msra.gmra.mrb[20].mxu0 %vm1241_vm4, %v1333_v24  ;;  %v6999_v24 = vcombine.high %v1657_v21, %v1665_v22 }
 0x6c0   :  { %1966 = vmatprep.mubr.bf16.mxu0 %v9383_v0  ;;  %7846 = vmatpush3.bf16.msra.mxu1 %v8079_v25  ;;  %v6998_v25 = vcombine.low %v1657_v21, %v1665_v22  ;;  %v7022_v22 = vcombine.low %v1677_v14, %v1685_v15 }
 0x6c1   :  { %1977 = vmatprep.subr.bf16.mxu1 %v6997_v12 }
 0x782   :  { %v1378_v26 = vpop.f32.mrb[12].mxu1 }
 0x783   :  { %v7823_v27 = vpop.f32.mrb[13].mxu1 }
 0x784   :  { %v1381_v51 = vpop.f32.mrb[14].mxu1  ;;  %v7001_v27 = vcombine.high %v1658_v23, %v1666_v49 }
 0x785   :  { %v7824_v28 = vpop.f32.mrb[15].mxu1 }
 0x788   :  { %v1424_v29 = vpop.f32.mrb[16].mxu0 }
 0x789   :  { %v1522_v30 = vpack.c.bf16 %v1424_v29, %v1378_v26  ;;  %v7829_v31 = vpop.f32.mrb[17].mxu0  ;;  %v7000_v26 = vcombine.low %v1658_v23, %v1666_v49  ;;  %v8081_v49 = vld [vmem:[#allocation26 + $0xc0] sm:$0xff]  }
 0x78a   :  { %v1427_v32 = vpop.f32.mrb[18].mxu0 }
 0x78b   :  { %v7830_v33 = vpop.f32.mrb[19].mxu0  ;;  %1535 = vxpose.xlu0.c.b16.start [1/2] (short) (narrow) %v1522_v30, 16 }
 0x78e   :  { %v1470_v34 = vpop.f32.mrb[16].mxu1 }
 0x78f   :  { %v7835_v35 = vpop.f32.mrb[17].mxu1 }
 0x790   :  { %v1473_v36 = vpop.f32.mrb[18].mxu1  ;;  %v6992_v35 = vld [vmem:[#allocation20] ss:$0 sm:$0xff] }
 0x791   :  { %v7836_v37 = vpop.f32.mrb[19].mxu1 }
 0x792   :  { %v1516_v38 = vpop.f32.mrb[20].mxu0 }
 0x793   :  { %v1523_v39 = vpack.c.bf16 %v1516_v38, %v1470_v34  ;;  %v7841_v40 = vpop.f32.mrb[21].mxu0 }
 0x794   :  { %v1519_v41 = vpop.f32.mrb[22].mxu0 }
 0x795   :  { %v7842_v42 = vpop.f32.mrb[23].mxu0  ;;  %1536 = vxpose.xlu0.c.b16.end [2/2] (short) (narrow) %v1523_v39, 16  ;;  %v6993_v39 = vld [vmem:[#allocation22] ss:$0 sm:$0xff]  ;;  %v1673_v41 = vld [vmem:[#allocation23 + $0x90] sm:$0xff] }
 0x796   :  { %v1681_v42 = vld [vmem:[#allocation23 + $0xd0] sm:$0xff] }
 0x7f7   :  { %v1543_v43 = vpop.trf.xlu0 }
 0x7f8   :  { %7848 = vmatmul.mubr.msk.bf16.vlgmr.msra.gmra.mrb[20].mxu1 %vm670_vm0, %v1543_v43  ;;  %v1674_v43 = vld [vmem:[#allocation23 + $0x98] sm:$0xff] }
 0x7f9   :  { %2009 = vmatprep.mubr.bf16.mxu1 %v9383_v0  ;;  %1978 = vmatpush1.bf16.msra.mxu1 %v6996_v50 }
 0x7fa   :  { %1979 = vmatprep.subr.bf16.mxu1 %v7013_v19  ;;  %v7023_v19 = vcombine.high %v1677_v14, %v1685_v15 }
 0x7fd   :  { %1980 = vmatpush1.bf16.msra.mxu1 %v7012_v52 }
 0x7fe   :  { %2063 = vmatprep.subr.bf16.mxu1 %v7001_v27  ;;  %v8084_v27 = vld [vmem:[#allocation26 + $0x48] sm:$0xff]  }
 0x8cb   :  { %v1600_v45 = vpop.f32.mrb[20].mxu1 }
 0x8cc   :  { %v1601_v46 = vadd.f32 %v6988_v44, %v1600_v45  ;;  %v7849_v47 = vpop.f32.mrb[21].mxu1 }
 0x8cd   :  { %v1603_v48 = vpop.f32.mrb[22].mxu1 }
 0x8ce   :  { %v1604_v53 = vadd.f32 %v6988_v44, %v1603_v48  ;;  %v7850_v54 = vpop.f32.mrb[23].mxu1  ;;  %v1607_v55 = vadd.f32 %v1601_v46, %v9809_v4  ;;  %v1682_v44 = vld [vmem:[#allocation23 + $0xd8] sm:$0xff]  ;;  %v7015_v48 = vcombine.high %v1673_v41, %v1681_v42 }
 0x8cf   :  { %v1659_v54 = vld [vmem:[#allocation23 + $0x20] sm:$0xff] }
 0x8d0   :  { %v1611_v56 = vsel %vm670_vm0, %v1607_v55, 0.0  ;;  %v1608_v57 = vadd.f32 %v1604_v53, %v9811_v5  ;;  %v1663_v5 = vld [vmem:[#allocation23 + $0x40] sm:$0xff]  ;;  %v7017_v53 = vcombine.high %v1674_v43, %v1682_v44 }
 0x8d1   :  { %1612 = vadd.xlane.f32.xlu1 %v1611_v56  ;;  %v6995_v9 = vcombine.high %v1655_v7, %v1663_v5  ;;  %v6994_v11 = vcombine.low %v1655_v7, %v1663_v5  ;;  %v1660_v56 = vld [vmem:[#allocation23 + $0x28] sm:$0xff]  ;;  %v1661_v5 = vld [vmem:[#allocation23 + $0x30] sm:$0xff] }
 0x8d2   :  { %v1614_v58 = vsel %vm670_vm0, %v1608_v57, 0.0  ;;  %v7007_v12 = vcombine.high %v1661_v5, %v1669_v8 }
 0x8d3   :  { %1615 = vadd.xlane.f32.xlu0 %v1614_v58  ;;  %1934 = vmatprep.subr.bf16.mxu0 %v6995_v9  ;;  %v7014_v58 = vcombine.low %v1673_v41, %v1681_v42  ;;  %v1662_v9 = vld [vmem:[#allocation23 + $0x38] sm:$0xff]  ;;  %v8099_v41 = vld [vmem:[#allocation26 + $0xa0] sm:$0xff]  }
 0x8d4   :  { %1935 = vmatpush1.bf16.msra.mxu0 %v6994_v11  ;;  %v7009_v13 = vcombine.high %v1662_v9, %v1670_v10  ;;  %v7008_v52 = vcombine.low %v1662_v9, %v1670_v10  ;;  %v8100_v42 = vld [vmem:[#allocation26 + $0x68] sm:$0xff]  }
 0x8d5   :  { %1936 = vmatprep.subr.bf16.mxu0 %v7011_v16  ;;  %v1678_v16 = vld [vmem:[#allocation23 + $0xb8] sm:$0xff] }
 0x8d6   :  { %v7025_v21 = vcombine.high %v1678_v16, %v1686_v17  ;;  %v7024_v23 = vcombine.low %v1678_v16, %v1686_v17 }
 0x8d8   :  { %1937 = vmatpush1.bf16.msra.mxu0 %v7010_v18  ;;  %v7006_v18 = vcombine.low %v1661_v5, %v1669_v8 }
 0x8d9   :  { %2020 = vmatprep.subr.bf16.mxu0 %v6999_v24  ;;  %v8080_v24 = vld [vmem:[#allocation26 + $0x40] sm:$0xff]  }
 0x95e   :  { %v1613_v59 = vpop.xlane.xlu1 %1612 }
 0x95f   :  { %v1618_v60 = vmul.f32 0.03125, %v1613_v59  ;;  %v7016_v59 = vcombine.low %v1674_v43, %v1682_v44  ;;  %v8101_v43 = vld [vmem:[#allocation26 + $0xe8] sm:$0xff]  }
 0x960   :  { %v1616_v61 = vpop.xlane.xlu0 %1615  ;;  %v8102_v44 = vld [vmem:[#allocation26 + $0x28] sm:$0xff]  }
 0x961   :  { %v1620_v62 = vsub.f32 %v1607_v55, %v1618_v60  ;;  %v1619_v63 = vmul.f32 0.03125, %v1616_v61  ;;  %v1667_v55 = vld [vmem:[#allocation23 + $0x60] sm:$0xff] }
 0x962   :  { %v7003_v60 = vcombine.high %v1659_v54, %v1667_v55 }
 0x963   :  { %v1621_v1 = vsub.f32 %v1608_v57, %v1619_v63  ;;  %v1622_v2 = vmul.f32 %v1620_v62, %v1620_v62  ;;  %v1668_v57 = vld [vmem:[#allocation23 + $0x68] sm:$0xff]  ;;  %v1683_v63 = vld [vmem:[#allocation23 + $0xe0] sm:$0xff] }
 0x964   :  { %v7005_v61 = vcombine.high %v1660_v56, %v1668_v57 }
 0x965   :  { %v1624_v3 = vsel %vm670_vm0, %v1622_v2, 0.0  ;;  %v1623_v6 = vmul.f32 %v1621_v1, %v1621_v1  ;;  %v1684_v2 = vld [vmem:[#allocation23 + $0xe8] sm:$0xff] }
 0x966   :  { %1625 = vadd.xlane.f32.xlu1 %v1624_v3  ;;  %v7002_v3 = vcombine.low %v1659_v54, %v1667_v55  ;;  %v8106_v54 = vld [vmem:[#allocation26 + $0x30] sm:$0xff]  }
 0x967   :  { %v1627_v4 = vsel %vm670_vm0, %v1623_v6, 0.0  ;;  %v7004_v6 = vcombine.low %v1660_v56, %v1668_v57  ;;  %v8107_v55 = vld [vmem:[#allocation26 + $0xb0] sm:$0xff]   ;;  %v8108_v56 = vld [vmem:[#allocation26 + $0x78] sm:$0xff]  }
 0x968   :  { %v8109_v57 = vld [vmem:[#allocation26 + $0xf8] sm:$0xff]  }
 0x96a   :  { %1628 = vadd.xlane.f32.xlu1 %v1627_v4 }
 0x9f3   :  { %v1626_v51 = vpop.xlane.xlu1 %1625 }
 0x9f4   :  { %v1630_v28 = vmul.f32 0.03125, %v1626_v51  ;;  %v8085_v51 = vld [vmem:[#allocation26 + $0xc8] sm:$0xff]  }
 0x9f6   :  { %v1632_v29 = vadd.f32 1e-05, %v1630_v28  ;;  %v8086_v28 = vld [vmem:[#allocation26 + $0x8] sm:$0xff]  }
 0x9f7   :  { %v1629_v30 = vpop.xlane.xlu1 %1628 }
 0x9f8   :  { %8378 = vrsqrt.f32 %v1632_v29  ;;  %v1631_v31 = vmul.f32 0.03125, %v1629_v30  ;;  %v8087_v29 = vld [vmem:[#allocation26 + $0x88] sm:$0xff]   ;;  %v8088_v30 = vld [vmem:[#allocation26 + $0x50] sm:$0xff]  }
 0x9fa   :  { %v1633_v32 = vadd.f32 1e-05, %v1631_v31  ;;  %v8089_v31 = vld [vmem:[#allocation26 + $0xd0] sm:$0xff]  }
 0x9fc   :  { %8380 = vrsqrt.f32 %v1633_v32  ;;  %v8090_v32 = vld [vmem:[#allocation26 + $0x10] sm:$0xff]  }
 0xa02   :  { %v8379_v33 = vpop.eup %8378 }
 0xa03   :  { %v1636_v34 = vmul.f32 %v8379_v33, %v1620_v62  ;;  %v1675_v62 = vld [vmem:[#allocation23 + $0xa0] sm:$0xff] }
 0xa04   :  { %v7019_v4 = vcombine.high %v1675_v62, %v1683_v63  ;;  %v7018_v11 = vcombine.low %v1675_v62, %v1683_v63  ;;  %v8091_v33 = vld [vmem:[#allocation26 + $0x90] sm:$0xff]   ;;  %v1691_v62 = vlaneseq }
 0xa05   :  { %v1644_v37 = vmul.f32 %v6992_v35, %v1636_v34  ;;  %v8092_v34 = vld [vmem:[#allocation26 + $0x58] sm:$0xff]  }
 0xa06   :  { %v8381_v36 = vpop.eup %8380  ;;  %v1692_v63 = vshrl.u32 %v1691_v62, 7 }
 0xa07   :  { %v1637_v38 = vmul.f32 %v8381_v36, %v1621_v1  ;;  %v9906_v45 = vadd.f32 %v6993_v39, %v1644_v37  ;;  %v1676_v1 = vld [vmem:[#allocation23 + $0xa8] sm:$0xff] }
 0xa08   :  { %v7021_v7 = vcombine.high %v1676_v1, %v1684_v2  ;;  %v7020_v50 = vcombine.low %v1676_v1, %v1684_v2  ;;  %v8094_v36 = vld [vmem:[#allocation26 + $0x18] sm:$0xff]   ;;  %v9936_v1 = vsub.s32 0, %v1692_v63  ;;  %v9938_v2 = vsub.s32 2, %v1692_v63 }
 0xa09   :  { %v1645_v40 = vmul.f32 %v6992_v35, %v1637_v38  ;;  %v8093_v35 = vld [vmem:[#allocation26 + $0xd8] sm:$0xff]   ;;  %v8096_v38 = vld [vmem:[#allocation26 + $0x60] sm:$0xff]   ;;  %v9948_v10 = vsub.s32 4, %v1692_v63  ;;  %v9954_v14 = vsub.s32 7, %v1692_v63 }
 0xa0a   :  { %v8095_v37 = vld [vmem:[#allocation26 + $0x98] sm:$0xff]  }
 0xa0b   :  { %v9908_v46 = vadd.f32 %v6993_v39, %v1645_v40  ;;  %v8097_v39 = vld [vmem:[#allocation26 + $0xe0] sm:$0xff]  }
 0xa0c   :  { %v8098_v40 = vld [vmem:[#allocation26 + $0x20] sm:$0xff]  }
 0xa0d   :  { %v9912_v47 = vpack.c.bf16 %v9908_v46, %v9906_v45 }
 0xa0f   :  { %7026 = vmatmul.mubr.msk.bf16.vlgmr.msra.gmra.mrb[24].mxu0 %vm670_vm0, %v9912_v47  ;;  %7027 = vmatmul.mubr.msk.bf16.vlgmr.msra.gmra.mrb[24].mxu1 %vm670_vm0, %v9912_v47 }
 0xa10   :  { %2021 = vmatpush1.bf16.msra.mxu0 %v6998_v25  ;;  %2064 = vmatpush1.bf16.msra.mxu1 %v7000_v26  ;;  %v8082_v25 = vld [vmem:[#allocation26] sm:$0xff]  }
 0xa11   :  { %2022 = vmatprep.subr.bf16.mxu0 %v7015_v48  ;;  %2065 = vmatprep.subr.bf16.mxu1 %v7017_v53  ;;  %v8083_v26 = vld [vmem:[#allocation26 + $0x80] sm:$0xff]   ;;  %v8104_v48 = vld [vmem:[#allocation26 + $0x70] sm:$0xff]  }
 0xa12   :  { %2052 = vmatprep.mubr.bf16.mxu0 %v9383_v0  ;;  %2095 = vmatprep.mubr.bf16.mxu1 %v9383_v0  ;;  %v8105_v53 = vld [vmem:[#allocation26 + $0xf0] sm:$0xff]  }
 0xa14   :  { %2023 = vmatpush1.bf16.msra.mxu0 %v7014_v58  ;;  %2066 = vmatpush1.bf16.msra.mxu1 %v7016_v59  ;;  %v8110_v58 = vld [vmem:[#allocation26 + $0x38] sm:$0xff]  }
 0xa15   :  { %2106 = vmatprep.subr.bf16.mxu0 %v7003_v60  ;;  %2149 = vmatprep.subr.bf16.mxu1 %v7005_v61  ;;  %v8111_v59 = vld [vmem:[#allocation26 + $0xb8] sm:$0xff]   ;;  %v8112_v60 = vld [vmem:[#allocation26 + $0x140] sm:$0xff]  }
 0xa16   :  { %v8113_v61 = vld [vmem:[#allocation26 + $0x1c0] sm:$0xff]  }
 0xa17   :  { %7028 = vmatmul.mubr.msk.bf16.vlgmr.msra.gmra.mrb[28].mxu0 %vm670_vm0, %v9912_v47  ;;  %7029 = vmatmul.mubr.msk.bf16.vlgmr.msra.gmra.mrb[28].mxu1 %vm670_vm0, %v9912_v47 }
 0xa18   :  { %2107 = vmatpush1.bf16.msra.mxu0 %v7002_v3  ;;  %2150 = vmatpush1.bf16.msra.mxu1 %v7004_v6  ;;  %v1687_v3 = vld [vmem:[#allocation25] sm:$0xff]  ;;  %v9940_v6 = vsub.s32 1, %v1692_v63 }
 0xa19   :  { %2108 = vmatprep.subr.bf16.mxu0 %v7019_v4  ;;  %2151 = vmatprep.subr.bf16.mxu1 %v7021_v7  ;;  %v9942_v4 = vsub.s32 3, %v1692_v63  ;;  %v1694_v7 = vrot.slane %v1687_v3, %v9936_v1  ;;  %v1702_v5 = vrot.slane %v1687_v3, %v9938_v2 }
 0xa1a   :  { %2138 = vmatprep.mubr.bf16.mxu0 %v9383_v0  ;;  %2181 = vmatprep.mubr.bf16.mxu1 %v9383_v0  ;;  %v1698_v8 = vrot.slane %v1687_v3, %v9940_v6 }
 0xa1b   :  { %v1706_v9 = vrot.slane %v1687_v3, %v9942_v4 }
 0xa1c   :  { %2109 = vmatpush1.bf16.msra.mxu0 %v7018_v11  ;;  %2152 = vmatpush1.bf16.msra.mxu1 %v7020_v50  ;;  %v9950_v11 = vsub.s32 6, %v1692_v63 }
 0xa1d   :  { %2192 = vmatprep.subr.bf16.mxu0 %v7007_v12  ;;  %2235 = vmatprep.subr.bf16.mxu1 %v7009_v13  ;;  %v9952_v13 = vsub.s32 5, %v1692_v63 }
 0xa1f   :  { %7030 = vmatmul.mubr.msk.bf16.vlgmr.msra.gmra.mrb[32].mxu0 %vm670_vm0, %v9912_v47  ;;  %7031 = vmatmul.mubr.msk.bf16.vlgmr.msra.gmra.mrb[32].mxu1 %vm670_vm0, %v9912_v47 }
 0xa20   :  { %2193 = vmatpush1.bf16.msra.mxu0 %v7006_v18  ;;  %2236 = vmatpush1.bf16.msra.mxu1 %v7008_v52 }
 0xa21   :  { %2194 = vmatprep.subr.bf16.mxu0 %v7023_v19  ;;  %2237 = vmatprep.subr.bf16.mxu1 %v7025_v21 }
 0xa22   :  { %2224 = vmatprep.mubr.bf16.mxu0 %v9383_v0  ;;  %2267 = vmatprep.mubr.bf16.mxu1 %v9383_v0 }
 0xa24   :  { %2195 = vmatpush1.bf16.msra.mxu0 %v7022_v22  ;;  %2238 = vmatpush1.bf16.msra.mxu1 %v7024_v23 }
 0xa25   :  { %7394 = vmatprep.subr.bf16.mxu0 %v8080_v24  ;;  %7416 = vmatprep.subr.bf16.mxu1 %v8081_v49 }
 0xa27   :  { %7032 = vmatmul.mubr.msk.bf16.vlgmr.msra.gmra.mrb[36].mxu0 %vm670_vm0, %v9912_v47  ;;  %7033 = vmatmul.mubr.msk.bf16.vlgmr.msra.gmra.mrb[36].mxu1 %vm670_vm0, %v9912_v47  ;;  %v8103_v47 = vld [vmem:[#allocation26 + $0xa8] sm:$0xff]  }
 0xa28   :  { %7395 = vmatpush3.bf16.msra.mxu0 %v8082_v25  ;;  %7417 = vmatpush3.bf16.msra.mxu1 %v8083_v26  ;;  %v1710_v26 = vrot.slane %v1687_v3, %v9948_v10 }
 0xa29   :  { %7396 = vmatprep.subr.bf16.mxu0 %v8084_v27  ;;  %7418 = vmatprep.subr.bf16.mxu1 %v8085_v51  ;;  %v1718_v27 = vrot.slane %v1687_v3, %v9950_v11 }
 0xa2c   :  { %7397 = vmatpush3.bf16.msra.mxu0 %v8086_v28  ;;  %7419 = vmatpush3.bf16.msra.mxu1 %v8087_v29  ;;  %v1714_v29 = vrot.slane %v1687_v3, %v9952_v13 }
 0xa2d   :  { %7398 = vmatprep.subr.bf16.mxu0 %v8088_v30  ;;  %7420 = vmatprep.subr.bf16.mxu1 %v8089_v31  ;;  %v1722_v30 = vrot.slane %v1687_v3, %v9954_v14 }
 0xa30   :  { %7399 = vmatpush3.bf16.msra.mxu0 %v8090_v32  ;;  %7421 = vmatpush3.bf16.msra.mxu1 %v8091_v33 }
 0xa31   :  { %7400 = vmatprep.subr.bf16.mxu0 %v8092_v34  ;;  %7422 = vmatprep.subr.bf16.mxu1 %v8093_v35 }
 0xa34   :  { %7401 = vmatpush3.bf16.msra.mxu0 %v8094_v36  ;;  %7423 = vmatpush3.bf16.msra.mxu1 %v8095_v37 }
 0xa35   :  { %7402 = vmatprep.subr.bf16.mxu0 %v8096_v38  ;;  %7424 = vmatprep.subr.bf16.mxu1 %v8097_v39  ;;  %v9960_v39 = vld [vmem:[#allocation25 + $0x8] sm:$0xff] }
 0xa38   :  { %7403 = vmatpush3.bf16.msra.mxu0 %v8098_v40  ;;  %7425 = vmatpush3.bf16.msra.mxu1 %v8099_v41 }
 0xa39   :  { %7404 = vmatprep.subr.bf16.mxu0 %v8100_v42  ;;  %7426 = vmatprep.subr.bf16.mxu1 %v8101_v43 }
 0xa3c   :  { %7405 = vmatpush3.bf16.msra.mxu0 %v8102_v44  ;;  %7427 = vmatpush3.bf16.msra.mxu1 %v8103_v47 }
 0xa3d   :  { %7406 = vmatprep.subr.bf16.mxu0 %v8104_v48  ;;  %7428 = vmatprep.subr.bf16.mxu1 %v8105_v53  ;;  %v8114_v48 = vld [vmem:[#allocation26 + $0x100] sm:$0xff]  }
 0xa3e   :  { %v8115_v53 = vld [vmem:[#allocation26 + $0x180] sm:$0xff]  }
 0xa40   :  { %7407 = vmatpush3.bf16.msra.mxu0 %v8106_v54  ;;  %7429 = vmatpush3.bf16.msra.mxu1 %v8107_v55 }
 0xa41   :  { %7408 = vmatprep.subr.bf16.mxu0 %v8108_v56  ;;  %7430 = vmatprep.subr.bf16.mxu1 %v8109_v57 }
 0xa44   :  { %7409 = vmatpush3.bf16.msra.mxu0 %v8110_v58  ;;  %7431 = vmatpush3.bf16.msra.mxu1 %v8111_v59  ;;  %v8116_v58 = vld [vmem:[#allocation26 + $0x148] sm:$0xff]  }
 0xa45   :  { %7438 = vmatprep.subr.bf16.mxu0 %v8112_v60  ;;  %7460 = vmatprep.subr.bf16.mxu1 %v8113_v61  ;;  %v8117_v59 = vld [vmem:[#allocation26 + $0x1c8] sm:$0xff]   ;;  %v1726_v60 = vrot.slane %v9960_v39, %v9936_v1 }
 0xae2   :  { %v1968_v50 = vpop.f32.mrb[24].mxu0  ;;  %v2011_v12 = vpop.f32.mrb[24].mxu1 }
 0xae3   :  { %v1969_v15 = vadd.f32 %v1968_v50, %v1694_v7  ;;  %v2012_v16 = vadd.f32 %v2011_v12, %v1702_v5  ;;  %v1970_v17 = vpop.f32.mrb[25].mxu0  ;;  %v2013_v18 = vpop.f32.mrb[25].mxu1  ;;  %v1730_v12 = vrot.slane %v9960_v39, %v9940_v6 }
 0xae4   :  { %v1971_v52 = vadd.f32 %v1970_v17, %v1698_v8  ;;  %v2014_v19 = vadd.f32 %v2013_v18, %v1706_v9  ;;  %v1972_v21 = vpop.f32.mrb[26].mxu0  ;;  %v2015_v22 = vpop.f32.mrb[26].mxu1  ;;  %v8118_v17 = vld [vmem:[#allocation26 + $0x108] sm:$0xff]  }
 0xae5   :  { %v1973_v23 = vadd.f32 %v1972_v21, %v1694_v7  ;;  %v2016_v24 = vadd.f32 %v2015_v22, %v1702_v5  ;;  %v1974_v49 = vpop.f32.mrb[27].mxu0  ;;  %v2017_v25 = vpop.f32.mrb[27].mxu1  ;;  %v2278_v31 = vmax.f32 %v1969_v15, 0.0  ;;  %v2280_v32 = vmax.f32 %v2012_v16, 0.0  ;;  %v8119_v18 = vld [vmem:[#allocation26 + $0x188] sm:$0xff]  }
 0xae6   :  { %v1975_v51 = vadd.f32 %v1974_v49, %v1698_v8  ;;  %v2018_v28 = vadd.f32 %v2017_v25, %v1706_v9  ;;  %v2279_v35 = vmax.f32 %v1971_v52, 0.0  ;;  %v2281_v36 = vmax.f32 %v2014_v19, 0.0  ;;  %v8121_v49 = vld [vmem:[#allocation26 + $0x1d0] sm:$0xff]  }
 0xae7   :  { %v2294_v33 = vmax.f32 %v1973_v23, 0.0  ;;  %v2296_v34 = vmax.f32 %v2016_v24, 0.0  ;;  %v1734_v7 = vrot.slane %v9960_v39, %v9938_v2  ;;  %v1738_v52 = vrot.slane %v9960_v39, %v9942_v4  ;;  %v8120_v24 = vld [vmem:[#allocation26 + $0x150] sm:$0xff]  }
 0xae8   :  { %v2295_v37 = vmax.f32 %v1975_v51, 0.0  ;;  %v2297_v38 = vmax.f32 %v2018_v28, 0.0 }
 0xae9   :  { %v2310_v40 = vpack.c.bf16 %v2294_v33, %v2278_v31  ;;  %v2312_v41 = vpack.c.bf16 %v2296_v34, %v2280_v32  ;;  %v8122_v34 = vld [vmem:[#allocation26 + $0x110] sm:$0xff]  }
 0xaea   :  { %v2311_v42 = vpack.c.bf16 %v2295_v37, %v2279_v35  ;;  %v2313_v43 = vpack.c.bf16 %v2297_v38, %v2281_v36  ;;  %v2054_v44 = vpop.f32.mrb[28].mxu0  ;;  %v2097_v47 = vpop.f32.mrb[28].mxu1  ;;  %v8123_v35 = vld [vmem:[#allocation26 + $0x190] sm:$0xff]  }
 0xaeb   :  { %v2055_v54 = vadd.f32 %v2054_v44, %v1710_v26  ;;  %v2098_v55 = vadd.f32 %v2097_v47, %v1718_v27  ;;  %v2056_v56 = vpop.f32.mrb[29].mxu0  ;;  %v2099_v57 = vpop.f32.mrb[29].mxu1 }
 0xaec   :  { %v2057_v61 = vadd.f32 %v2056_v56, %v1714_v29  ;;  %v2100_v62 = vadd.f32 %v2099_v57, %v1722_v30  ;;  %v2058_v63 = vpop.f32.mrb[30].mxu0  ;;  %v2101_v3 = vpop.f32.mrb[30].mxu1  ;;  %3389 = vmatprep.mubr.bf16.mxu0 %v2311_v42  ;;  %3430 = vmatprep.mubr.bf16.mxu1 %v2313_v43  ;;  %v8125_v42 = vld [vmem:[#allocation26 + $0x1d8] sm:$0xff]  }
 0xaed   :  { %v2059_v5 = vadd.f32 %v2058_v63, %v1710_v26  ;;  %v2102_v8 = vadd.f32 %v2101_v3, %v1718_v27  ;;  %v2060_v9 = vpop.f32.mrb[31].mxu0  ;;  %v2103_v50 = vpop.f32.mrb[31].mxu1  ;;  %3390 = vmatmul.mubr.bf16.vlgmr.msra.gmra.mrb[40].mxu0 %v2310_v40  ;;  %3431 = vmatmul.mubr.bf16.vlgmr.msra.gmra.mrb[40].mxu1 %v2312_v41  ;;  %v2282_v19 = vmax.f32 %v2055_v54, 0.0  ;;  %v2284_v21 = vmax.f32 %v2098_v55, 0.0  ;;  %v8124_v41 = vld [vmem:[#allocation26 + $0x158] sm:$0xff]  }
 0xaee   :  { %v2061_v15 = vadd.f32 %v2060_v9, %v1714_v29  ;;  %v2104_v16 = vadd.f32 %v2103_v50, %v1722_v30  ;;  %7439 = vmatpush3.bf16.msra.mxu0 %v8114_v48  ;;  %7461 = vmatpush3.bf16.msra.mxu1 %v8115_v53  ;;  %v2283_v25 = vmax.f32 %v2057_v61, 0.0  ;;  %v2285_v26 = vmax.f32 %v2100_v62, 0.0  ;;  %v8126_v63 = vld [vmem:[#allocation26 + $0x118] sm:$0xff]   ;;  %v8128_v50 = vld [vmem:[#allocation26 + $0x160] sm:$0xff]  }
 0xaef   :  { %v2298_v22 = vmax.f32 %v2059_v5, 0.0  ;;  %v2300_v23 = vmax.f32 %v2102_v8, 0.0  ;;  %7440 = vmatprep.subr.bf16.mxu0 %v8116_v58  ;;  %7462 = vmatprep.subr.bf16.mxu1 %v8117_v59  ;;  %v1742_v53 = vrot.slane %v9960_v39, %v9948_v10  ;;  %v1750_v58 = vrot.slane %v9960_v39, %v9950_v11  ;;  %v8127_v3 = vld [vmem:[#allocation26 + $0x198] sm:$0xff]  }
 0xaf0   :  { %v2299_v27 = vmax.f32 %v2061_v15, 0.0  ;;  %v2301_v51 = vmax.f32 %v2104_v16, 0.0  ;;  %v1746_v59 = vrot.slane %v9960_v39, %v9952_v13  ;;  %v1754_v5 = vrot.slane %v9960_v39, %v9954_v14  ;;  %v8129_v15 = vld [vmem:[#allocation26 + $0x1e0] sm:$0xff]  }
 0xaf1   :  { %v9970_v28 = vpack.c.bf16 %v2298_v22, %v2282_v19  ;;  %v9972_v29 = vpack.c.bf16 %v2300_v23, %v2284_v21 }
 0xaf2   :  { %v2315_v30 = vpack.c.bf16 %v2299_v27, %v2283_v25  ;;  %v2317_v31 = vpack.c.bf16 %v2301_v51, %v2285_v26  ;;  %7441 = vmatpush3.bf16.msra.mxu0 %v8118_v17  ;;  %7463 = vmatpush3.bf16.msra.mxu1 %v8119_v18  ;;  %v2140_v32 = vpop.f32.mrb[32].mxu0  ;;  %v2183_v33 = vpop.f32.mrb[32].mxu1 }
 0xaf3   :  { %v2141_v36 = vadd.f32 %v2140_v32, %v1726_v60  ;;  %v2184_v37 = vadd.f32 %v2183_v33, %v1734_v7  ;;  %v2142_v38 = vpop.f32.mrb[33].mxu0  ;;  %v2185_v40 = vpop.f32.mrb[33].mxu1  ;;  %7442 = vmatprep.subr.bf16.mxu0 %v8120_v24  ;;  %7464 = vmatprep.subr.bf16.mxu1 %v8121_v49  ;;  %v8130_v24 = vld [vmem:[#allocation26 + $0x120] sm:$0xff]  }
 0xaf4   :  { %v2143_v43 = vadd.f32 %v2142_v38, %v1730_v12  ;;  %v2186_v44 = vadd.f32 %v2185_v40, %v1738_v52  ;;  %v2144_v47 = vpop.f32.mrb[34].mxu0  ;;  %v2187_v48 = vpop.f32.mrb[34].mxu1  ;;  %3471 = vmatprep.mubr.bf16.mxu0 %v2315_v30  ;;  %3512 = vmatprep.mubr.bf16.mxu1 %v2317_v31  ;;  %v8131_v49 = vld [vmem:[#allocation26 + $0x1a0] sm:$0xff]   ;;  %v8132_v30 = vld [vmem:[#allocation26 + $0x168] sm:$0xff]  }
 0xaf5   :  { %v2145_v54 = vadd.f32 %v2144_v47, %v1726_v60  ;;  %v2188_v55 = vadd.f32 %v2187_v48, %v1734_v7  ;;  %v2146_v56 = vpop.f32.mrb[35].mxu0  ;;  %v2189_v57 = vpop.f32.mrb[35].mxu1  ;;  %v2286_v8 = vmax.f32 %v2141_v36, 0.0  ;;  %v2288_v60 = vmax.f32 %v2184_v37, 0.0  ;;  %v8133_v31 = vld [vmem:[#allocation26 + $0x1e8] sm:$0xff]  }
 0xaf6   :  { %v2147_v61 = vadd.f32 %v2146_v56, %v1730_v12  ;;  %v2190_v62 = vadd.f32 %v2189_v57, %v1738_v52  ;;  %7443 = vmatpush3.bf16.msra.mxu0 %v8122_v34  ;;  %7465 = vmatpush3.bf16.msra.mxu1 %v8123_v35  ;;  %v2287_v16 = vmax.f32 %v2143_v43, 0.0  ;;  %v2289_v17 = vmax.f32 %v2186_v44, 0.0  ;;  %v8134_v43 = vld [vmem:[#allocation26 + $0x128] sm:$0xff]   ;;  %v8136_v56 = vld [vmem:[#allocation26 + $0x170] sm:$0xff]  }
 0xaf7   :  { %v2302_v7 = vmax.f32 %v2145_v54, 0.0  ;;  %v2304_v9 = vmax.f32 %v2188_v55, 0.0  ;;  %7444 = vmatprep.subr.bf16.mxu0 %v8124_v41  ;;  %7466 = vmatprep.subr.bf16.mxu1 %v8125_v42  ;;  %v8135_v44 = vld [vmem:[#allocation26 + $0x1a8] sm:$0xff]   ;;  %v8137_v57 = vld [vmem:[#allocation26 + $0x1f0] sm:$0xff]  }
 0xaf8   :  { %v2303_v18 = vmax.f32 %v2147_v61, 0.0  ;;  %v2305_v12 = vmax.f32 %v2190_v62, 0.0 }
 0xaf9   :  { %v9982_v52 = vpack.c.bf16 %v2302_v7, %v2286_v8  ;;  %v9984_v19 = vpack.c.bf16 %v2304_v9, %v2288_v60  ;;  %v8138_v8 = vld [vmem:[#allocation26 + $0x130] sm:$0xff]   ;;  %v8140_v7 = vld [vmem:[#allocation26 + $0x178] sm:$0xff]  }
 0xafa   :  { %v9986_v21 = vpack.c.bf16 %v2303_v18, %v2287_v16  ;;  %v9988_v22 = vpack.c.bf16 %v2305_v12, %v2289_v17  ;;  %7445 = vmatpush3.bf16.msra.mxu0 %v8126_v63  ;;  %7467 = vmatpush3.bf16.msra.mxu1 %v8127_v3  ;;  %v2226_v39 = vpop.f32.mrb[36].mxu0  ;;  %v2269_v23 = vpop.f32.mrb[36].mxu1  ;;  %v8139_v60 = vld [vmem:[#allocation26 + $0x1b0] sm:$0xff]   ;;  %v8141_v9 = vld [vmem:[#allocation26 + $0x1f8] sm:$0xff]   ;;  %v8144_v16 = vld [vmem:[#allocation26 + $0x240] sm:$0xff]  }
 0xafb   :  { %v2227_v25 = vadd.f32 %v2226_v39, %v1742_v53  ;;  %v2270_v26 = vadd.f32 %v2269_v23, %v1750_v58  ;;  %v2228_v27 = vpop.f32.mrb[37].mxu0  ;;  %v2271_v51 = vpop.f32.mrb[37].mxu1  ;;  %7446 = vmatprep.subr.bf16.mxu0 %v8128_v50  ;;  %7468 = vmatprep.subr.bf16.mxu1 %v8129_v15  ;;  %v8142_v50 = vld [vmem:[#allocation26 + $0x138] sm:$0xff]   ;;  %v8145_v17 = vld [vmem:[#allocation26 + $0x2c0] sm:$0xff]   ;;  %v8148_v39 = vld [vmem:[#allocation26 + $0x248] sm:$0xff]  }
 0xafc   :  { %v2229_v32 = vadd.f32 %v2228_v27, %v1746_v59  ;;  %v2272_v33 = vadd.f32 %v2271_v51, %v1754_v5  ;;  %v2230_v34 = vpop.f32.mrb[38].mxu0  ;;  %v2273_v35 = vpop.f32.mrb[38].mxu1  ;;  %v8143_v15 = vld [vmem:[#allocation26 + $0x1b8] sm:$0xff]   ;;  %v8146_v18 = vld [vmem:[#allocation26 + $0x200] sm:$0xff]   ;;  %v8149_v23 = vld [vmem:[#allocation26 + $0x2c8] sm:$0xff]  }
 0xafd   :  { %v2231_v36 = vadd.f32 %v2230_v34, %v1742_v53  ;;  %v2274_v37 = vadd.f32 %v2273_v35, %v1750_v58  ;;  %v2232_v38 = vpop.f32.mrb[39].mxu0  ;;  %v2275_v40 = vpop.f32.mrb[39].mxu1  ;;  %v2290_v47 = vmax.f32 %v2227_v25, 0.0  ;;  %v2292_v48 = vmax.f32 %v2270_v26, 0.0  ;;  %v8147_v12 = vld [vmem:[#allocation26 + $0x280] sm:$0xff]   ;;  %v8152_v25 = vld [vmem:[#allocation26 + $0x250] sm:$0xff]  }
 0xafe   :  { %v2233_v41 = vadd.f32 %v2232_v38, %v1746_v59  ;;  %v2276_v42 = vadd.f32 %v2275_v40, %v1754_v5  ;;  %7447 = vmatpush3.bf16.msra.mxu0 %v8130_v24  ;;  %7469 = vmatpush3.bf16.msra.mxu1 %v8131_v49  ;;  %v2291_v61 = vmax.f32 %v2229_v32, 0.0  ;;  %v2293_v62 = vmax.f32 %v2272_v33, 0.0  ;;  %v8150_v24 = vld [vmem:[#allocation26 + $0x208] sm:$0xff]   ;;  %v8153_v26 = vld [vmem:[#allocation26 + $0x2d0] sm:$0xff]   ;;  %v8162_v32 = vld [vmem:[#allocation26 + $0x220] sm:$0xff]  }
 0xaff   :  { %v2306_v54 = vmax.f32 %v2231_v36, 0.0  ;;  %v2308_v55 = vmax.f32 %v2274_v37, 0.0  ;;  %7448 = vmatprep.subr.bf16.mxu0 %v8132_v30  ;;  %7470 = vmatprep.subr.bf16.mxu1 %v8133_v31  ;;  %v8151_v49 = vld [vmem:[#allocation26 + $0x288] sm:$0xff]   ;;  %v8154_v27 = vld [vmem:[#allocation26 + $0x210] sm:$0xff]   ;;  %v8158_v30 = vld [vmem:[#allocation26 + $0x218] sm:$0xff]  }
 0xb00   :  { %v2307_v53 = vmax.f32 %v2233_v41, 0.0  ;;  %v2309_v58 = vmax.f32 %v2276_v42, 0.0  ;;  %v8155_v51 = vld [vmem:[#allocation26 + $0x290] sm:$0xff]   ;;  %v8160_v31 = vld [vmem:[#allocation26 + $0x260] sm:$0xff]   ;;  %v8164_v34 = vld [vmem:[#allocation26 + $0x268] sm:$0xff]  }
 0xb01   :  { %v9990_v63 = vpack.c.bf16 %v2306_v54, %v2290_v47  ;;  %v9992_v59 = vpack.c.bf16 %v2308_v55, %v2292_v48  ;;  %v8163_v33 = vld [vmem:[#allocation26 + $0x2a0] sm:$0xff]   ;;  %v8165_v35 = vld [vmem:[#allocation26 + $0x2e8] sm:$0xff]   ;;  %v8168_v38 = vld [vmem:[#allocation26 + $0x270] sm:$0xff]  }
 0xb02   :  { %v9994_v3 = vpack.c.bf16 %v2307_v53, %v2291_v61  ;;  %v9996_v5 = vpack.c.bf16 %v2309_v58, %v2293_v62  ;;  %7449 = vmatpush3.bf16.msra.mxu0 %v8134_v43  ;;  %7471 = vmatpush3.bf16.msra.mxu1 %v8135_v44  ;;  %v8166_v36 = vld [vmem:[#allocation26 + $0x228] sm:$0xff]   ;;  %v8169_v40 = vld [vmem:[#allocation26 + $0x2f0] sm:$0xff]   ;;  %v8172_v43 = vld [vmem:[#allocation26 + $0x278] sm:$0xff]  }
 0xb03   :  { %7450 = vmatprep.subr.bf16.mxu0 %v8136_v56  ;;  %7472 = vmatprep.subr.bf16.mxu1 %v8137_v57  ;;  %v8167_v37 = vld [vmem:[#allocation26 + $0x2a8] sm:$0xff]   ;;  %v8170_v41 = vld [vmem:[#allocation26 + $0x230] sm:$0xff]   ;;  %v8173_v44 = vld [vmem:[#allocation26 + $0x2f8] sm:$0xff]  }
 0xb04   :  { %v8171_v42 = vld [vmem:[#allocation26 + $0x2b0] sm:$0xff]   ;;  %v8174_v47 = vld [vmem:[#allocation26 + $0x238] sm:$0xff]   ;;  %v8176_v54 = vld [vmem:[#allocation26 + $0x340] sm:$0xff]  }
 0xb05   :  { %v8175_v48 = vld [vmem:[#allocation26 + $0x2b8] sm:$0xff]   ;;  %v8177_v55 = vld [vmem:[#allocation26 + $0x3c0] sm:$0xff]   ;;  %v8180_v61 = vld [vmem:[#allocation26 + $0x348] sm:$0xff]  }
 0xb06   :  { %7451 = vmatpush3.bf16.msra.mxu0 %v8138_v8  ;;  %7473 = vmatpush3.bf16.msra.mxu1 %v8139_v60  ;;  %v8178_v56 = vld [vmem:[#allocation26 + $0x300] sm:$0xff]   ;;  %v8181_v62 = vld [vmem:[#allocation26 + $0x3c8] sm:$0xff]   ;;  %v8184_v8 = vld [vmem:[#allocation26 + $0x350] sm:$0xff]  }
 0xb07   :  { %7452 = vmatprep.subr.bf16.mxu0 %v8140_v7  ;;  %7474 = vmatprep.subr.bf16.mxu1 %v8141_v9  ;;  %v8179_v57 = vld [vmem:[#allocation26 + $0x380] sm:$0xff]   ;;  %v8182_v53 = vld [vmem:[#allocation26 + $0x308] sm:$0xff]   ;;  %v8185_v60 = vld [vmem:[#allocation26 + $0x3d0] sm:$0xff]  }
 0xb08   :  { %v8183_v58 = vld [vmem:[#allocation26 + $0x388] sm:$0xff]   ;;  %v8186_v7 = vld [vmem:[#allocation26 + $0x310] sm:$0xff]   ;;  %v8188_v9 = vld [vmem:[#allocation26 + $0x358] sm:$0xff]  }
 0xb0a   :  { %7453 = vmatpush3.bf16.msra.mxu0 %v8142_v50  ;;  %7475 = vmatpush3.bf16.msra.mxu1 %v8143_v15  ;;  %v8190_v50 = vld [vmem:[#allocation26 + $0x318] sm:$0xff]   ;;  %v8192_v15 = vld [vmem:[#allocation26 + $0x360] sm:$0xff]  }
 0xb0b   :  { %7482 = vmatprep.subr.bf16.mxu0 %v8144_v16  ;;  %7504 = vmatprep.subr.bf16.mxu1 %v8145_v17  ;;  %v8193_v16 = vld [vmem:[#allocation26 + $0x3e0] sm:$0xff]  }
 0xb0c   :  { %v8195_v17 = vld [vmem:[#allocation26 + $0x3a0] sm:$0xff]  }
 0xb0d   :  { %3472 = vmatmul.mubr.bf16.vlgmr.msra.gmra.mrb[44].mxu0 %v9970_v28  ;;  %3513 = vmatmul.mubr.bf16.vlgmr.msra.gmra.mrb[44].mxu1 %v9972_v29  ;;  %v8156_v28 = vld [vmem:[#allocation26 + $0x258] sm:$0xff]  }
 0xb0e   :  { %7483 = vmatpush3.bf16.msra.mxu0 %v8146_v18  ;;  %3553 = vmatprep.mubr.bf16.mxu0 %v9986_v21  ;;  %v8157_v29 = vld [vmem:[#allocation26 + $0x2d8] sm:$0xff]   ;;  %v8196_v18 = vld [vmem:[#allocation26 + $0x368] sm:$0xff]  }
 0xb0f   :  { %7505 = vmatpush3.bf16.msra.mxu1 %v8147_v12  ;;  %3594 = vmatprep.mubr.bf16.mxu1 %v9988_v22  ;;  %v8159_v21 = vld [vmem:[#allocation26 + $0x298] sm:$0xff]   ;;  %v8161_v22 = vld [vmem:[#allocation26 + $0x2e0] sm:$0xff]   ;;  %v8197_v12 = vld [vmem:[#allocation26 + $0x3e8] sm:$0xff]  }
 0xb10   :  { %7484 = vmatprep.subr.bf16.mxu0 %v8148_v39  ;;  %7506 = vmatprep.subr.bf16.mxu1 %v8149_v23  ;;  %v8198_v39 = vld [vmem:[#allocation26 + $0x328] sm:$0xff]  }
 0xb11   :  { %v8199_v23 = vld [vmem:[#allocation26 + $0x3a8] sm:$0xff]  }
 0xb12   :  { %7485 = vmatpush3.bf16.msra.mxu0 %v8150_v24  ;;  %v8200_v24 = vld [vmem:[#allocation26 + $0x370] sm:$0xff]  }
 0xb13   :  { %7507 = vmatpush3.bf16.msra.mxu1 %v8151_v49  ;;  %7486 = vmatprep.subr.bf16.mxu0 %v8152_v25  ;;  %v8201_v49 = vld [vmem:[#allocation26 + $0x3f0] sm:$0xff]  }
 0xb14   :  { %7508 = vmatprep.subr.bf16.mxu1 %v8153_v26  ;;  %v8202_v25 = vld [vmem:[#allocation26 + $0x330] sm:$0xff]  }
 0xb15   :  { %v8203_v26 = vld [vmem:[#allocation26 + $0x3b0] sm:$0xff]  }
 0xb16   :  { %7487 = vmatpush3.bf16.msra.mxu0 %v8154_v27  ;;  %v8204_v27 = vld [vmem:[#allocation26 + $0x378] sm:$0xff]  }
 0xb17   :  { %7509 = vmatpush3.bf16.msra.mxu1 %v8155_v51  ;;  %7488 = vmatprep.subr.bf16.mxu0 %v8156_v28  ;;  %v8205_v51 = vld [vmem:[#allocation26 + $0x3f8] sm:$0xff]  }
 0xb18   :  { %7510 = vmatprep.subr.bf16.mxu1 %v8157_v29  ;;  %v8206_v28 = vld [vmem:[#allocation26 + $0x338] sm:$0xff]  }
 0xb19   :  { %v8207_v29 = vld [vmem:[#allocation26 + $0x3b8] sm:$0xff]  }
 0xb1a   :  { %7489 = vmatpush3.bf16.msra.mxu0 %v8158_v30 }
 0xb1b   :  { %7511 = vmatpush3.bf16.msra.mxu1 %v8159_v21  ;;  %7490 = vmatprep.subr.bf16.mxu0 %v8160_v31  ;;  %v7034_v31 = vld [vmem:[#allocation28] ss:$0 sm:$0xff] }
 0xb1c   :  { %7512 = vmatprep.subr.bf16.mxu1 %v8161_v22 }
 0xb1e   :  { %7491 = vmatpush3.bf16.msra.mxu0 %v8162_v32 }
 0xb1f   :  { %7513 = vmatpush3.bf16.msra.mxu1 %v8163_v33  ;;  %7492 = vmatprep.subr.bf16.mxu0 %v8164_v34 }
 0xb20   :  { %7514 = vmatprep.subr.bf16.mxu1 %v8165_v35 }
 0xb22   :  { %7493 = vmatpush3.bf16.msra.mxu0 %v8166_v36 }
 0xb23   :  { %7515 = vmatpush3.bf16.msra.mxu1 %v8167_v37  ;;  %7494 = vmatprep.subr.bf16.mxu0 %v8168_v38 }
 0xb24   :  { %7516 = vmatprep.subr.bf16.mxu1 %v8169_v40 }
 0xb26   :  { %7495 = vmatpush3.bf16.msra.mxu0 %v8170_v41 }
 0xb27   :  { %7517 = vmatpush3.bf16.msra.mxu1 %v8171_v42  ;;  %7496 = vmatprep.subr.bf16.mxu0 %v8172_v43 }
 0xb28   :  { %7518 = vmatprep.subr.bf16.mxu1 %v8173_v44 }
 0xb2a   :  { %7497 = vmatpush3.bf16.msra.mxu0 %v8174_v47 }
 0xb2b   :  { %7519 = vmatpush3.bf16.msra.mxu1 %v8175_v48  ;;  %7526 = vmatprep.subr.bf16.mxu0 %v8176_v54 }
 0xb2c   :  { %7548 = vmatprep.subr.bf16.mxu1 %v8177_v55 }
 0xb2d   :  { %3554 = vmatmul.mubr.bf16.vlgmr.msra.gmra.mrb[48].mxu0 %v9982_v52  ;;  %v8187_v52 = vld [vmem:[#allocation26 + $0x390] sm:$0xff]  }
 0xb2e   :  { %3595 = vmatmul.mubr.bf16.vlgmr.msra.gmra.mrb[48].mxu1 %v9984_v19  ;;  %7527 = vmatpush3.bf16.msra.mxu0 %v8178_v56  ;;  %v8189_v19 = vld [vmem:[#allocation26 + $0x3d8] sm:$0xff]  }
 0xb2f   :  { %3635 = vmatprep.mubr.bf16.mxu0 %v9994_v3  ;;  %7549 = vmatpush3.bf16.msra.mxu1 %v8179_v57  ;;  %v8191_v3 = vld [vmem:[#allocation26 + $0x398] sm:$0xff]  }
 0xb30   :  { %3676 = vmatprep.mubr.bf16.mxu1 %v9996_v5  ;;  %7528 = vmatprep.subr.bf16.mxu0 %v8180_v61  ;;  %v8194_v5 = vld [vmem:[#allocation26 + $0x320] sm:$0xff]  }
 0xb31   :  { %7550 = vmatprep.subr.bf16.mxu1 %v8181_v62 }
 0xb32   :  { %7529 = vmatpush3.bf16.msra.mxu0 %v8182_v53 }
 0xb33   :  { %7551 = vmatpush3.bf16.msra.mxu1 %v8183_v58  ;;  %7530 = vmatprep.subr.bf16.mxu0 %v8184_v8 }
 0xb34   :  { %7552 = vmatprep.subr.bf16.mxu1 %v8185_v60 }
 0xb36   :  { %7531 = vmatpush3.bf16.msra.mxu0 %v8186_v7 }
 0xb37   :  { %7553 = vmatpush3.bf16.msra.mxu1 %v8187_v52  ;;  %7532 = vmatprep.subr.bf16.mxu0 %v8188_v9 }
 0xb38   :  { %7554 = vmatprep.subr.bf16.mxu1 %v8189_v19 }
 0xb3a   :  { %7533 = vmatpush3.bf16.msra.mxu0 %v8190_v50 }
 0xb3b   :  { %7555 = vmatpush3.bf16.msra.mxu1 %v8191_v3  ;;  %7534 = vmatprep.subr.bf16.mxu0 %v8192_v15 }
 0xb3c   :  { %7556 = vmatprep.subr.bf16.mxu1 %v8193_v16 }
 0xb3e   :  { %7535 = vmatpush3.bf16.msra.mxu0 %v8194_v5 }
 0xb3f   :  { %7557 = vmatpush3.bf16.msra.mxu1 %v8195_v17  ;;  %7536 = vmatprep.subr.bf16.mxu0 %v8196_v18 }
 0xb40   :  { %7558 = vmatprep.subr.bf16.mxu1 %v8197_v12 }
 0xb42   :  { %7537 = vmatpush3.bf16.msra.mxu0 %v8198_v39 }
 0xb43   :  { %7559 = vmatpush3.bf16.msra.mxu1 %v8199_v23  ;;  %7538 = vmatprep.subr.bf16.mxu0 %v8200_v24 }
 0xb44   :  { %7560 = vmatprep.subr.bf16.mxu1 %v8201_v49 }
 0xb46   :  { %7539 = vmatpush3.bf16.msra.mxu0 %v8202_v25 }
 0xb47   :  { %7561 = vmatpush3.bf16.msra.mxu1 %v8203_v26  ;;  %7540 = vmatprep.subr.bf16.mxu0 %v8204_v27 }
 0xb48   :  { %7562 = vmatprep.subr.bf16.mxu1 %v8205_v51 }
 0xb4a   :  { %7541 = vmatpush3.bf16.msra.mxu0 %v8206_v28 }
 0xb4b   :  { %7563 = vmatpush3.bf16.msra.mxu1 %v8207_v29 }
 0xb4d   :  { %3636 = vmatmul.mubr.bf16.vlgmr.msra.gmra.mrb[52].mxu0 %v9990_v63 }
 0xb4e   :  { %3677 = vmatmul.mubr.bf16.vlgmr.msra.gmra.mrb[52].mxu1 %v9992_v59 }
 0xbc0   :  { %v7410_v30 = vpop.f32.mrb[40].mxu0  ;;  %v7432_v21 = vpop.f32.mrb[40].mxu1 }
 0xbc1   :  { %v7411_v22 = vpop.f32.mrb[41].mxu0  ;;  %v7433_v32 = vpop.f32.mrb[41].mxu1 }
 0xbc2   :  { %v7412_v33 = vadd.f32 %v7411_v22, %v7410_v30  ;;  %v7434_v34 = vadd.f32 %v7433_v32, %v7432_v21  ;;  %v7413_v35 = vpop.f32.mrb[42].mxu0  ;;  %v7435_v36 = vpop.f32.mrb[42].mxu1 }
 0xbc3   :  { %v7414_v37 = vpop.f32.mrb[43].mxu0  ;;  %v7436_v38 = vpop.f32.mrb[43].mxu1 }
 0xbc4   :  { %v3392_v40 = vadd.f32 %v7412_v33, %v7034_v31  ;;  %v7415_v41 = vadd.f32 %v7414_v37, %v7413_v35  ;;  %v7437_v42 = vadd.f32 %v7436_v38, %v7435_v36 }
 0xbc6   :  { %v3433_v43 = vadd.f32 %v7434_v34, %v3392_v40  ;;  %v3395_v44 = vadd.f32 %v7415_v41, %v7034_v31 }
 0xbc8   :  { %v3436_v47 = vadd.f32 %v7437_v42, %v3395_v44 }
 0xbe0   :  { %v7454_v63 = vpop.f32.mrb[44].mxu0  ;;  %v7476_v48 = vpop.f32.mrb[44].mxu1 }
 0xbe1   :  { %v7455_v59 = vpop.f32.mrb[45].mxu0  ;;  %v7477_v54 = vpop.f32.mrb[45].mxu1 }
 0xbe2   :  { %v7456_v55 = vadd.f32 %v7455_v59, %v7454_v63  ;;  %v7478_v56 = vadd.f32 %v7477_v54, %v7476_v48  ;;  %v7457_v57 = vpop.f32.mrb[46].mxu0  ;;  %v7479_v61 = vpop.f32.mrb[46].mxu1 }
 0xbe3   :  { %v7458_v62 = vpop.f32.mrb[47].mxu0  ;;  %v7480_v53 = vpop.f32.mrb[47].mxu1 }
 0xbe4   :  { %v3474_v58 = vadd.f32 %v7456_v55, %v3433_v43  ;;  %v7459_v8 = vadd.f32 %v7458_v62, %v7457_v57  ;;  %v7481_v60 = vadd.f32 %v7480_v53, %v7479_v61  ;;  %v3736_v53 = vld [vmem:[#allocation34] sm:$0xff] }
 0xbe6   :  { %v3515_v7 = vadd.f32 %v7478_v56, %v3474_v58  ;;  %v3477_v52 = vadd.f32 %v7459_v8, %v3436_v47  ;;  %v3737_v58 = vld [vmem:[#allocation34 + $0x8] sm:$0xff]  ;;  %v3739_v8 = vld [vmem:[#allocation34 + $0x18] sm:$0xff] }
 0xbe8   :  { %v3518_v9 = vadd.f32 %v7481_v60, %v3477_v52  ;;  %v3832_v60 = vld [vmem:[#allocation37] sm:$0xff]  ;;  %v3834_v52 = vld [vmem:[#allocation37 + $0x10] sm:$0xff] }
 0xc00   :  { %v7498_v19 = vpop.f32.mrb[48].mxu0 }
 0xc01   :  { %v7520_v50 = vpop.f32.mrb[48].mxu1  ;;  %v7499_v3 = vpop.f32.mrb[49].mxu0 }
 0xc02   :  { %v7500_v15 = vadd.f32 %v7499_v3, %v7498_v19  ;;  %v7521_v16 = vpop.f32.mrb[49].mxu1  ;;  %v7501_v5 = vpop.f32.mrb[50].mxu0  ;;  %v8208_v19 = vld [vmem:[#allocation32] sm:$0xff]  }
 0xc03   :  { %v7522_v17 = vadd.f32 %v7521_v16, %v7520_v50  ;;  %v7523_v18 = vpop.f32.mrb[50].mxu1  ;;  %v7502_v12 = vpop.f32.mrb[51].mxu0  ;;  %v8209_v50 = vld [vmem:[#allocation35] sm:$0xff]   ;;  %7853 = vmatprep.mubr.msk.bf16.mxu0 %vm670_vm0, %v8208_v19 }
 0xc04   :  { %v3556_v39 = vadd.f32 %v7500_v15, %v3515_v7  ;;  %v7503_v23 = vadd.f32 %v7502_v12, %v7501_v5  ;;  %v7524_v24 = vpop.f32.mrb[51].mxu1  ;;  %v3833_v7 = vld [vmem:[#allocation37 + $0x8] sm:$0xff]  ;;  %7859 = vmatprep.mubr.msk.bf16.mxu1 %vm670_vm0, %v8209_v50 }
 0xc05   :  { %v7525_v49 = vadd.f32 %v7524_v24, %v7523_v18 }
 0xc06   :  { %v3597_v25 = vadd.f32 %v7522_v17, %v3556_v39  ;;  %v3559_v26 = vadd.f32 %v7503_v23, %v3518_v9  ;;  %v3835_v9 = vld [vmem:[#allocation37 + $0x18] sm:$0xff] }
 0xc07   :  { %v7163_v39 = vld [vmem:[#allocation29] ss:$0 sm:$0xff] }
 0xc08   :  { %v3600_v27 = vadd.f32 %v7525_v49, %v3559_v26  ;;  %v7164_v26 = vld [vmem:[#allocation31] ss:$0 sm:$0xff] }
 0xc20   :  { %v7542_v51 = vpop.f32.mrb[52].mxu0 }
 0xc21   :  { %v7564_v28 = vpop.f32.mrb[52].mxu1  ;;  %v7543_v29 = vpop.f32.mrb[53].mxu0 }
 0xc22   :  { %v7544_v30 = vadd.f32 %v7543_v29, %v7542_v51  ;;  %v7565_v21 = vpop.f32.mrb[53].mxu1  ;;  %v7545_v31 = vpop.f32.mrb[54].mxu0 }
 0xc23   :  { %v7566_v22 = vadd.f32 %v7565_v21, %v7564_v28  ;;  %v7567_v32 = vpop.f32.mrb[54].mxu1  ;;  %v7546_v33 = vpop.f32.mrb[55].mxu0  ;;  %v8210_v21 = vld [vmem:[#allocation32 + $0x8] sm:$0xff]  }
 0xc24   :  { %v3638_v34 = vadd.f32 %v7544_v30, %v3597_v25  ;;  %v7547_v35 = vadd.f32 %v7546_v33, %v7545_v31  ;;  %v7568_v36 = vpop.f32.mrb[55].mxu1  ;;  %v8211_v31 = vld [vmem:[#allocation35 + $0x8] sm:$0xff]  }
 0xc25   :  { %v7569_v37 = vadd.f32 %v7568_v36, %v7567_v32  ;;  %v8213_v32 = vld [vmem:[#allocation38 + $0x8] sm:$0xff]  }
 0xc26   :  { %v3679_v38 = vadd.f32 %v7566_v22, %v3638_v34  ;;  %v3641_v40 = vadd.f32 %v7547_v35, %v3600_v27  ;;  %v8212_v22 = vld [vmem:[#allocation38] sm:$0xff]  }
 0xc28   :  { %v3682_v41 = vadd.f32 %v7569_v37, %v3641_v40  ;;  %v3685_v42 = vadd.f32 %v3679_v38, %v9906_v45 }
 0xc2a   :  { %v3689_v43 = vsel %vm670_vm0, %v3685_v42, 0.0  ;;  %v3686_v44 = vadd.f32 %v3682_v41, %v9908_v46  ;;  %v3738_v46 = vld [vmem:[#allocation34 + $0x10] sm:$0xff] }
 0xc2b   :  { %3690 = vadd.xlane.f32.xlu1 %v3689_v43 }
 0xc2c   :  { %v3692_v47 = vsel %vm670_vm0, %v3686_v44, 0.0 }
 0xc2d   :  { %3693 = vadd.xlane.f32.xlu0 %v3692_v47 }
 0xcb8   :  { %v3691_v63 = vpop.xlane.xlu1 %3690 }
 0xcb9   :  { %v3695_v48 = vmul.f32 0.03125, %v3691_v63 }
 0xcba   :  { %v3694_v59 = vpop.xlane.xlu0 %3693 }
 0xcbb   :  { %v3697_v54 = vsub.f32 %v3685_v42, %v3695_v48  ;;  %v3696_v55 = vmul.f32 0.03125, %v3694_v59 }
 0xcbd   :  { %v3698_v56 = vsub.f32 %v3686_v44, %v3696_v55  ;;  %v3699_v57 = vmul.f32 %v3697_v54, %v3697_v54 }
 0xcbf   :  { %v3701_v61 = vsel %vm670_vm0, %v3699_v57, 0.0  ;;  %v3700_v62 = vmul.f32 %v3698_v56, %v3698_v56 }
 0xcc0   :  { %3702 = vadd.xlane.f32.xlu1 %v3701_v61 }
 0xcc1   :  { %v3704_v45 = vsel %vm670_vm0, %v3700_v62, 0.0 }
 0xcc2   :  { %3705 = vadd.xlane.f32.xlu0 %v3704_v45 }
 0xcd1   :  { %3742 = vperm.xlu1 %8023, %v3736_v53  }
 0xcd5   :  { %3752 = vperm.xlu1 %8023, %v3738_v46  }
 0xcd8   :  { %3747 = vperm.xlu0 %8022, %v3737_v58  }
 0xcd9   :  { %3757 = vperm.xlu1 %8023, %v3739_v8  }
 0xcdc   :  { %3838 = vperm.xlu0 %8022, %v3832_v60  }
 0xcdd   :  { %3843 = vperm.xlu1 %8023, %v3833_v7  }
 0xce0   :  { %3848 = vperm.xlu0 %8022, %v3834_v52  }
 0xce1   :  { %3853 = vperm.xlu1 %8023, %v3835_v9  }
 0xd4d   :  { %v3703_v3 = vpop.xlane.xlu1 %3702 }
 0xd4e   :  { %v3707_v15 = vmul.f32 0.03125, %v3703_v3 }
 0xd4f   :  { %v3706_v16 = vpop.xlane.xlu0 %3705 }
 0xd50   :  { %v3709_v5 = vadd.f32 1e-05, %v3707_v15  ;;  %v3708_v17 = vmul.f32 0.03125, %v3706_v16 }
 0xd51   :  { %v3743_v33 = vpop.permute.xlu1 %3742 }
 0xd52   :  { %8382 = vrsqrt.f32 %v3709_v5  ;;  %v3710_v18 = vadd.f32 1e-05, %v3708_v17 }
 0xd54   :  { %8384 = vrsqrt.f32 %v3710_v18 }
 0xd55   :  { %v3753_v34 = vpop.permute.xlu1 %3752 }
 0xd57   :  { %v3748_v35 = vpop.permute.xlu0 %3747 }
 0xd59   :  { %v3758_v36 = vpop.permute.xlu1 %3757 }
 0xd5b   :  { %v3839_v37 = vpop.permute.xlu0 %3838 }
 0xd5c   :  { %v8383_v12 = vpop.eup %8382 }
 0xd5d   :  { %v3713_v23 = vmul.f32 %v8383_v12, %v3697_v54  ;;  %v3844_v38 = vpop.permute.xlu1 %3843 }
 0xd5e   :  { %v8385_v24 = vpop.eup %8384 }
 0xd5f   :  { %v3714_v49 = vmul.f32 %v8385_v24, %v3698_v56  ;;  %v3721_v25 = vmul.f32 %v7163_v39, %v3713_v23  ;;  %v3849_v50 = vpop.permute.xlu0 %3848 }
 0xd61   :  { %v3722_v27 = vmul.f32 %v7163_v39, %v3714_v49  ;;  %v10016_v51 = vadd.f32 %v7164_v26, %v3721_v25  ;;  %v3854_v19 = vpop.permute.xlu1 %3853 }
 0xd63   :  { %v10018_v28 = vadd.f32 %v7164_v26, %v3722_v27 }
 0xd65   :  { %v3731_v29 = vpack.c.bf16 %v10018_v28, %v10016_v51 }
 0xd67   :  { %7936 = vmatprep.subr.msk.bf16.mxu0 %vm670_vm0, %v3731_v29  ;;  %7937 = vmatprep.subr.msk.bf16.mxu1 %vm670_vm0, %v3731_v29  ;;  %v3777_v30 = vsel %vm670_vm0, %v3731_v29, 0 }
 0xd68   :  { %7852 = vmatpush3.bf16.xpose.msra.mxu0 %v3777_v30  ;;  %7858 = vmatpush3.bf16.xpose.msra.mxu1 %v3777_v30 }
 0xd69   :  { %7938 = vmatprep.subr.msk.bf16.mxu0 %vm670_vm0, %v3731_v29  ;;  %7869 = vmatprep.subr.bf16.mxu1 %v9384_v20 }
 0xd6f   :  { %7854 = vmatmul.mubr.msk.bf16.vlgmr.msra.gmra.mrb[56].mxu0 %vm670_vm0, %v8210_v21  ;;  %7860 = vmatmul.mubr.msk.bf16.vlgmr.msra.gmra.mrb[56].mxu1 %vm670_vm0, %v8211_v31 }
 0xd70   :  { %7864 = vmatpush3.bf16.xpose.msra.mxu0 %v3777_v30  ;;  %7871 = vmatprep.mubr.msk.bf16.mxu1 %vm9385_vm2, %v9384_v20 }
 0xd71   :  { %7875 = vmatprep.subr.bf16.mxu0 %v9384_v20  ;;  %7865 = vmatprep.mubr.msk.bf16.mxu0 %vm670_vm0, %v8212_v22 }
 0xd77   :  { %7866 = vmatmul.mubr.msk.bf16.vlgmr.msra.gmra.mrb[60].mxu0 %vm670_vm0, %v8213_v32 }
 0xd78   :  { %7877 = vmatprep.mubr.msk.bf16.mxu0 %vm9385_vm2, %v9384_v20 }
 0xe42   :  { %v7855_v40 = vpop.f32.mrb[56].mxu0  ;;  %v7861_v41 = vpop.f32.mrb[56].mxu1 }
 0xe43   :  { %v3813_v42 = vpop.f32.mrb[57].mxu0  ;;  %v3906_v43 = vpop.f32.mrb[57].mxu1  ;;  %v3822_v48 = vadd.f32 %v7855_v40, %v3753_v34  ;;  %v3915_v3 = vadd.f32 %v7861_v41, %v3849_v50 }
 0xe44   :  { %v3907_v44 = vadd.f32 %v3906_v43, %v3839_v37  ;;  %v7856_v47 = vpop.f32.mrb[58].mxu0  ;;  %v7862_v63 = vpop.f32.mrb[58].mxu1  ;;  %v3814_v56 = vadd.f32 %v3813_v42, %v3743_v33  ;;  %v8426_v37 = vld [vmem:[#allocation5] sm:$0xff] }
 0xe45   :  { %v3825_v59 = vadd.f32 %v7856_v47, %v3758_v36  ;;  %v3816_v54 = vpop.f32.mrb[59].mxu0  ;;  %v3909_v55 = vpop.f32.mrb[59].mxu1  ;;  %v3918_v15 = vadd.f32 %v7862_v63, %v3854_v19  ;;  %v4148_v17 = vpack.c.bf16 %v3915_v3, %v3915_v3  ;;  %v8427_v47 = vld [vmem:[#allocation5 + $0x8] sm:$0xff] }
 0xe46   :  { %v4146_v57 = vpack.c.bf16 %v3907_v44, %v3907_v44  ;;  %v3817_v61 = vadd.f32 %v3816_v54, %v3748_v35  ;;  %v3910_v62 = vadd.f32 %v3909_v55, %v3844_v38 }
 0xe47   :  { %v8060_v45 = vpack.i.bf16 %v3825_v59, %v3822_v48  ;;  %v4149_v18 = vpack.c.bf16 %v3918_v15, %v3918_v15  ;;  %v4248_v29 = vsel %vm1055_vm1, %v4148_v17, 0 }
 0xe48   :  { %v4154_v53 = vsel %vm1055_vm1, %v4146_v57, 0  ;;  %v8048_v46 = vpack.i.bf16 %v3817_v61, %v3814_v56  ;;  %v4147_v58 = vpack.c.bf16 %v3910_v62, %v3910_v62 }
 0xe49   :  { %7870 = vmatpush3.bf16.msra.mxu1 %v4154_v53  ;;  %8061 = vxpose.xlu1.b32.start.end [1/1] (short) (narrow) %v8060_v45, 16  ;;  %v4295_v30 = vsel %vm1055_vm1, %v4149_v18, 0 }
 0xe4a   :  { %v4201_v8 = vsel %vm1055_vm1, %v4147_v58, 0  ;;  %8049 = vxpose.xlu0.b32.start.end [1/1] (short) (narrow) %v8048_v46, 16  ;;  %7881 = vmatprep.subr.bf16.mxu1 %v9384_v20  ;;  %v10040_v60 = vpop.f32.mrb[60].mxu0 }
 0xe4b   :  { %7876 = vmatpush3.bf16.msra.mxu0 %v4201_v8  ;;  %v10042_v7 = vpop.f32.mrb[61].mxu0 }
 0xe4c   :  { %7887 = vmatprep.subr.bf16.mxu0 %v9384_v20  ;;  %v10044_v52 = vpop.f32.mrb[62].mxu0 }
 0xe4d   :  { %v10046_v9 = vpop.f32.mrb[63].mxu0 }
 0xec9   :  { %v8062_v16 = vpop.trf.xlu1 }
 0xeca   :  { %v8050_v5 = vpop.trf.xlu0  ;;  %v8066_v21 = vunpack.i.h.bf16 %v8062_v16  ;;  %v8063_v31 = vunpack.i.l.bf16 %v8062_v16 }
 0xecb   :  { %v8054_v39 = vunpack.i.h.bf16 %v8050_v5  ;;  %v8051_v23 = vunpack.i.l.bf16 %v8050_v5 }
 0xecd   :  { %v8067_v12 = vpop.trf.xlu1 }
 0xece   :  { %v8055_v24 = vpop.trf.xlu0  ;;  %v8071_v22 = vunpack.i.h.bf16 %v8067_v12  ;;  %v8068_v32 = vunpack.i.l.bf16 %v8067_v12 }
 0xecf   :  { %v8059_v49 = vunpack.i.h.bf16 %v8055_v24  ;;  %v8056_v25 = vunpack.i.l.bf16 %v8055_v24 }
 0xed0   :  { %v4144_v33 = vpack.c.bf16 %v8068_v32, %v8063_v31  ;;  %v4145_v34 = vpack.c.bf16 %v8071_v22, %v8066_v21 }
 0xed1   :  { %v4142_v26 = vpack.c.bf16 %v8056_v25, %v8051_v23  ;;  %v4143_v27 = vpack.c.bf16 %v8059_v49, %v8054_v39  ;;  %v3925_v23 = vld [vmem:[#allocation40] sm:$0xff] }
 0xed3   :  { %7872 = vmatmul.mubr.msk.bf16.vlgmr.msra.gmra.mrb[60].mxu1 %vm1051_vm3, %v4142_v26  ;;  %7878 = vmatmul.mubr.msk.bf16.vlgmr.msra.gmra.mrb[64].mxu0 %vm1051_vm3, %v4143_v27 }
 0xed4   :  { %7882 = vmatpush3.bf16.msra.mxu1 %v4248_v29  ;;  %7888 = vmatpush3.bf16.msra.mxu0 %v4295_v30 }
 0xed5   :  { %7883 = vmatprep.mubr.msk.bf16.mxu1 %vm9385_vm2, %v9384_v20  ;;  %7889 = vmatprep.mubr.msk.bf16.mxu0 %vm9385_vm2, %v9384_v20 }
 0xed6   :  { %7893 = vmatprep.subr.bf16.mxu1 %v9384_v20  ;;  %7899 = vmatprep.subr.bf16.mxu0 %v9384_v20 }
 0xedb   :  { %7884 = vmatmul.mubr.msk.bf16.vlgmr.msra.gmra.mrb[64].mxu1 %vm1051_vm3, %v4144_v33  ;;  %7890 = vmatmul.mubr.msk.bf16.vlgmr.msra.gmra.mrb[68].mxu0 %vm1051_vm3, %v4145_v34 }
 0xedc   :  { %7895 = vmatprep.mubr.msk.bf16.mxu1 %vm9385_vm2, %v9384_v20  ;;  %7901 = vmatprep.mubr.msk.bf16.mxu0 %vm9385_vm2, %v9384_v20 }
 0xfa6   :  { %v4190_v35 = vpop.f32.mrb[60].mxu1  ;;  %v4237_v36 = vpop.f32.mrb[64].mxu0 }
 0xfa7   :  { %v4191_v38 = vadd.f32 %v8426_v37, %v4190_v35  ;;  %v7873_v40 = vpop.f32.mrb[61].mxu1  ;;  %v7879_v41 = vpop.f32.mrb[65].mxu0  ;;  %v4238_v44 = vadd.f32 %v8426_v37, %v4237_v36 }
 0xfa8   :  { %v4193_v42 = vpop.f32.mrb[62].mxu1  ;;  %v4240_v43 = vpop.f32.mrb[66].mxu0 }
 0xfa9   :  { %v4194_v63 = vadd.f32 %v8427_v47, %v4193_v42  ;;  %v7874_v48 = vpop.f32.mrb[63].mxu1  ;;  %v7880_v59 = vpop.f32.mrb[67].mxu0  ;;  %v4338_v54 = vsel %vm1241_vm4, %v4191_v38, -inf  ;;  %v4241_v56 = vadd.f32 %v8427_v47, %v4240_v43  ;;  %v4344_v57 = vsel %vm1241_vm4, %v4238_v44, -inf }
 0xfaa   :  { %4339 = vmax.xlane.f32.xlu0 %v4338_v54 }
 0xfab   :  { %v4341_v55 = vsel %vm1241_vm4, %v4194_v63, -inf  ;;  %v4347_v16 = vsel %vm1241_vm4, %v4241_v56, -inf }
 0xfac   :  { %4342 = vmax.xlane.f32.xlu1 %v4341_v55 }
 0xfae   :  { %4345 = vmax.xlane.f32.xlu0 %v4344_v57  ;;  %v4284_v61 = vpop.f32.mrb[64].mxu1  ;;  %v4331_v62 = vpop.f32.mrb[68].mxu0 }
 0xfaf   :  { %v4285_v45 = vadd.f32 %v8426_v37, %v4284_v61  ;;  %v7885_v53 = vpop.f32.mrb[65].mxu1  ;;  %v7891_v46 = vpop.f32.mrb[69].mxu0  ;;  %v4332_v19 = vadd.f32 %v8426_v37, %v4331_v62 }
 0xfb0   :  { %v4287_v58 = vpop.f32.mrb[66].mxu1  ;;  %v4334_v8 = vpop.f32.mrb[70].mxu0 }
 0xfb1   :  { %v4288_v50 = vadd.f32 %v8427_v47, %v4287_v58  ;;  %v7886_v3 = vpop.f32.mrb[67].mxu1  ;;  %v7892_v15 = vpop.f32.mrb[71].mxu0  ;;  %v4350_v5 = vsel %vm1241_vm4, %v4285_v45, -inf  ;;  %v4335_v17 = vadd.f32 %v8427_v47, %v4334_v8  ;;  %v4356_v18 = vsel %vm1241_vm4, %v4332_v19, -inf }
 0xfb2   :  { %4348 = vmax.xlane.f32.xlu0 %v4347_v16  ;;  %4351 = vmax.xlane.f32.xlu1 %v4350_v5  ;;  %v3927_v15 = vld [vmem:[#allocation40 + $0x10] sm:$0xff]  ;;  %v3928_v16 = vld [vmem:[#allocation40 + $0x18] sm:$0xff]  ;;  %v3926_v5 = vld [vmem:[#allocation40 + $0x8] sm:$0xff] }
 0xfb3   :  { %v4353_v12 = vsel %vm1241_vm4, %v4288_v50, -inf  ;;  %v4359_v39 = vsel %vm1241_vm4, %v4335_v17, -inf }
 0xfb6   :  { %4357 = vmax.xlane.f32.xlu1 %v4356_v18  ;;  %4354 = vmax.xlane.f32.xlu0 %v4353_v12 }
 0xfba   :  { %4360 = vmax.xlane.f32.xlu0 %v4359_v39 }
 0xfc7   :  { %3931 = vperm.xlu1 %8023, %v3925_v23  }
0x1037   :  { %v4340_v24 = vpop.xlane.xlu0 %4339 }
0x1038   :  { %v4362_v49 = vsub.f32 %v4191_v38, %v4340_v24 }
0x1039   :  { %v4343_v25 = vpop.xlane.xlu1 %4342 }
0x103a   :  { %v4370_v26 = vmul.f32 1.442695, %v4362_v49  ;;  %v4363_v27 = vsub.f32 %v4194_v63, %v4343_v25 }
0x103b   :  { %v4346_v29 = vpop.xlane.xlu0 %4345 }
0x103c   :  { %8386 = vpow2.f32 %v4370_v26  ;;  %v4372_v30 = vmul.f32 1.442695, %v4363_v27  ;;  %v4364_v21 = vsub.f32 %v4238_v44, %v4346_v29 }
0x103e   :  { %8388 = vpow2.f32 %v4372_v30  ;;  %v4374_v31 = vmul.f32 1.442695, %v4364_v21 }
0x103f   :  { %v4349_v22 = vpop.xlane.xlu0 %4348  ;;  %v4352_v32 = vpop.xlane.xlu1 %4351 }
0x1040   :  { %8390 = vpow2.f32 %v4374_v31  ;;  %v4365_v33 = vsub.f32 %v4241_v56, %v4349_v22  ;;  %v4366_v34 = vsub.f32 %v4285_v45, %v4352_v32 }
0x1042   :  { %v4376_v35 = vmul.f32 1.442695, %v4365_v33  ;;  %v4378_v36 = vmul.f32 1.442695, %v4366_v34 }
0x1043   :  { %v4358_v37 = vpop.xlane.xlu1 %4357  ;;  %v4355_v40 = vpop.xlane.xlu0 %4354 }
0x1044   :  { %8392 = vpow2.f32 %v4376_v35  ;;  %v4368_v38 = vsub.f32 %v4332_v19, %v4358_v37  ;;  %v4367_v41 = vsub.f32 %v4288_v50, %v4355_v40 }
0x1045   :  { %8394 = vpow2.f32 %v4378_v36 }
0x1046   :  { %v8387_v42 = vpop.eup %8386  ;;  %v4382_v43 = vmul.f32 1.442695, %v4368_v38  ;;  %v4380_v47 = vmul.f32 1.442695, %v4367_v41 }
0x1047   :  { %v4361_v63 = vpop.xlane.xlu0 %4360  ;;  %v4386_v44 = vsel %vm1241_vm4, %v8387_v42, 0.0 }
0x1048   :  { %v8389_v48 = vpop.eup %8388  ;;  %8396 = vpow2.f32 %v4382_v43  ;;  %v4369_v59 = vsub.f32 %v4335_v17, %v4361_v63  ;;  %4387 = vadd.xlane.f32.xlu1 %v4386_v44  ;;  %v3932_v17 = vpop.permute.xlu1 %3931 }
0x1049   :  { %8398 = vpow2.f32 %v4380_v47  ;;  %v4389_v54 = vsel %vm1241_vm4, %v8389_v48, 0.0  ;;  %v4000_v34 = vadd.f32 %v10042_v7, %v3932_v17 }
0x104a   :  { %v8391_v55 = vpop.eup %8390  ;;  %v4384_v56 = vmul.f32 1.442695, %v4369_v59  ;;  %4390 = vadd.xlane.f32.xlu0 %v4389_v54 }
0x104b   :  { %v4392_v57 = vsel %vm1241_vm4, %v8391_v55, 0.0  ;;  %v4426_v38 = vpack.c.bf16 %v4000_v34, %v4000_v34 }
0x104c   :  { %8400 = vpow2.f32 %v4384_v56  ;;  %4393 = vadd.xlane.f32.xlu1 %v4392_v57 }
0x104e   :  { %v8393_v61 = vpop.eup %8392 }
0x104f   :  { %v8395_v62 = vpop.eup %8394  ;;  %v4395_v45 = vsel %vm1241_vm4, %v8393_v61, 0.0 }
0x1050   :  { %v4398_v53 = vsel %vm1241_vm4, %v8395_v62, 0.0  ;;  %4396 = vadd.xlane.f32.xlu0 %v4395_v45 }
0x1051   :  { %4399 = vadd.xlane.f32.xlu1 %v4398_v53 }
0x1052   :  { %v8397_v46 = vpop.eup %8396 }
0x1053   :  { %v8399_v58 = vpop.eup %8398  ;;  %v4404_v8 = vsel %vm1241_vm4, %v8397_v46, 0.0 }
0x1054   :  { %v4401_v19 = vsel %vm1241_vm4, %v8399_v58, 0.0 }
0x1055   :  { %4405 = vadd.xlane.f32.xlu1 %v4404_v8  ;;  %4402 = vadd.xlane.f32.xlu0 %v4401_v19  ;;  %v8215_v19 = vld [vmem:[#allocation41 + $0x8] sm:$0xff]  }
0x1056   :  { %v8401_v50 = vpop.eup %8400 }
0x1057   :  { %v4407_v3 = vsel %vm1241_vm4, %v8401_v50, 0.0 }
0x1059   :  { %4408 = vadd.xlane.f32.xlu0 %v4407_v3 }
0x1066   :  { %3941 = vperm.xlu1 %8023, %v3927_v15  }
0x106a   :  { %3946 = vperm.xlu1 %8023, %v3928_v16  }
0x106f   :  { %3936 = vperm.xlu0 %8022, %v3926_v5  }
0x10d5   :  { %v4388_v18 = vpop.xlane.xlu1 %4387 }
0x10d6   :  { %8402 = vrcp.f32 %v4388_v18 }
0x10d7   :  { %v4391_v12 = vpop.xlane.xlu0 %4390 }
0x10d8   :  { %8404 = vrcp.f32 %v4391_v12 }
0x10d9   :  { %v4394_v39 = vpop.xlane.xlu1 %4393 }
0x10da   :  { %8406 = vrcp.f32 %v4394_v39 }
0x10dd   :  { %v4397_v23 = vpop.xlane.xlu0 %4396 }
0x10de   :  { %v4400_v24 = vpop.xlane.xlu1 %4399  ;;  %8408 = vrcp.f32 %v4397_v23 }
0x10df   :  { %8410 = vrcp.f32 %v4400_v24 }
0x10e0   :  { %v8403_v49 = vpop.eup %8402 }
0x10e1   :  { %v4418_v29 = vmul.f32 %v8403_v49, %v8387_v42 }
0x10e2   :  { %v8405_v25 = vpop.eup %8404  ;;  %v4406_v26 = vpop.xlane.xlu1 %4405 }
0x10e3   :  { %v4403_v27 = vpop.xlane.xlu0 %4402  ;;  %v4419_v30 = vmul.f32 %v8405_v25, %v8389_v48 }
0x10e4   :  { %8412 = vrcp.f32 %v4403_v27  ;;  %v8407_v31 = vpop.eup %8406 }
0x10e5   :  { %8414 = vrcp.f32 %v4406_v26  ;;  %v4430_v21 = vpack.c.bf16 %v4419_v30, %v4418_v29  ;;  %v4420_v35 = vmul.f32 %v8407_v31, %v8391_v55  ;;  %v7185_v31 = vld [vmem:[#allocation43] ss:$0 sm:$0xff] }
0x10e6   :  { %v3942_v63 = vpop.permute.xlu1 %3941 }
0x10e7   :  { %v4409_v22 = vpop.xlane.xlu0 %4408  ;;  %v4438_v32 = vsel %vm1241_vm4, %v4430_v21, 0 }
0x10e8   :  { %8416 = vrcp.f32 %v4409_v22  ;;  %v8409_v33 = vpop.eup %8408  ;;  %7894 = vmatpush3.bf16.xpose.msra.mxu1 %v4438_v32 }
0x10e9   :  { %v4421_v36 = vmul.f32 %v8409_v33, %v8393_v61  ;;  %7905 = vmatprep.subr.bf16.mxu1 %v9384_v20  ;;  %v8411_v40 = vpop.eup %8410 }
0x10ea   :  { %v4422_v48 = vmul.f32 %v8411_v40, %v8395_v62  ;;  %v3947_v53 = vpop.permute.xlu1 %3946 }
0x10eb   :  { %v4431_v37 = vpack.c.bf16 %v4421_v36, %v4420_v35 }
0x10ed   :  { %v4484_v41 = vsel %vm1241_vm4, %v4431_v37, 0 }
0x10ee   :  { %v8413_v42 = vpop.eup %8412  ;;  %v3937_v43 = vpop.permute.xlu0 %3936  ;;  %7900 = vmatpush3.bf16.xpose.msra.mxu0 %v4484_v41 }
0x10ef   :  { %v8415_v47 = vpop.eup %8414  ;;  %v4003_v44 = vadd.f32 %v10046_v9, %v3937_v43  ;;  %7896 = vmatmul.mubr.msk.bf16.vlgmr.msra.gmra.mrb[68].mxu1 %vm1241_vm4, %v4426_v38  ;;  %v4423_v7 = vmul.f32 %v8413_v42, %v8399_v58  ;;  %7911 = vmatprep.subr.bf16.mxu0 %v9384_v20  ;;  %v4008_v9 = vadd.f32 %v10040_v60, %v3942_v63  ;;  %v8214_v60 = vld [vmem:[#allocation41] sm:$0xff]  }
0x10f0   :  { %7907 = vmatprep.mubr.msk.bf16.mxu1 %vm9385_vm2, %v9384_v20  ;;  %v4424_v55 = vmul.f32 %v8415_v47, %v8397_v46  ;;  %v4011_v46 = vadd.f32 %v10044_v52, %v3947_v53 }
0x10f1   :  { %v4432_v54 = vpack.c.bf16 %v4423_v7, %v4422_v48  ;;  %v4427_v57 = vpack.c.bf16 %v4003_v44, %v4003_v44  ;;  %v4428_v58 = vpack.c.bf16 %v4008_v9, %v4008_v9 }
0x10f2   :  { %v8417_v59 = vpop.eup %8416  ;;  %v4429_v8 = vpack.c.bf16 %v4011_v46, %v4011_v46  ;;  %v4774_v46 = vld [vmem:[#allocation47 + $0xc0] sm:$0xff] }
0x10f3   :  { %v4425_v56 = vmul.f32 %v8417_v59, %v8401_v50  ;;  %v4530_v61 = vsel %vm1241_vm4, %v4432_v54, 0 }
0x10f4   :  { %7906 = vmatpush3.bf16.xpose.msra.mxu1 %v4530_v61  ;;  %v4759_v61 = vld [vmem:[#allocation47 + $0x48] sm:$0xff] }
0x10f5   :  { %v4433_v45 = vpack.c.bf16 %v4425_v56, %v4424_v55  ;;  %7902 = vmatmul.mubr.msk.bf16.vlgmr.msra.gmra.mrb[72].mxu0 %vm1241_vm4, %v4427_v57  ;;  %7917 = vmatprep.subr.bf16.mxu1 %v9384_v20  ;;  %v4750_v55 = vld [vmem:[#allocation47] sm:$0xff]  ;;  %v4751_v56 = vld [vmem:[#allocation47 + $0x8] sm:$0xff] }
0x10f6   :  { %7913 = vmatprep.mubr.msk.bf16.mxu0 %vm9385_vm2, %v9384_v20  ;;  %v7193_v9 = vcombine.low %v4751_v56, %v4759_v61  ;;  %v7194_v53 = vcombine.high %v4751_v56, %v4759_v61  ;;  %v4778_v56 = vld [vmem:[#allocation47 + $0xe0] sm:$0xff]  ;;  %v4779_v61 = vld [vmem:[#allocation47 + $0xe8] sm:$0xff] }
0x10f7   :  { %v4576_v62 = vsel %vm1241_vm4, %v4433_v45, 0 }
0x10f8   :  { %7912 = vmatpush3.bf16.xpose.msra.mxu0 %v4576_v62  ;;  %v4766_v62 = vld [vmem:[#allocation47 + $0x80] sm:$0xff] }
0x10fb   :  { %7908 = vmatmul.mubr.msk.bf16.vlgmr.msra.gmra.mrb[72].mxu1 %vm1241_vm4, %v4428_v58  ;;  %v4767_v58 = vld [vmem:[#allocation47 + $0x88] sm:$0xff] }
0x10fc   :  { %7921 = vmatprep.mubr.msk.bf16.mxu1 %vm9385_vm2, %v9384_v20  ;;  %7918 = vmatpush3.bf16.msra.mxu1 %v8214_v60  ;;  %v4775_v60 = vld [vmem:[#allocation47 + $0xc8] sm:$0xff] }
0x10fd   :  { %7919 = vmatprep.subr.bf16.mxu1 %v9384_v20 }
0x10ff   :  { %7914 = vmatmul.mubr.msk.bf16.vlgmr.msra.gmra.mrb[76].mxu0 %vm1241_vm4, %v4429_v8  ;;  %v7208_v8 = vcombine.high %v4766_v62, %v4774_v46 }
0x1100   :  { %5061 = vmatprep.mubr.bf16.mxu0 %v9383_v0  ;;  %7920 = vmatpush3.bf16.msra.mxu1 %v8215_v19  ;;  %v7207_v19 = vcombine.low %v4766_v62, %v4774_v46  ;;  %v4756_v46 = vld [vmem:[#allocation47 + $0x30] sm:$0xff] }
0x1101   :  { %5072 = vmatprep.subr.bf16.mxu1 %v7194_v53 }
0x11c2   :  { %v4474_v50 = vpop.f32.mrb[68].mxu1 }
0x11c3   :  { %v7897_v3 = vpop.f32.mrb[69].mxu1 }
0x11c4   :  { %v4477_v52 = vpop.f32.mrb[70].mxu1  ;;  %v7210_v3 = vcombine.high %v4767_v58, %v4775_v60 }
0x11c5   :  { %v7898_v15 = vpop.f32.mrb[71].mxu1  ;;  %v4752_v52 = vld [vmem:[#allocation47 + $0x10] sm:$0xff] }
0x11c6   :  { %v4760_v15 = vld [vmem:[#allocation47 + $0x50] sm:$0xff] }
0x11c8   :  { %v4520_v16 = vpop.f32.mrb[72].mxu0 }
0x11c9   :  { %v4618_v5 = vpack.c.bf16 %v4520_v16, %v4474_v50  ;;  %v7903_v17 = vpop.f32.mrb[73].mxu0  ;;  %v7209_v50 = vcombine.low %v4767_v58, %v4775_v60  ;;  %v4753_v16 = vld [vmem:[#allocation47 + $0x18] sm:$0xff]  ;;  %v4764_v58 = vld [vmem:[#allocation47 + $0x70] sm:$0xff] }
0x11ca   :  { %v4523_v18 = vpop.f32.mrb[74].mxu0  ;;  %v4761_v17 = vld [vmem:[#allocation47 + $0x58] sm:$0xff] }
0x11cb   :  { %v7904_v12 = vpop.f32.mrb[75].mxu0  ;;  %4631 = vxpose.xlu0.c.b16.start [1/2] (short) (narrow) %v4618_v5, 16  ;;  %v7196_v5 = vcombine.high %v4752_v52, %v4760_v15  ;;  %v7195_v18 = vcombine.low %v4752_v52, %v4760_v15  ;;  %v4765_v60 = vld [vmem:[#allocation47 + $0x78] sm:$0xff]  ;;  %v4772_v15 = vld [vmem:[#allocation47 + $0xb0] sm:$0xff] }
0x11cc   :  { %v7197_v12 = vcombine.low %v4753_v16, %v4761_v17 }
0x11ce   :  { %v4566_v39 = vpop.f32.mrb[72].mxu1 }
0x11cf   :  { %v7909_v23 = vpop.f32.mrb[73].mxu1 }
0x11d0   :  { %v4569_v24 = vpop.f32.mrb[74].mxu1 }
0x11d1   :  { %v7910_v49 = vpop.f32.mrb[75].mxu1 }
0x11d2   :  { %v4612_v25 = vpop.f32.mrb[76].mxu0 }
0x11d3   :  { %v4619_v26 = vpack.c.bf16 %v4612_v25, %v4566_v39  ;;  %v7915_v27 = vpop.f32.mrb[77].mxu0  ;;  %v7198_v39 = vcombine.high %v4753_v16, %v4761_v17  ;;  %v4780_v16 = vld [vmem:[#allocation47 + $0xf0] sm:$0xff]  ;;  %v4781_v17 = vld [vmem:[#allocation47 + $0xf8] sm:$0xff] }
0x11d4   :  { %v4615_v29 = vpop.f32.mrb[78].mxu0 }
0x11d5   :  { %v7916_v30 = vpop.f32.mrb[79].mxu0  ;;  %4632 = vxpose.xlu0.c.b16.end [2/2] (short) (narrow) %v4619_v26, 16 }
0x1237   :  { %v4639_v21 = vpop.trf.xlu0 }
0x1238   :  { %7922 = vmatmul.mubr.msk.bf16.vlgmr.msra.gmra.mrb[76].mxu1 %vm670_vm0, %v4639_v21  ;;  %v7189_v21 = vld [vmem:[#allocation44] ss:$0 sm:$0xff] }
0x1239   :  { %5104 = vmatprep.mubr.bf16.mxu1 %v9383_v0  ;;  %5073 = vmatpush1.bf16.msra.mxu1 %v7193_v9 }
0x123a   :  { %5074 = vmatprep.subr.bf16.mxu1 %v7210_v3  ;;  %v7204_v3 = vcombine.high %v4756_v46, %v4764_v58 }
0x123d   :  { %5075 = vmatpush1.bf16.msra.mxu1 %v7209_v50 }
0x123e   :  { %5158 = vmatprep.subr.bf16.mxu1 %v7198_v39  ;;  %v7220_v39 = vcombine.high %v4772_v15, %v4780_v16 }
0x130b   :  { %v4696_v22 = vpop.f32.mrb[76].mxu1 }
0x130c   :  { %v4697_v32 = vadd.f32 %v7185_v31, %v4696_v22  ;;  %v7923_v33 = vpop.f32.mrb[77].mxu1 }
0x130d   :  { %v4699_v34 = vpop.f32.mrb[78].mxu1  ;;  %v7190_v33 = vld [vmem:[#allocation46] ss:$0 sm:$0xff] }
0x130e   :  { %v4700_v35 = vadd.f32 %v7185_v31, %v4699_v34  ;;  %v7924_v36 = vpop.f32.mrb[79].mxu1  ;;  %v4703_v37 = vadd.f32 %v4697_v32, %v10016_v51 }
0x130f   :  { %v4776_v36 = vld [vmem:[#allocation47 + $0xd0] sm:$0xff] }
0x1310   :  { %v4707_v40 = vsel %vm670_vm0, %v4703_v37, 0.0  ;;  %v4704_v38 = vadd.f32 %v4700_v35, %v10018_v28  ;;  %v4758_v28 = vld [vmem:[#allocation47 + $0x40] sm:$0xff]  ;;  %v4768_v35 = vld [vmem:[#allocation47 + $0x90] sm:$0xff] }
0x1311   :  { %4708 = vadd.xlane.f32.xlu1 %v4707_v40  ;;  %v7192_v57 = vcombine.high %v4750_v55, %v4758_v28  ;;  %v7191_v45 = vcombine.low %v4750_v55, %v4758_v28  ;;  %v4777_v40 = vld [vmem:[#allocation47 + $0xd8] sm:$0xff]  ;;  %v4770_v28 = vld [vmem:[#allocation47 + $0xa0] sm:$0xff] }
0x1312   :  { %v4710_v41 = vsel %vm670_vm0, %v4704_v38, 0.0  ;;  %v7216_v53 = vcombine.high %v4770_v28, %v4778_v56 }
0x1313   :  { %4711 = vadd.xlane.f32.xlu0 %v4710_v41  ;;  %5029 = vmatprep.subr.bf16.mxu0 %v7192_v57  ;;  %v4771_v57 = vld [vmem:[#allocation47 + $0xa8] sm:$0xff] }
0x1314   :  { %5030 = vmatpush1.bf16.msra.mxu0 %v7191_v45  ;;  %v7218_v62 = vcombine.high %v4771_v57, %v4779_v61  ;;  %v7217_v50 = vcombine.low %v4771_v57, %v4779_v61  ;;  %v8245_v57 = vld [vmem:[#allocation50 + $0xf8] sm:$0xff]  }
0x1315   :  { %5031 = vmatprep.subr.bf16.mxu0 %v7208_v8  ;;  %v4757_v8 = vld [vmem:[#allocation47 + $0x38] sm:$0xff]  ;;  %v8246_v61 = vld [vmem:[#allocation50 + $0x38] sm:$0xff]  }
0x1316   :  { %v7206_v52 = vcombine.high %v4757_v8, %v4765_v60 }
0x1318   :  { %5032 = vmatpush1.bf16.msra.mxu0 %v7207_v19  ;;  %v7215_v19 = vcombine.low %v4770_v28, %v4778_v56  ;;  %v8243_v28 = vld [vmem:[#allocation50 + $0xb0] sm:$0xff]   ;;  %v8244_v56 = vld [vmem:[#allocation50 + $0x78] sm:$0xff]  }
0x1319   :  { %5115 = vmatprep.subr.bf16.mxu0 %v7196_v5  ;;  %v4773_v5 = vld [vmem:[#allocation47 + $0xb8] sm:$0xff] }
0x139e   :  { %v4709_v42 = vpop.xlane.xlu1 %4708 }
0x139f   :  { %v4713_v43 = vmul.f32 0.03125, %v4709_v42 }
0x13a0   :  { %v4712_v47 = vpop.xlane.xlu0 %4711 }
0x13a1   :  { %v4715_v63 = vsub.f32 %v4703_v37, %v4713_v43  ;;  %v4714_v44 = vmul.f32 0.03125, %v4712_v47  ;;  %v4769_v37 = vld [vmem:[#allocation47 + $0x98] sm:$0xff]  ;;  %v7212_v43 = vcombine.high %v4768_v35, %v4776_v36 }
0x13a2   :  { %v7214_v47 = vcombine.high %v4769_v37, %v4777_v40 }
0x13a3   :  { %v4716_v48 = vsub.f32 %v4704_v38, %v4714_v44  ;;  %v4717_v7 = vmul.f32 %v4715_v63, %v4715_v63  ;;  %v4762_v44 = vld [vmem:[#allocation47 + $0x60] sm:$0xff] }
0x13a5   :  { %v4719_v59 = vsel %vm670_vm0, %v4717_v7, 0.0  ;;  %v4718_v54 = vmul.f32 %v4716_v48, %v4716_v48  ;;  %v4755_v7 = vld [vmem:[#allocation47 + $0x28] sm:$0xff] }
0x13a6   :  { %4720 = vadd.xlane.f32.xlu1 %v4719_v59  ;;  %v7211_v59 = vcombine.low %v4768_v35, %v4776_v36  ;;  %v8228_v35 = vld [vmem:[#allocation50 + $0x58] sm:$0xff]  }
0x13a7   :  { %v4722_v51 = vsel %vm670_vm0, %v4718_v54, 0.0  ;;  %v7213_v54 = vcombine.low %v4769_v37, %v4777_v40  ;;  %v8229_v36 = vld [vmem:[#allocation50 + $0xd8] sm:$0xff]  }
0x13a8   :  { %v8230_v37 = vld [vmem:[#allocation50 + $0x18] sm:$0xff]  }
0x13a9   :  { %v8231_v40 = vld [vmem:[#allocation50 + $0x98] sm:$0xff]  }
0x13aa   :  { %4723 = vadd.xlane.f32.xlu1 %v4722_v51 }
0x1433   :  { %v4721_v23 = vpop.xlane.xlu1 %4720 }
0x1434   :  { %v4725_v24 = vmul.f32 0.03125, %v4721_v23  ;;  %v7222_v23 = vcombine.high %v4773_v5, %v4781_v17 }
0x1436   :  { %v4727_v49 = vadd.f32 1e-05, %v4725_v24  ;;  %v7219_v24 = vcombine.low %v4772_v15, %v4780_v16 }
0x1437   :  { %v4724_v25 = vpop.xlane.xlu1 %4723 }
0x1438   :  { %8418 = vrsqrt.f32 %v4727_v49  ;;  %v4726_v26 = vmul.f32 0.03125, %v4724_v25  ;;  %v7221_v49 = vcombine.low %v4773_v5, %v4781_v17  ;;  %v8216_v25 = vld [vmem:[#allocation50 + $0x40] sm:$0xff]  }
0x143a   :  { %v4728_v27 = vadd.f32 1e-05, %v4726_v26  ;;  %v8217_v26 = vld [vmem:[#allocation50 + $0xc0] sm:$0xff]  }
0x143c   :  { %8420 = vrsqrt.f32 %v4728_v27  ;;  %v8218_v27 = vld [vmem:[#allocation50] sm:$0xff]  }
0x1442   :  { %v8419_v29 = vpop.eup %8418 }
0x1443   :  { %v4731_v30 = vmul.f32 %v8419_v29, %v4715_v63  ;;  %v4754_v63 = vld [vmem:[#allocation47 + $0x20] sm:$0xff]  ;;  %v8219_v29 = vld [vmem:[#allocation50 + $0x80] sm:$0xff]  }
0x1444   :  { %v7200_v51 = vcombine.high %v4754_v63, %v4762_v44  ;;  %v7199_v45 = vcombine.low %v4754_v63, %v4762_v44  ;;  %v8235_v63 = vld [vmem:[#allocation50 + $0xa0] sm:$0xff]   ;;  %v8236_v44 = vld [vmem:[#allocation50 + $0x68] sm:$0xff]  }
0x1445   :  { %v4739_v22 = vmul.f32 %v7189_v21, %v4731_v30  ;;  %v8220_v30 = vld [vmem:[#allocation50 + $0x48] sm:$0xff]  }
0x1446   :  { %v8421_v31 = vpop.eup %8420 }
0x1447   :  { %v4732_v32 = vmul.f32 %v8421_v31, %v4716_v48  ;;  %v10111_v38 = vadd.f32 %v7190_v33, %v4739_v22  ;;  %v4763_v48 = vld [vmem:[#allocation47 + $0x68] sm:$0xff]  ;;  %v8222_v31 = vld [vmem:[#allocation50 + $0x8] sm:$0xff]  }
0x1448   :  { %v7202_v55 = vcombine.high %v4755_v7, %v4763_v48  ;;  %v7201_v9 = vcombine.low %v4755_v7, %v4763_v48  ;;  %v8223_v22 = vld [vmem:[#allocation50 + $0x88] sm:$0xff]  }
0x1449   :  { %v4740_v34 = vmul.f32 %v7189_v21, %v4732_v32  ;;  %v8221_v21 = vld [vmem:[#allocation50 + $0xc8] sm:$0xff]   ;;  %v8225_v32 = vld [vmem:[#allocation50 + $0xd0] sm:$0xff]  }
0x144a   :  { %v8237_v7 = vld [vmem:[#allocation50 + $0xe8] sm:$0xff]  }
0x144b   :  { %v10113_v41 = vadd.f32 %v7190_v33, %v4740_v34  ;;  %v8226_v33 = vld [vmem:[#allocation50 + $0x10] sm:$0xff]   ;;  %v8238_v48 = vld [vmem:[#allocation50 + $0x28] sm:$0xff]  }
0x144c   :  { %v8227_v34 = vld [vmem:[#allocation50 + $0x90] sm:$0xff]  }
0x144d   :  { %v10117_v42 = vpack.c.bf16 %v10113_v41, %v10111_v38 }
0x144f   :  { %7223 = vmatmul.mubr.msk.bf16.vlgmr.msra.gmra.mrb[80].mxu0 %vm670_vm0, %v10117_v42  ;;  %7224 = vmatmul.mubr.msk.bf16.vlgmr.msra.gmra.mrb[80].mxu1 %vm670_vm0, %v10117_v42 }
0x1450   :  { %5116 = vmatpush1.bf16.msra.mxu0 %v7195_v18  ;;  %5159 = vmatpush1.bf16.msra.mxu1 %v7197_v12  ;;  %v7203_v18 = vcombine.low %v4756_v46, %v4764_v58  ;;  %v7205_v12 = vcombine.low %v4757_v8, %v4765_v60 }
0x1451   :  { %5117 = vmatprep.subr.bf16.mxu0 %v7212_v43  ;;  %5160 = vmatprep.subr.bf16.mxu1 %v7214_v47  ;;  %v8233_v43 = vld [vmem:[#allocation50 + $0xe0] sm:$0xff]  }
0x1452   :  { %5147 = vmatprep.mubr.bf16.mxu0 %v9383_v0  ;;  %5190 = vmatprep.mubr.bf16.mxu1 %v9383_v0  ;;  %v8234_v47 = vld [vmem:[#allocation50 + $0x20] sm:$0xff]  }
0x1454   :  { %5118 = vmatpush1.bf16.msra.mxu0 %v7211_v59  ;;  %5161 = vmatpush1.bf16.msra.mxu1 %v7213_v54  ;;  %v8239_v59 = vld [vmem:[#allocation50 + $0xa8] sm:$0xff]   ;;  %v8240_v54 = vld [vmem:[#allocation50 + $0x70] sm:$0xff]  }
0x1455   :  { %5201 = vmatprep.subr.bf16.mxu0 %v7200_v51  ;;  %5244 = vmatprep.subr.bf16.mxu1 %v7202_v55  ;;  %v8241_v51 = vld [vmem:[#allocation50 + $0xf0] sm:$0xff]  }
0x1456   :  { %v8242_v55 = vld [vmem:[#allocation50 + $0x30] sm:$0xff]  }
0x1457   :  { %7225 = vmatmul.mubr.msk.bf16.vlgmr.msra.gmra.mrb[84].mxu0 %vm670_vm0, %v10117_v42  ;;  %7226 = vmatmul.mubr.msk.bf16.vlgmr.msra.gmra.mrb[84].mxu1 %vm670_vm0, %v10117_v42 }
0x1458   :  { %5202 = vmatpush1.bf16.msra.mxu0 %v7199_v45  ;;  %5245 = vmatpush1.bf16.msra.mxu1 %v7201_v9  ;;  %v8247_v45 = vld [vmem:[#allocation50 + $0xb8] sm:$0xff]   ;;  %v8248_v9 = vld [vmem:[#allocation50 + $0x140] sm:$0xff]  }
0x1459   :  { %5203 = vmatprep.subr.bf16.mxu0 %v7216_v53  ;;  %5246 = vmatprep.subr.bf16.mxu1 %v7218_v62  ;;  %v8249_v53 = vld [vmem:[#allocation50 + $0x1c0] sm:$0xff]   ;;  %v4782_v62 = vld [vmem:[#allocation49] sm:$0xff] }
0x145a   :  { %5233 = vmatprep.mubr.bf16.mxu0 %v9383_v0  ;;  %5276 = vmatprep.mubr.bf16.mxu1 %v9383_v0  ;;  %v4789_v46 = vrot.slane %v4782_v62, %v9936_v1  ;;  %v4797_v58 = vrot.slane %v4782_v62, %v9938_v2  ;;  %v4793_v8 = vrot.slane %v4782_v62, %v9940_v6 }
0x145b   :  { %v4801_v60 = vrot.slane %v4782_v62, %v9942_v4 }
0x145c   :  { %5204 = vmatpush1.bf16.msra.mxu0 %v7215_v19  ;;  %5247 = vmatpush1.bf16.msra.mxu1 %v7217_v50 }
0x145d   :  { %5287 = vmatprep.subr.bf16.mxu0 %v7204_v3  ;;  %5330 = vmatprep.subr.bf16.mxu1 %v7206_v52 }
0x145f   :  { %7227 = vmatmul.mubr.msk.bf16.vlgmr.msra.gmra.mrb[88].mxu0 %vm670_vm0, %v10117_v42  ;;  %7228 = vmatmul.mubr.msk.bf16.vlgmr.msra.gmra.mrb[88].mxu1 %vm670_vm0, %v10117_v42 }
0x1460   :  { %5288 = vmatpush1.bf16.msra.mxu0 %v7203_v18  ;;  %5331 = vmatpush1.bf16.msra.mxu1 %v7205_v12 }
0x1461   :  { %5289 = vmatprep.subr.bf16.mxu0 %v7220_v39  ;;  %5332 = vmatprep.subr.bf16.mxu1 %v7222_v23 }
0x1462   :  { %5319 = vmatprep.mubr.bf16.mxu0 %v9383_v0  ;;  %5362 = vmatprep.mubr.bf16.mxu1 %v9383_v0  ;;  %v8224_v0 = vld [vmem:[#allocation50 + $0x50] sm:$0xff]  }
0x1464   :  { %5290 = vmatpush1.bf16.msra.mxu0 %v7219_v24  ;;  %5333 = vmatpush1.bf16.msra.mxu1 %v7221_v49 }
0x1465   :  { %7598 = vmatprep.subr.bf16.mxu0 %v8216_v25  ;;  %7620 = vmatprep.subr.bf16.mxu1 %v8217_v26  ;;  %v4805_v25 = vrot.slane %v4782_v62, %v9948_v10  ;;  %v4813_v26 = vrot.slane %v4782_v62, %v9950_v11 }
0x1467   :  { %7229 = vmatmul.mubr.msk.bf16.vlgmr.msra.gmra.mrb[92].mxu0 %vm670_vm0, %v10117_v42  ;;  %7230 = vmatmul.mubr.msk.bf16.vlgmr.msra.gmra.mrb[92].mxu1 %vm670_vm0, %v10117_v42  ;;  %v8232_v42 = vld [vmem:[#allocation50 + $0x60] sm:$0xff]  }
0x1468   :  { %7599 = vmatpush3.bf16.msra.mxu0 %v8218_v27  ;;  %7621 = vmatpush3.bf16.msra.mxu1 %v8219_v29 }
0x1469   :  { %7600 = vmatprep.subr.bf16.mxu0 %v8220_v30  ;;  %7622 = vmatprep.subr.bf16.mxu1 %v8221_v21  ;;  %v4809_v30 = vrot.slane %v4782_v62, %v9952_v13  ;;  %v4817_v21 = vrot.slane %v4782_v62, %v9954_v14 }
0x146c   :  { %7601 = vmatpush3.bf16.msra.mxu0 %v8222_v31  ;;  %7623 = vmatpush3.bf16.msra.mxu1 %v8223_v22 }
0x146d   :  { %7602 = vmatprep.subr.bf16.mxu0 %v8224_v0  ;;  %7624 = vmatprep.subr.bf16.mxu1 %v8225_v32 }
0x1470   :  { %7603 = vmatpush3.bf16.msra.mxu0 %v8226_v33  ;;  %7625 = vmatpush3.bf16.msra.mxu1 %v8227_v34 }
0x1471   :  { %7604 = vmatprep.subr.bf16.mxu0 %v8228_v35  ;;  %7626 = vmatprep.subr.bf16.mxu1 %v8229_v36 }
0x1474   :  { %7605 = vmatpush3.bf16.msra.mxu0 %v8230_v37  ;;  %7627 = vmatpush3.bf16.msra.mxu1 %v8231_v40  ;;  %v10149_v37 = vld [vmem:[#allocation49 + $0x8] sm:$0xff] }
0x1475   :  { %7606 = vmatprep.subr.bf16.mxu0 %v8232_v42  ;;  %7628 = vmatprep.subr.bf16.mxu1 %v8233_v43  ;;  %v4829_v62 = vrot.slane %v10149_v37, %v9938_v2 }
0x1478   :  { %7607 = vmatpush3.bf16.msra.mxu0 %v8234_v47  ;;  %7629 = vmatpush3.bf16.msra.mxu1 %v8235_v63 }
0x1479   :  { %7608 = vmatprep.subr.bf16.mxu0 %v8236_v44  ;;  %7630 = vmatprep.subr.bf16.mxu1 %v8237_v7  ;;  %v8250_v7 = vld [vmem:[#allocation50 + $0x100] sm:$0xff]  }
0x147c   :  { %7609 = vmatpush3.bf16.msra.mxu0 %v8238_v48  ;;  %7631 = vmatpush3.bf16.msra.mxu1 %v8239_v59  ;;  %v8251_v48 = vld [vmem:[#allocation50 + $0x180] sm:$0xff]  }
0x147d   :  { %7610 = vmatprep.subr.bf16.mxu0 %v8240_v54  ;;  %7632 = vmatprep.subr.bf16.mxu1 %v8241_v51 }
0x1480   :  { %7611 = vmatpush3.bf16.msra.mxu0 %v8242_v55  ;;  %7633 = vmatpush3.bf16.msra.mxu1 %v8243_v28  ;;  %v8252_v28 = vld [vmem:[#allocation50 + $0x148] sm:$0xff]  }
0x1481   :  { %7612 = vmatprep.subr.bf16.mxu0 %v8244_v56  ;;  %7634 = vmatprep.subr.bf16.mxu1 %v8245_v57  ;;  %v8253_v56 = vld [vmem:[#allocation50 + $0x1c8] sm:$0xff]   ;;  %v4821_v57 = vrot.slane %v10149_v37, %v9936_v1 }
0x1484   :  { %7613 = vmatpush3.bf16.msra.mxu0 %v8246_v61  ;;  %7635 = vmatpush3.bf16.msra.mxu1 %v8247_v45 }
0x1485   :  { %7642 = vmatprep.subr.bf16.mxu0 %v8248_v9  ;;  %7664 = vmatprep.subr.bf16.mxu1 %v8249_v53 }
0x1522   :  { %v5063_v19 = vpop.f32.mrb[80].mxu0  ;;  %v5106_v50 = vpop.f32.mrb[80].mxu1 }
0x1523   :  { %v5064_v3 = vadd.f32 %v5063_v19, %v4789_v46  ;;  %v5107_v52 = vadd.f32 %v5106_v50, %v4797_v58  ;;  %v5065_v15 = vpop.f32.mrb[81].mxu0  ;;  %v5108_v16 = vpop.f32.mrb[81].mxu1  ;;  %v4825_v19 = vrot.slane %v10149_v37, %v9940_v6 }
0x1524   :  { %v5066_v5 = vadd.f32 %v5065_v15, %v4793_v8  ;;  %v5109_v17 = vadd.f32 %v5108_v16, %v4801_v60  ;;  %v5067_v18 = vpop.f32.mrb[82].mxu0  ;;  %v5110_v12 = vpop.f32.mrb[82].mxu1  ;;  %v4833_v15 = vrot.slane %v10149_v37, %v9942_v4 }
0x1525   :  { %v5068_v39 = vadd.f32 %v5067_v18, %v4789_v46  ;;  %v5111_v23 = vadd.f32 %v5110_v12, %v4797_v58  ;;  %v5069_v24 = vpop.f32.mrb[83].mxu0  ;;  %v5112_v49 = vpop.f32.mrb[83].mxu1  ;;  %v5373_v31 = vmax.f32 %v5064_v3, 0.0  ;;  %v5375_v22 = vmax.f32 %v5107_v52, 0.0  ;;  %v8254_v3 = vld [vmem:[#allocation50 + $0x108] sm:$0xff]   ;;  %v8256_v18 = vld [vmem:[#allocation50 + $0x150] sm:$0xff]  }
0x1526   :  { %v5070_v27 = vadd.f32 %v5069_v24, %v4793_v8  ;;  %v5113_v29 = vadd.f32 %v5112_v49, %v4801_v60  ;;  %v5374_v33 = vmax.f32 %v5066_v5, 0.0  ;;  %v5376_v34 = vmax.f32 %v5109_v17, 0.0  ;;  %v8255_v52 = vld [vmem:[#allocation50 + $0x188] sm:$0xff]   ;;  %v8257_v12 = vld [vmem:[#allocation50 + $0x1d0] sm:$0xff]  }
0x1527   :  { %v5389_v0 = vmax.f32 %v5068_v39, 0.0  ;;  %v5391_v32 = vmax.f32 %v5111_v23, 0.0 }
0x1528   :  { %v5390_v35 = vmax.f32 %v5070_v27, 0.0  ;;  %v5392_v36 = vmax.f32 %v5113_v29, 0.0 }
0x1529   :  { %v5405_v40 = vpack.c.bf16 %v5389_v0, %v5373_v31  ;;  %v5407_v42 = vpack.c.bf16 %v5391_v32, %v5375_v22 }
0x152a   :  { %v5406_v43 = vpack.c.bf16 %v5390_v35, %v5374_v33  ;;  %v5408_v47 = vpack.c.bf16 %v5392_v36, %v5376_v34  ;;  %v5149_v63 = vpop.f32.mrb[84].mxu0  ;;  %v5192_v44 = vpop.f32.mrb[84].mxu1  ;;  %v8260_v33 = vld [vmem:[#allocation50 + $0x158] sm:$0xff]  }
0x152b   :  { %v5150_v59 = vadd.f32 %v5149_v63, %v4805_v25  ;;  %v5193_v54 = vadd.f32 %v5192_v44, %v4813_v26  ;;  %v5151_v51 = vpop.f32.mrb[85].mxu0  ;;  %v5194_v55 = vpop.f32.mrb[85].mxu1  ;;  %v8261_v34 = vld [vmem:[#allocation50 + $0x1d8] sm:$0xff]  }
0x152c   :  { %v5152_v61 = vadd.f32 %v5151_v51, %v4809_v30  ;;  %v5195_v45 = vadd.f32 %v5194_v55, %v4817_v21  ;;  %v5153_v9 = vpop.f32.mrb[86].mxu0  ;;  %v5196_v53 = vpop.f32.mrb[86].mxu1  ;;  %6484 = vmatprep.mubr.bf16.mxu0 %v5406_v43  ;;  %6525 = vmatprep.mubr.bf16.mxu1 %v5408_v47  ;;  %v4837_v43 = vrot.slane %v10149_v37, %v9948_v10  ;;  %v8262_v55 = vld [vmem:[#allocation50 + $0x118] sm:$0xff]  }
0x152d   :  { %v5154_v46 = vadd.f32 %v5153_v9, %v4805_v25  ;;  %v5197_v58 = vadd.f32 %v5196_v53, %v4813_v26  ;;  %v5155_v8 = vpop.f32.mrb[87].mxu0  ;;  %v5198_v60 = vpop.f32.mrb[87].mxu1  ;;  %6485 = vmatmul.mubr.bf16.vlgmr.msra.gmra.mrb[96].mxu0 %v5405_v40  ;;  %6526 = vmatmul.mubr.bf16.vlgmr.msra.gmra.mrb[96].mxu1 %v5407_v42  ;;  %v5377_v16 = vmax.f32 %v5150_v59, 0.0  ;;  %v5379_v2 = vmax.f32 %v5193_v54, 0.0  ;;  %v8264_v9 = vld [vmem:[#allocation50 + $0x160] sm:$0xff]  }
0x152e   :  { %v5156_v50 = vadd.f32 %v5155_v8, %v4809_v30  ;;  %v5199_v1 = vadd.f32 %v5198_v60, %v4817_v21  ;;  %7643 = vmatpush3.bf16.msra.mxu0 %v8250_v7  ;;  %7665 = vmatpush3.bf16.msra.mxu1 %v8251_v48  ;;  %v5378_v39 = vmax.f32 %v5152_v61, 0.0  ;;  %v5380_v23 = vmax.f32 %v5195_v45, 0.0  ;;  %v8258_v30 = vld [vmem:[#allocation50 + $0x110] sm:$0xff]  }
0x152f   :  { %v5393_v5 = vmax.f32 %v5154_v46, 0.0  ;;  %v5395_v17 = vmax.f32 %v5197_v58, 0.0  ;;  %7644 = vmatprep.subr.bf16.mxu0 %v8252_v28  ;;  %7666 = vmatprep.subr.bf16.mxu1 %v8253_v56  ;;  %v8259_v21 = vld [vmem:[#allocation50 + $0x190] sm:$0xff]   ;;  %v4845_v48 = vrot.slane %v10149_v37, %v9950_v11  ;;  %v4841_v59 = vrot.slane %v10149_v37, %v9952_v13  ;;  %v8263_v28 = vld [vmem:[#allocation50 + $0x198] sm:$0xff]   ;;  %v8265_v11 = vld [vmem:[#allocation50 + $0x1e0] sm:$0xff]  }
0x1530   :  { %v5394_v6 = vmax.f32 %v5156_v50, 0.0  ;;  %v5396_v24 = vmax.f32 %v5199_v1, 0.0  ;;  %v4849_v56 = vrot.slane %v10149_v37, %v9954_v14  ;;  %v8266_v50 = vld [vmem:[#allocation50 + $0x120] sm:$0xff]  }
0x1531   :  { %v10159_v49 = vpack.c.bf16 %v5393_v5, %v5377_v16  ;;  %v10161_v25 = vpack.c.bf16 %v5395_v17, %v5379_v2  ;;  %v8267_v1 = vld [vmem:[#allocation50 + $0x1a0] sm:$0xff]   ;;  %v8268_v2 = vld [vmem:[#allocation50 + $0x168] sm:$0xff]  }
0x1532   :  { %v5410_v26 = vpack.c.bf16 %v5394_v6, %v5378_v39  ;;  %v5412_v27 = vpack.c.bf16 %v5396_v24, %v5380_v23  ;;  %7645 = vmatpush3.bf16.msra.mxu0 %v8254_v3  ;;  %7667 = vmatpush3.bf16.msra.mxu1 %v8255_v52  ;;  %v5235_v4 = vpop.f32.mrb[88].mxu0  ;;  %v5278_v29 = vpop.f32.mrb[88].mxu1  ;;  %v8269_v5 = vld [vmem:[#allocation50 + $0x1e8] sm:$0xff]  }
0x1533   :  { %v5236_v31 = vadd.f32 %v5235_v4, %v4821_v57  ;;  %v5279_v22 = vadd.f32 %v5278_v29, %v4829_v62  ;;  %v5237_v0 = vpop.f32.mrb[89].mxu0  ;;  %v5280_v32 = vpop.f32.mrb[89].mxu1  ;;  %7646 = vmatprep.subr.bf16.mxu0 %v8256_v18  ;;  %7668 = vmatprep.subr.bf16.mxu1 %v8257_v12  ;;  %v8270_v29 = vld [vmem:[#allocation50 + $0x128] sm:$0xff]  }
0x1534   :  { %v5238_v35 = vadd.f32 %v5237_v0, %v4825_v19  ;;  %v5281_v36 = vadd.f32 %v5280_v32, %v4833_v15  ;;  %v5239_v40 = vpop.f32.mrb[90].mxu0  ;;  %v5282_v42 = vpop.f32.mrb[90].mxu1  ;;  %6566 = vmatprep.mubr.bf16.mxu0 %v5410_v26  ;;  %6607 = vmatprep.mubr.bf16.mxu1 %v5412_v27  ;;  %v8272_v32 = vld [vmem:[#allocation50 + $0x170] sm:$0xff]  }
0x1535   :  { %v5240_v47 = vadd.f32 %v5239_v40, %v4821_v57  ;;  %v5283_v63 = vadd.f32 %v5282_v42, %v4829_v62  ;;  %v5241_v44 = vpop.f32.mrb[91].mxu0  ;;  %v5284_v7 = vpop.f32.mrb[91].mxu1  ;;  %v5381_v10 = vmax.f32 %v5236_v31, 0.0  ;;  %v5383_v57 = vmax.f32 %v5279_v22, 0.0 }
0x1536   :  { %v5242_v54 = vadd.f32 %v5241_v44, %v4825_v19  ;;  %v5285_v51 = vadd.f32 %v5284_v7, %v4833_v15  ;;  %7647 = vmatpush3.bf16.msra.mxu0 %v8258_v30  ;;  %7669 = vmatpush3.bf16.msra.mxu1 %v8259_v21  ;;  %v5382_v53 = vmax.f32 %v5238_v35, 0.0  ;;  %v5384_v62 = vmax.f32 %v5281_v36, 0.0  ;;  %v8271_v30 = vld [vmem:[#allocation50 + $0x1a8] sm:$0xff]   ;;  %v8274_v44 = vld [vmem:[#allocation50 + $0x130] sm:$0xff]  }
0x1537   :  { %v5397_v61 = vmax.f32 %v5240_v47, 0.0  ;;  %v5399_v45 = vmax.f32 %v5283_v63, 0.0  ;;  %7648 = vmatprep.subr.bf16.mxu0 %v8260_v33  ;;  %7670 = vmatprep.subr.bf16.mxu1 %v8261_v34  ;;  %v8273_v33 = vld [vmem:[#allocation50 + $0x1f0] sm:$0xff]  }
0x1538   :  { %v5398_v13 = vmax.f32 %v5242_v54, 0.0  ;;  %v5400_v46 = vmax.f32 %v5285_v51, 0.0  ;;  %v8275_v7 = vld [vmem:[#allocation50 + $0x1b0] sm:$0xff]   ;;  %v8278_v54 = vld [vmem:[#allocation50 + $0x138] sm:$0xff]  }
0x1539   :  { %v10171_v58 = vpack.c.bf16 %v5397_v61, %v5381_v10  ;;  %v10173_v8 = vpack.c.bf16 %v5399_v45, %v5383_v57  ;;  %v8279_v51 = vld [vmem:[#allocation50 + $0x1b8] sm:$0xff]   ;;  %v8283_v10 = vld [vmem:[#allocation50 + $0x280] sm:$0xff]   ;;  %v8284_v57 = vld [vmem:[#allocation50 + $0x248] sm:$0xff]  }
0x153a   :  { %v10175_v60 = vpack.c.bf16 %v5398_v13, %v5382_v53  ;;  %v10177_v19 = vpack.c.bf16 %v5400_v46, %v5384_v62  ;;  %7649 = vmatpush3.bf16.msra.mxu0 %v8262_v55  ;;  %7671 = vmatpush3.bf16.msra.mxu1 %v8263_v28  ;;  %v5321_v14 = vpop.f32.mrb[92].mxu0  ;;  %v5364_v37 = vpop.f32.mrb[92].mxu1  ;;  %v8280_v55 = vld [vmem:[#allocation50 + $0x240] sm:$0xff]   ;;  %v8285_v61 = vld [vmem:[#allocation50 + $0x2c8] sm:$0xff]   ;;  %v8289_v53 = vld [vmem:[#allocation50 + $0x2d0] sm:$0xff]  }
0x153b   :  { %v5322_v3 = vadd.f32 %v5321_v14, %v4837_v43  ;;  %v5365_v52 = vadd.f32 %v5364_v37, %v4845_v48  ;;  %v5323_v15 = vpop.f32.mrb[93].mxu0  ;;  %v5366_v16 = vpop.f32.mrb[93].mxu1  ;;  %7650 = vmatprep.subr.bf16.mxu0 %v8264_v9  ;;  %7672 = vmatprep.subr.bf16.mxu1 %v8265_v11  ;;  %v8281_v28 = vld [vmem:[#allocation50 + $0x2c0] sm:$0xff]   ;;  %v8286_v45 = vld [vmem:[#allocation50 + $0x208] sm:$0xff]   ;;  %v8288_v11 = vld [vmem:[#allocation50 + $0x250] sm:$0xff]  }
0x153c   :  { %v5324_v17 = vadd.f32 %v5323_v15, %v4841_v59  ;;  %v5367_v18 = vadd.f32 %v5366_v16, %v4849_v56  ;;  %v5325_v12 = vpop.f32.mrb[94].mxu0  ;;  %v5368_v39 = vpop.f32.mrb[94].mxu1  ;;  %v8287_v9 = vld [vmem:[#allocation50 + $0x288] sm:$0xff]   ;;  %v8290_v62 = vld [vmem:[#allocation50 + $0x210] sm:$0xff]   ;;  %v8294_v46 = vld [vmem:[#allocation50 + $0x218] sm:$0xff]  }
0x153d   :  { %v5326_v23 = vadd.f32 %v5325_v12, %v4837_v43  ;;  %v5369_v6 = vadd.f32 %v5368_v39, %v4845_v48  ;;  %v5327_v24 = vpop.f32.mrb[95].mxu0  ;;  %v5370_v26 = vpop.f32.mrb[95].mxu1  ;;  %v5385_v21 = vmax.f32 %v5322_v3, 0.0  ;;  %v5387_v31 = vmax.f32 %v5365_v52, 0.0  ;;  %v8276_v48 = vld [vmem:[#allocation50 + $0x178] sm:$0xff]   ;;  %v8291_v13 = vld [vmem:[#allocation50 + $0x290] sm:$0xff]  }
0x153e   :  { %v5328_v27 = vadd.f32 %v5327_v24, %v4841_v59  ;;  %v5371_v4 = vadd.f32 %v5370_v26, %v4849_v56  ;;  %7651 = vmatpush3.bf16.msra.mxu0 %v8266_v50  ;;  %7673 = vmatpush3.bf16.msra.mxu1 %v8267_v1  ;;  %v5386_v34 = vmax.f32 %v5324_v17, 0.0  ;;  %v5388_v35 = vmax.f32 %v5367_v18, 0.0  ;;  %v8277_v59 = vld [vmem:[#allocation50 + $0x1f8] sm:$0xff]   ;;  %v8282_v56 = vld [vmem:[#allocation50 + $0x200] sm:$0xff]   ;;  %v8300_v1 = vld [vmem:[#allocation50 + $0x268] sm:$0xff]  }
0x153f   :  { %v5401_v22 = vmax.f32 %v5326_v23, 0.0  ;;  %v5403_v0 = vmax.f32 %v5369_v6, 0.0  ;;  %7652 = vmatprep.subr.bf16.mxu0 %v8268_v2  ;;  %7674 = vmatprep.subr.bf16.mxu1 %v8269_v5  ;;  %v8296_v14 = vld [vmem:[#allocation50 + $0x260] sm:$0xff]   ;;  %v8301_v3 = vld [vmem:[#allocation50 + $0x2e8] sm:$0xff]   ;;  %v8304_v16 = vld [vmem:[#allocation50 + $0x270] sm:$0xff]  }
0x1540   :  { %v5402_v36 = vmax.f32 %v5328_v27, 0.0  ;;  %v5404_v40 = vmax.f32 %v5371_v4, 0.0  ;;  %v8298_v37 = vld [vmem:[#allocation50 + $0x220] sm:$0xff]   ;;  %v8302_v52 = vld [vmem:[#allocation50 + $0x228] sm:$0xff]   ;;  %v8305_v2 = vld [vmem:[#allocation50 + $0x2f0] sm:$0xff]  }
0x1541   :  { %v10179_v42 = vpack.c.bf16 %v5401_v22, %v5385_v21  ;;  %v10181_v43 = vpack.c.bf16 %v5403_v0, %v5387_v31  ;;  %v8299_v50 = vld [vmem:[#allocation50 + $0x2a0] sm:$0xff]   ;;  %v8303_v15 = vld [vmem:[#allocation50 + $0x2a8] sm:$0xff]   ;;  %v8306_v5 = vld [vmem:[#allocation50 + $0x230] sm:$0xff]  }
0x1542   :  { %v10183_v47 = vpack.c.bf16 %v5402_v36, %v5386_v34  ;;  %v10185_v63 = vpack.c.bf16 %v5404_v40, %v5388_v35  ;;  %7653 = vmatpush3.bf16.msra.mxu0 %v8270_v29  ;;  %7675 = vmatpush3.bf16.msra.mxu1 %v8271_v30  ;;  %v8307_v17 = vld [vmem:[#allocation50 + $0x2b0] sm:$0xff]   ;;  %v8308_v18 = vld [vmem:[#allocation50 + $0x278] sm:$0xff]   ;;  %v8312_v6 = vld [vmem:[#allocation50 + $0x340] sm:$0xff]  }
0x1543   :  { %7654 = vmatprep.subr.bf16.mxu0 %v8272_v32  ;;  %7676 = vmatprep.subr.bf16.mxu1 %v8273_v33  ;;  %v8309_v12 = vld [vmem:[#allocation50 + $0x2f8] sm:$0xff]   ;;  %v8313_v24 = vld [vmem:[#allocation50 + $0x3c0] sm:$0xff]   ;;  %v8316_v4 = vld [vmem:[#allocation50 + $0x348] sm:$0xff]  }
0x1544   :  { %v8310_v39 = vld [vmem:[#allocation50 + $0x238] sm:$0xff]   ;;  %v8314_v26 = vld [vmem:[#allocation50 + $0x300] sm:$0xff]   ;;  %v8317_v29 = vld [vmem:[#allocation50 + $0x3c8] sm:$0xff]  }
0x1545   :  { %v8311_v23 = vld [vmem:[#allocation50 + $0x2b8] sm:$0xff]   ;;  %v8315_v27 = vld [vmem:[#allocation50 + $0x380] sm:$0xff]   ;;  %v8318_v30 = vld [vmem:[#allocation50 + $0x308] sm:$0xff]  }
0x1546   :  { %7655 = vmatpush3.bf16.msra.mxu0 %v8274_v44  ;;  %7677 = vmatpush3.bf16.msra.mxu1 %v8275_v7  ;;  %v8319_v21 = vld [vmem:[#allocation50 + $0x388] sm:$0xff]   ;;  %v8320_v31 = vld [vmem:[#allocation50 + $0x350] sm:$0xff]   ;;  %v8324_v32 = vld [vmem:[#allocation50 + $0x358] sm:$0xff]  }
0x1547   :  { %7656 = vmatprep.subr.bf16.mxu0 %v8276_v48  ;;  %7678 = vmatprep.subr.bf16.mxu1 %v8277_v59  ;;  %v8321_v22 = vld [vmem:[#allocation50 + $0x3d0] sm:$0xff]   ;;  %v8326_v33 = vld [vmem:[#allocation50 + $0x318] sm:$0xff]   ;;  %v8328_v35 = vld [vmem:[#allocation50 + $0x360] sm:$0xff]  }
0x1548   :  { %v8322_v0 = vld [vmem:[#allocation50 + $0x310] sm:$0xff]   ;;  %v8327_v34 = vld [vmem:[#allocation50 + $0x398] sm:$0xff]   ;;  %v8329_v36 = vld [vmem:[#allocation50 + $0x3e0] sm:$0xff]  }
0x1549   :  { %v8330_v40 = vld [vmem:[#allocation50 + $0x320] sm:$0xff]   ;;  %v8333_v44 = vld [vmem:[#allocation50 + $0x3e8] sm:$0xff]   ;;  %v8336_v59 = vld [vmem:[#allocation50 + $0x370] sm:$0xff]  }
0x154a   :  { %7657 = vmatpush3.bf16.msra.mxu0 %v8278_v54  ;;  %7679 = vmatpush3.bf16.msra.mxu1 %v8279_v51  ;;  %v8334_v7 = vld [vmem:[#allocation50 + $0x328] sm:$0xff]   ;;  %v8337_v54 = vld [vmem:[#allocation50 + $0x3f0] sm:$0xff]  }
0x154b   :  { %7686 = vmatprep.subr.bf16.mxu0 %v8280_v55  ;;  %7708 = vmatprep.subr.bf16.mxu1 %v8281_v28  ;;  %v8335_v48 = vld [vmem:[#allocation50 + $0x3a8] sm:$0xff]   ;;  %v8338_v51 = vld [vmem:[#allocation50 + $0x330] sm:$0xff]   ;;  %v8340_v28 = vld [vmem:[#allocation50 + $0x378] sm:$0xff]  }
0x154c   :  { %v8339_v55 = vld [vmem:[#allocation50 + $0x3b0] sm:$0xff]  }
0x154d   :  { %6567 = vmatmul.mubr.bf16.vlgmr.msra.gmra.mrb[100].mxu0 %v10159_v49  ;;  %6608 = vmatmul.mubr.bf16.vlgmr.msra.gmra.mrb[100].mxu1 %v10161_v25  ;;  %v8292_v49 = vld [vmem:[#allocation50 + $0x258] sm:$0xff]  }
0x154e   :  { %7687 = vmatpush3.bf16.msra.mxu0 %v8282_v56  ;;  %6648 = vmatprep.mubr.bf16.mxu0 %v10175_v60  ;;  %v8293_v25 = vld [vmem:[#allocation50 + $0x2d8] sm:$0xff]  }
0x154f   :  { %7709 = vmatpush3.bf16.msra.mxu1 %v8283_v10  ;;  %6689 = vmatprep.mubr.bf16.mxu1 %v10177_v19  ;;  %v8295_v60 = vld [vmem:[#allocation50 + $0x298] sm:$0xff]   ;;  %v8297_v19 = vld [vmem:[#allocation50 + $0x2e0] sm:$0xff]  }
0x1550   :  { %7688 = vmatprep.subr.bf16.mxu0 %v8284_v57  ;;  %7710 = vmatprep.subr.bf16.mxu1 %v8285_v61  ;;  %v8341_v56 = vld [vmem:[#allocation50 + $0x3f8] sm:$0xff]  }
0x1551   :  { %v8342_v10 = vld [vmem:[#allocation50 + $0x338] sm:$0xff]  }
0x1552   :  { %7689 = vmatpush3.bf16.msra.mxu0 %v8286_v45  ;;  %v8343_v57 = vld [vmem:[#allocation50 + $0x3b8] sm:$0xff]  }
0x1553   :  { %7711 = vmatpush3.bf16.msra.mxu1 %v8287_v9  ;;  %7690 = vmatprep.subr.bf16.mxu0 %v8288_v11  ;;  %v7231_v9 = vld [vmem:[#allocation52] ss:$0 sm:$0xff] }
0x1554   :  { %7712 = vmatprep.subr.bf16.mxu1 %v8289_v53 }
0x1556   :  { %7691 = vmatpush3.bf16.msra.mxu0 %v8290_v62 }
0x1557   :  { %7713 = vmatpush3.bf16.msra.mxu1 %v8291_v13  ;;  %7692 = vmatprep.subr.bf16.mxu0 %v8292_v49 }
0x1558   :  { %7714 = vmatprep.subr.bf16.mxu1 %v8293_v25 }
0x155a   :  { %7693 = vmatpush3.bf16.msra.mxu0 %v8294_v46 }
0x155b   :  { %7715 = vmatpush3.bf16.msra.mxu1 %v8295_v60  ;;  %7694 = vmatprep.subr.bf16.mxu0 %v8296_v14 }
0x155c   :  { %7716 = vmatprep.subr.bf16.mxu1 %v8297_v19 }
0x155e   :  { %7695 = vmatpush3.bf16.msra.mxu0 %v8298_v37 }
0x155f   :  { %7717 = vmatpush3.bf16.msra.mxu1 %v8299_v50  ;;  %7696 = vmatprep.subr.bf16.mxu0 %v8300_v1 }
0x1560   :  { %7718 = vmatprep.subr.bf16.mxu1 %v8301_v3 }
0x1562   :  { %7697 = vmatpush3.bf16.msra.mxu0 %v8302_v52 }
0x1563   :  { %7719 = vmatpush3.bf16.msra.mxu1 %v8303_v15  ;;  %7698 = vmatprep.subr.bf16.mxu0 %v8304_v16 }
0x1564   :  { %7720 = vmatprep.subr.bf16.mxu1 %v8305_v2 }
0x1566   :  { %7699 = vmatpush3.bf16.msra.mxu0 %v8306_v5 }
0x1567   :  { %7721 = vmatpush3.bf16.msra.mxu1 %v8307_v17  ;;  %7700 = vmatprep.subr.bf16.mxu0 %v8308_v18 }
0x1568   :  { %7722 = vmatprep.subr.bf16.mxu1 %v8309_v12 }
0x156a   :  { %7701 = vmatpush3.bf16.msra.mxu0 %v8310_v39 }
0x156b   :  { %7723 = vmatpush3.bf16.msra.mxu1 %v8311_v23  ;;  %7730 = vmatprep.subr.bf16.mxu0 %v8312_v6 }
0x156c   :  { %7752 = vmatprep.subr.bf16.mxu1 %v8313_v24 }
0x156d   :  { %6649 = vmatmul.mubr.bf16.vlgmr.msra.gmra.mrb[104].mxu0 %v10171_v58  ;;  %v8323_v58 = vld [vmem:[#allocation50 + $0x390] sm:$0xff]  }
0x156e   :  { %6690 = vmatmul.mubr.bf16.vlgmr.msra.gmra.mrb[104].mxu1 %v10173_v8  ;;  %7731 = vmatpush3.bf16.msra.mxu0 %v8314_v26  ;;  %v8325_v8 = vld [vmem:[#allocation50 + $0x3d8] sm:$0xff]  }
0x156f   :  { %6730 = vmatprep.mubr.bf16.mxu0 %v10183_v47  ;;  %7753 = vmatpush3.bf16.msra.mxu1 %v8315_v27  ;;  %v8331_v47 = vld [vmem:[#allocation50 + $0x3a0] sm:$0xff]  }
0x1570   :  { %6771 = vmatprep.mubr.bf16.mxu1 %v10185_v63  ;;  %7732 = vmatprep.subr.bf16.mxu0 %v8316_v4  ;;  %v8332_v63 = vld [vmem:[#allocation50 + $0x368] sm:$0xff]  }
0x1571   :  { %7754 = vmatprep.subr.bf16.mxu1 %v8317_v29 }
0x1572   :  { %7733 = vmatpush3.bf16.msra.mxu0 %v8318_v30 }
0x1573   :  { %7755 = vmatpush3.bf16.msra.mxu1 %v8319_v21  ;;  %7734 = vmatprep.subr.bf16.mxu0 %v8320_v31 }
0x1574   :  { %7756 = vmatprep.subr.bf16.mxu1 %v8321_v22 }
0x1576   :  { %7735 = vmatpush3.bf16.msra.mxu0 %v8322_v0 }
0x1577   :  { %7757 = vmatpush3.bf16.msra.mxu1 %v8323_v58  ;;  %7736 = vmatprep.subr.bf16.mxu0 %v8324_v32 }
0x1578   :  { %7758 = vmatprep.subr.bf16.mxu1 %v8325_v8 }
0x157a   :  { %7737 = vmatpush3.bf16.msra.mxu0 %v8326_v33 }
0x157b   :  { %7759 = vmatpush3.bf16.msra.mxu1 %v8327_v34  ;;  %7738 = vmatprep.subr.bf16.mxu0 %v8328_v35 }
0x157c   :  { %7760 = vmatprep.subr.bf16.mxu1 %v8329_v36 }
0x157e   :  { %7739 = vmatpush3.bf16.msra.mxu0 %v8330_v40 }
0x157f   :  { %7761 = vmatpush3.bf16.msra.mxu1 %v8331_v47  ;;  %7740 = vmatprep.subr.bf16.mxu0 %v8332_v63 }
0x1580   :  { %7762 = vmatprep.subr.bf16.mxu1 %v8333_v44 }
0x1582   :  { %7741 = vmatpush3.bf16.msra.mxu0 %v8334_v7 }
0x1583   :  { %7763 = vmatpush3.bf16.msra.mxu1 %v8335_v48  ;;  %7742 = vmatprep.subr.bf16.mxu0 %v8336_v59 }
0x1584   :  { %7764 = vmatprep.subr.bf16.mxu1 %v8337_v54 }
0x1586   :  { %7743 = vmatpush3.bf16.msra.mxu0 %v8338_v51 }
0x1587   :  { %7765 = vmatpush3.bf16.msra.mxu1 %v8339_v55  ;;  %7744 = vmatprep.subr.bf16.mxu0 %v8340_v28 }
0x1588   :  { %7766 = vmatprep.subr.bf16.mxu1 %v8341_v56 }
0x158a   :  { %7745 = vmatpush3.bf16.msra.mxu0 %v8342_v10 }
0x158b   :  { %7767 = vmatpush3.bf16.msra.mxu1 %v8343_v57  ;;  %7925 = vmatprep.subr.bf16.mxu0 %v9384_v20 }
0x158d   :  { %6731 = vmatmul.mubr.bf16.vlgmr.msra.gmra.mrb[108].mxu0 %v10179_v42 }
0x158e   :  { %6772 = vmatmul.mubr.bf16.vlgmr.msra.gmra.mrb[108].mxu1 %v10181_v43  ;;  %7929 = vmatprep.mubr.msk.bf16.mxu0 %vm9385_vm2, %v9384_v20 }
0x1600   :  { %v7614_v61 = vpop.f32.mrb[96].mxu0  ;;  %v7636_v45 = vpop.f32.mrb[96].mxu1 }
0x1601   :  { %v7615_v11 = vpop.f32.mrb[97].mxu0  ;;  %v7637_v53 = vpop.f32.mrb[97].mxu1 }
0x1602   :  { %v7616_v62 = vadd.f32 %v7615_v11, %v7614_v61  ;;  %v7638_v13 = vadd.f32 %v7637_v53, %v7636_v45  ;;  %v7617_v49 = vpop.f32.mrb[98].mxu0  ;;  %v7639_v25 = vpop.f32.mrb[98].mxu1 }
0x1603   :  { %v7618_v46 = vpop.f32.mrb[99].mxu0  ;;  %v7640_v60 = vpop.f32.mrb[99].mxu1 }
0x1604   :  { %v6487_v14 = vadd.f32 %v7616_v62, %v7231_v9  ;;  %v7619_v19 = vadd.f32 %v7618_v46, %v7617_v49  ;;  %v7641_v37 = vadd.f32 %v7640_v60, %v7639_v25 }
0x1606   :  { %v6528_v42 = vadd.f32 %v7638_v13, %v6487_v14  ;;  %v6490_v50 = vadd.f32 %v7619_v19, %v7231_v9 }
0x1608   :  { %v6531_v43 = vadd.f32 %v7641_v37, %v6490_v50 }
0x1620   :  { %v7658_v1 = vpop.f32.mrb[100].mxu0  ;;  %v7680_v3 = vpop.f32.mrb[100].mxu1 }
0x1621   :  { %v7659_v52 = vpop.f32.mrb[101].mxu0  ;;  %v7681_v15 = vpop.f32.mrb[101].mxu1 }
0x1622   :  { %v7660_v16 = vadd.f32 %v7659_v52, %v7658_v1  ;;  %v7682_v2 = vadd.f32 %v7681_v15, %v7680_v3  ;;  %v7661_v5 = vpop.f32.mrb[102].mxu0  ;;  %v7683_v17 = vpop.f32.mrb[102].mxu1  ;;  %v8344_v1 = vld [vmem:[#allocation56] sm:$0xff]  }
0x1623   :  { %v7662_v18 = vpop.f32.mrb[103].mxu0  ;;  %v7684_v12 = vpop.f32.mrb[103].mxu1  ;;  %7926 = vmatpush3.bf16.msra.mxu0 %v8344_v1 }
0x1624   :  { %v6569_v39 = vadd.f32 %v7660_v16, %v6528_v42  ;;  %v7663_v23 = vadd.f32 %v7662_v18, %v7661_v5  ;;  %v7685_v6 = vadd.f32 %v7684_v12, %v7683_v17  ;;  %7927 = vmatprep.subr.bf16.mxu0 %v9384_v20  ;;  %v7360_v18 = vld [vmem:[#allocation53] ss:$0 sm:$0xff] }
0x1626   :  { %v6610_v24 = vadd.f32 %v7682_v2, %v6569_v39  ;;  %v6572_v26 = vadd.f32 %v7663_v23, %v6531_v43 }
0x1628   :  { %v6613_v27 = vadd.f32 %v7685_v6, %v6572_v26 }
0x1640   :  { %v7702_v4 = vpop.f32.mrb[104].mxu0 }
0x1641   :  { %v7724_v29 = vpop.f32.mrb[104].mxu1  ;;  %v7703_v30 = vpop.f32.mrb[105].mxu0 }
0x1642   :  { %v7704_v21 = vadd.f32 %v7703_v30, %v7702_v4  ;;  %v7725_v31 = vpop.f32.mrb[105].mxu1  ;;  %v7705_v22 = vpop.f32.mrb[106].mxu0 }
0x1643   :  { %v7726_v0 = vadd.f32 %v7725_v31, %v7724_v29  ;;  %v7727_v58 = vpop.f32.mrb[106].mxu1  ;;  %v7706_v32 = vpop.f32.mrb[107].mxu0  ;;  %v7362_v29 = vld [vmem:[#allocation58] ss:$0 sm:$0xff] }
0x1644   :  { %v6651_v8 = vadd.f32 %v7704_v21, %v6610_v24  ;;  %v7707_v33 = vadd.f32 %v7706_v32, %v7705_v22  ;;  %v7728_v34 = vpop.f32.mrb[107].mxu1  ;;  %v7361_v24 = vld [vmem:[#allocation55] ss:$0 sm:$0xff] }
0x1645   :  { %v7729_v35 = vadd.f32 %v7728_v34, %v7727_v58 }
0x1646   :  { %v6692_v36 = vadd.f32 %v7726_v0, %v6651_v8  ;;  %v6654_v40 = vadd.f32 %v7707_v33, %v6613_v27 }
0x1648   :  { %v6695_v47 = vadd.f32 %v7729_v35, %v6654_v40 }
0x1660   :  { %v7746_v63 = vpop.f32.mrb[108].mxu0 }
0x1661   :  { %v7768_v44 = vpop.f32.mrb[108].mxu1  ;;  %v7747_v7 = vpop.f32.mrb[109].mxu0 }
0x1662   :  { %v7748_v48 = vadd.f32 %v7747_v7, %v7746_v63  ;;  %v7769_v59 = vpop.f32.mrb[109].mxu1  ;;  %v7749_v54 = vpop.f32.mrb[110].mxu0 }
0x1663   :  { %v7770_v51 = vadd.f32 %v7769_v59, %v7768_v44  ;;  %v7771_v55 = vpop.f32.mrb[110].mxu1  ;;  %v7750_v28 = vpop.f32.mrb[111].mxu0 }
0x1664   :  { %v6733_v56 = vadd.f32 %v7748_v48, %v6692_v36  ;;  %v7751_v10 = vadd.f32 %v7750_v28, %v7749_v54  ;;  %v7772_v57 = vpop.f32.mrb[111].mxu1 }
0x1665   :  { %v7773_v61 = vadd.f32 %v7772_v57, %v7771_v55 }
0x1666   :  { %v6774_v45 = vadd.f32 %v7770_v51, %v6733_v56  ;;  %v6736_v9 = vadd.f32 %v7751_v10, %v6695_v47 }
0x1668   :  { %v6777_v11 = vadd.f32 %v7773_v61, %v6736_v9  ;;  %v6780_v53 = vadd.f32 %v6774_v45, %v10111_v38 }
0x166a   :  { %v6784_v62 = vsel %vm670_vm0, %v6780_v53, 0.0  ;;  %v6781_v13 = vadd.f32 %v6777_v11, %v10113_v41  ;;  %v8345_v41 = vld [vmem:[#allocation56 + $0x8] sm:$0xff]  }
0x166b   :  { %6785 = vadd.xlane.f32.xlu1 %v6784_v62  ;;  %7928 = vmatpush3.bf16.msra.mxu0 %v8345_v41 }
0x166c   :  { %v6787_v49 = vsel %vm670_vm0, %v6781_v13, 0.0 }
0x166d   :  { %6788 = vadd.xlane.f32.xlu0 %v6787_v49 }
0x16f8   :  { %v6786_v25 = vpop.xlane.xlu1 %6785 }
0x16f9   :  { %v6790_v46 = vmul.f32 0.03125, %v6786_v25 }
0x16fa   :  { %v6789_v60 = vpop.xlane.xlu0 %6788 }
0x16fb   :  { %v6792_v14 = vsub.f32 %v6780_v53, %v6790_v46  ;;  %v6791_v19 = vmul.f32 0.03125, %v6789_v60 }
0x16fd   :  { %v6793_v37 = vsub.f32 %v6781_v13, %v6791_v19  ;;  %v6794_v42 = vmul.f32 %v6792_v14, %v6792_v14 }
0x16ff   :  { %v6796_v50 = vsel %vm670_vm0, %v6794_v42, 0.0  ;;  %v6795_v43 = vmul.f32 %v6793_v37, %v6793_v37 }
0x1700   :  { %6797 = vadd.xlane.f32.xlu1 %v6796_v50 }
0x1701   :  { %v6799_v38 = vsel %vm670_vm0, %v6795_v43, 0.0 }
0x1702   :  { %6800 = vadd.xlane.f32.xlu0 %v6799_v38 }
0x178d   :  { %v6798_v3 = vpop.xlane.xlu1 %6797 }
0x178e   :  { %v6802_v52 = vmul.f32 0.03125, %v6798_v3 }
0x178f   :  { %v6801_v15 = vpop.xlane.xlu0 %6800 }
0x1790   :  { %v6804_v16 = vadd.f32 1e-05, %v6802_v52  ;;  %v6803_v2 = vmul.f32 0.03125, %v6801_v15 }
0x1792   :  { %8422 = vrsqrt.f32 %v6804_v16  ;;  %v6805_v5 = vadd.f32 1e-05, %v6803_v2 }
0x1794   :  { %8424 = vrsqrt.f32 %v6805_v5 }
0x179c   :  { %v8423_v17 = vpop.eup %8422 }
0x179d   :  { %v6808_v12 = vmul.f32 %v8423_v17, %v6792_v14 }
0x179e   :  { %v8425_v39 = vpop.eup %8424 }
0x179f   :  { %v6816_v23 = vmul.f32 %v7360_v18, %v6808_v12  ;;  %v6809_v6 = vmul.f32 %v8425_v39, %v6793_v37 }
0x17a1   :  { %v6817_v26 = vmul.f32 %v7360_v18, %v6809_v6  ;;  %v6824_v27 = vadd.f32 %v7361_v24, %v6816_v23 }
0x17a3   :  { %v6825_v4 = vadd.f32 %v7361_v24, %v6817_v26 }
0x17a5   :  { %v6826_v20 = vpack.c.bf16 %v6825_v4, %v6824_v27 }
0x17a7   :  { %7930 = vmatmul.mubr.msk.bf16.vlgmr.msra.gmra.mrb[112].mxu0 %vm670_vm0, %v6826_v20 }
0x187a   :  { %v6887_v30 = vpop.f32.mrb[112].mxu0 }
0x187b   :  { %v6888_v21 = vadd.f32 %v7362_v29, %v6887_v30  ;;  %v7931_v31 = vpop.f32.mrb[113].mxu0 }
0x187c   :  { %v6890_v22 = vpop.f32.mrb[114].mxu0 }
0x187d   :  { %6894 = vst.msk [vmem:[#allocation59] sm:$0xff] %vm1241_vm4, %v6888_v21  ;;  %v6891_v0 = vadd.f32 %v7362_v29, %v6890_v22  ;;  %v7932_v58 = vpop.f32.mrb[115].mxu0 }
0x187f   :  { %6895 = vst.msk [vmem:[#allocation59 + $0x8] sm:$0xff] %vm1241_vm4, %v6891_v0 }
0x1880   :  { %9253 = shalt.err (!%p9250_p6)
}
0x1881   :  { %s9254_s2 = scalar_lea.hbm %s9580_s13, 256 }
0x1882   :  { %p9255_p7 = scmp.ne.s32.totalorder %s9580_s13, %s9254_s2  ;;  %p9258_p8 = scmp.lt.u32.totalorder %s9254_s2, %s9580_s13 }
0x1884   :  { %p9260_p9 = pnand %p9258_p8, %p9255_p7 }
0x1886   :  { %9263 = shalt.err (!%p9260_p9)
}
0x1887   :  { %6907 = dma.vmem_to_hbm [thread:$0]  %s6902_s27, 256, %s9580_s13, [#allocation4], %s9343_s18, %s9343_s18, %s9344_s22  }
0x1888   :  { %9302 = dma.done.wait [#allocation4], 256  }
0x1889   :  { %9303 = vsyncadd [#allocation4], 4294967040 }
0x188a   :  { %6911 = vsyncpa [#allocation3], 1 }
0x188b   :  { %6912 = vsyncpa [#allocation6], 1 }
0x188c   :  { %6913 = vsyncpa [#allocation9], 1 }
0x188d   :  { %6914 = vsyncpa [#allocation12], 1 }
0x188e   :  { %6915 = vsyncpa [#allocation15], 1 }
0x188f   :  { %6916 = vsyncpa [#allocation18], 1 }
0x1890   :  { %6917 = vsyncpa [#allocation21], 1 }
0x1891   :  { %6918 = vsyncpa [#allocation24], 1 }
0x1892   :  { %6919 = vsyncpa [#allocation27], 1 }
0x1893   :  { %6920 = vsyncpa [#allocation30], 1 }
0x1894   :  { %6921 = vsyncpa [#allocation33], 1 }
0x1895   :  { %6922 = vsyncpa [#allocation36], 1 }
0x1896   :  { %6923 = vsyncpa [#allocation39], 1 }
0x1897   :  { %6924 = vsyncpa [#allocation42], 1 }
0x1898   :  { %6925 = vsyncpa [#allocation45], 1 }
0x1899   :  { %6926 = vsyncpa [#allocation48], 1 }
0x189a   :  { %6927 = vsyncpa [#allocation51], 1 }
0x189b   :  { %6928 = vsyncpa [#allocation54], 1 }
0x189c   :  { %6929 = vsyncpa [#allocation57], 1 }
0x189d   :  { %6930 = vsyncpa [#allocation4], 1 }

</bundles_post_ra>
